<compile_context>
chip_gen: v5e
topology: v5e:2x2
jax: 0.10.0
libtpu: 0.0.40
codegen_flags: <defaults>
</compile_context>

<pallas_src>
import functools
import math

import jax
import jax.numpy as jnp
from jax import lax
from jax.experimental import pallas as pl
from jax.experimental.pallas import tpu as pltpu

LEAK = 0.2  # LeakyReLU negative slope


def _leaky(y):
    return jnp.where(y > 0, y, LEAK * y)


# ---------------------------------------------------------------------------
# Fused kernel: conv stack + proj + entmax15 + codebook for ONE batch tile.
#   pad_ref : VMEM scratch for on-chip zero-padding / im2col gathering.
#   acts_ref: VMEM scratch holding the conv outputs of every sample in the tile
#             so the proj/entmax/codebook stage can run batched (M = rows).
# ---------------------------------------------------------------------------
def _neural_celp_kernel(x_ref, w1_ref, b1_ref, wk_ref, bk_ref,
                        l1w_ref, l1b_ref, l2w_ref, l2b_ref, cbt_ref,
                        o_ref, pad_ref, acts_ref):
    f32, bf16 = jnp.float32, jnp.bfloat16
    bt, t_len = x_ref.shape[0], x_ref.shape[1]
    hidden = w1_ref.shape[1]
    wl = cbt_ref.shape[1]
    t16 = t_len // 16                 # conv-stack output length per sample
    step = wl // 16                   # time steps per frame after 4x stride-2
    num_frame = t_len // wl
    rows = bt * num_frame             # frames in this batch tile (== o_ref rows)

    w1 = w1_ref[...]                  # (7, H) f32 -- hoisted out of the sample loop
    b1 = b1_ref[...]                  # (1, H)

    # ---- conv stack for ONE sample; result lands in acts_ref rows [s*t16, ...) ----
    def conv_one_sample(s):
        # conv1: Cin=1 -> H, k=7, s=1, p=3 as 7 shifted VPU FMAs.
        # TODO(synk): the pad_ref round trip could be replaced by pltpu.roll on an
        # in-register padded value; kept ref-based because it lowers cleanly and
        # conv1 is a tiny share of the runtime.
        zeros3 = jnp.zeros((3, hidden), f32)
        pad_ref[0:3, :] = zeros3                               # left zero pad
        pad_ref[3 + t_len:6 + t_len, :] = zeros3               # right zero pad
        pad_ref[3:3 + t_len, :] = jnp.broadcast_to(x_ref[s], (t_len, hidden))
        acc = jnp.zeros((t_len, hidden), f32)
        for i in range(7):
            acc = acc + pad_ref[i:i + t_len, :] * w1[i:i + 1, :]
        act = _leaky(acc + b1)
        length = t_len

        # conv2..5: H -> H, k=4, s=2, p=1.  im2col stays in VMEM: padded activation
        # lives in pad_ref; four stride-2 sublane reads + a lane concat build the
        # (Lout, 4H) patch; one bf16 MXU matmul (K = 4H = 128) per layer.
        zrow = jnp.zeros((1, hidden), f32)
        for layer in range(4):
            l_out = length // 2
            pad_ref[0:1, :] = zrow
            pad_ref[1 + length:2 + length, :] = zrow
            pad_ref[1:1 + length, :] = act
            taps = [pad_ref[pl.ds(i, l_out, 2), :] for i in range(4)]
            patch = jnp.concatenate(taps, axis=-1)             # (Lout, 4H) f32
            y = jnp.dot(patch.astype(bf16), wk_ref[layer],
                        preferred_element_type=f32) + bk_ref[layer]
            act = _leaky(y)
            length = l_out

        # act: (t16, H) f32 -- stash so the tail matmuls can run over all samples.
        acts_ref[pl.ds(s * t16, t16), :] = act

    if bt <= 8:
        for s in range(bt):           # fully unrolled for small batch tiles
            conv_one_sample(s)
    else:
        def body(s, carry):
            conv_one_sample(s)
            return carry
        lax.fori_loop(0, bt, body, 0)

    # ---- frame flatten (time-outer, channel-inner), once for the whole tile ----
    # Global frame row g = sample*num_frame + frame; frames[g] = concat over tt of
    # acts[g*step + tt, :] == the permute(0,2,1).reshape used by the PyTorch model.
    chunks = [acts_ref[pl.ds(tt, rows, step), :] for tt in range(step)]
    frames = jnp.concatenate(chunks, axis=-1)                  # (rows, fc) f32

    # ---- proj: Linear(fc -> 1024) + LeakyReLU, batched over the whole tile ----
    h1 = jnp.dot(frames.astype(bf16), l1w_ref[...], preferred_element_type=f32)
    h1 = _leaky(h1 + l1b_ref[...])

    # ---- Linear(1024 -> C) ----
    logits = jnp.dot(h1.astype(bf16), l2w_ref[...], preferred_element_type=f32)
    logits = logits + l2b_ref[...]

    # ---- entmax15 (alpha=1.5): p_i = [X_i - tau]_+^2 with sum(p)=1, X=logits/2.
    # TODO(synk): exact entmax15 uses a sort-based threshold; the 24 unrolled
    # bisection steps below converge to the same tau to f32 precision.
    d = logits.shape[-1]
    x15 = logits * 0.5
    tau = jnp.max(x15, axis=-1, keepdims=True) - 1.0           # f(tau) >= 0 here
    half = 1.0 - (1.0 / d) ** 0.5                              # static bracket width
    for _ in range(24):
        half *= 0.5
        tau_m = tau + half
        f_m = jnp.sum(jnp.maximum(x15 - tau_m, 0.0) ** 2,
                      axis=-1, keepdims=True) - 1.0
        tau = jnp.where(f_m >= 0.0, tau_m, tau)
    p = jnp.maximum(x15 - tau, 0.0) ** 2
    p = p / jnp.sum(p, axis=-1, keepdims=True)

    # ---- codebook: Linear(C -> wl, bias=False) == p @ codebook.weight.T ----
    o_ref[...] = jnp.dot(p.astype(bf16), cbt_ref[...], preferred_element_type=f32)


# ---------------------------------------------------------------------------
# Parameter construction: kernel-ready layouts (pre-transposed / pre-cast once)
# ---------------------------------------------------------------------------
def init_params(key, codebook_size, hidden_channels, window_length):
    h, c, wl = hidden_channels, codebook_size, window_length
    fc = h * wl // 16
    keys = jax.random.split(key, 16)

    def u(k_, shape, scale):
        return jax.random.uniform(k_, shape, jnp.float32, -scale, scale)

    conv1_w = u(keys[0], (h, 1, 7), 0.3)                       # torch (Cout,Cin,K)
    convk_w = [u(keys[1 + i], (h, h, 4), 0.1) for i in range(4)]
    conv_b = [u(keys[5 + i], (h,), 0.05) for i in range(5)]
    lin1_w = u(keys[10], (1024, fc), 0.05)                     # torch (out,in)
    lin1_b = u(keys[11], (1024,), 0.05)
    lin2_w = u(keys[12], (c, 1024), 0.05)
    lin2_b = u(keys[13], (c,), 0.05)
    cb_w = u(keys[14], (wl, c), 0.9)                           # codebook uniform(-0.9,0.9)

    params = {
        # conv1: (Cout,1,7) -> (K=7, Cout) f32 (used on the VPU)
        "w1": jnp.transpose(conv1_w, (2, 1, 0)).reshape(7, h),
        "b1": conv_b[0][None, :],
        # conv2..5: (Cout,Cin,4) -> (K*Cin=4H, Cout), stacked, bf16 for the MXU
        "wk": jnp.stack([jnp.transpose(w, (2, 1, 0)).reshape(4 * h, h)
                         for w in convk_w]).astype(jnp.bfloat16),
        "bk": jnp.stack([b[None, :] for b in conv_b[1:]]),
        # linears / codebook pre-transposed to (K, N), bf16 for the MXU
        "l1w": lin1_w.T.astype(jnp.bfloat16),                  # (fc, 1024)
        "l1b": lin1_b[None, :],
        "l2w": lin2_w.T.astype(jnp.bfloat16),                  # (1024, C)
        "l2b": lin2_b[None, :],
        "cbt": cb_w.T.astype(jnp.bfloat16),                    # (C, wl)
    }
    return params


# ---------------------------------------------------------------------------
# Forward wrapper: one fused pallas_call, grid over batch TILES.
# ---------------------------------------------------------------------------
def _pick_batch_tile(bsz, num_frame):
    """Batch-tile size: ~128 matmul rows per grid step, tiling-aligned."""
    bt = max(1, 128 // max(num_frame, 1))
    if bt >= bsz:
        return bsz                       # single grid step; block == full array
    m = 8 // math.gcd(num_frame, 8)      # keep (bt*num_frame) % 8 == 0 when grid > 1
    return max(m, (bt // m) * m)


def neural_celp_forward(params, x, *, codebook_size, hidden_channels,
                        window_length, batch_tile=None):
    bsz, cin, t = x.shape
    assert cin == 1
    h, wl, c = hidden_channels, window_length, codebook_size
    assert wl % 16 == 0 and t % wl == 0
    num_frame = t // wl
    fc = h * wl // 16

    bt = batch_tile if batch_tile is not None else _pick_batch_tile(bsz, num_frame)
    padded_bsz = -(-bsz // bt) * bt

    # NCW (B,1,T) -> channels-last (B,T,1) (metadata only) + zero-pad the batch
    # up to a multiple of the batch tile (padded rows are discarded below).
    x_cl = x.reshape(bsz, t, 1)
    if padded_bsz != bsz:
        x_cl = jnp.concatenate(
            [x_cl, jnp.zeros((padded_bsz - bsz, t, 1), x.dtype)], axis=0)

    # TODO(synk): for very long audio, additionally tile the time axis with conv
    # halos (3 samples for conv1, 1 per stride-2 layer) instead of keeping the
    # whole per-sample sequence resident in VMEM (matters most on v7x, 64 MiB).
    out = pl.pallas_call(
        _neural_celp_kernel,
        out_shape=jax.ShapeDtypeStruct((padded_bsz * num_frame, wl), jnp.float32),
        grid_spec=pltpu.PrefetchScalarGridSpec(
            num_scalar_prefetch=0,
            grid=(padded_bsz // bt,),
            in_specs=[
                pl.BlockSpec((bt, t, 1), lambda b: (b, 0, 0)),     # input batch tile
                pl.BlockSpec((7, h), lambda b: (0, 0)),            # conv1 weight
                pl.BlockSpec((1, h), lambda b: (0, 0)),            # conv1 bias
                pl.BlockSpec((4, 4 * h, h), lambda b: (0, 0, 0)),  # conv2..5 weights
                pl.BlockSpec((4, 1, h), lambda b: (0, 0, 0)),      # conv2..5 biases
                pl.BlockSpec((fc, 1024), lambda b: (0, 0)),        # lin1 (fc,1024)
                pl.BlockSpec((1, 1024), lambda b: (0, 0)),
                pl.BlockSpec((1024, c), lambda b: (0, 0)),         # lin2 (1024,C)
                pl.BlockSpec((1, c), lambda b: (0, 0)),
                pl.BlockSpec((c, wl), lambda b: (0, 0)),           # codebook^T (C,wl)
            ],
            out_specs=pl.BlockSpec((bt * num_frame, wl), lambda b: (b, 0)),
            scratch_shapes=[
                pltpu.VMEM((t + 8, h), jnp.float32),               # conv pad / im2col
                pltpu.VMEM((bt * (t // 16), h), jnp.float32),      # conv outputs (tile)
            ],
        ),
        compiler_params=pltpu.CompilerParams(
            dimension_semantics=("parallel",),
            vmem_limit_bytes=32 * 1024 * 1024,
        ),
    )(x_cl, params["w1"], params["b1"], params["wk"], params["bk"],
      params["l1w"], params["l1b"], params["l2w"], params["l2b"], params["cbt"])

    out = out[: bsz * num_frame]                       # drop batch-padding rows
    return out.reshape(bsz, 1, num_frame * wl)         # free metadata reshape


if __name__ == "__main__":
    codebook_size = 64
    hidden_channels = 32
    window_length = 64
    batch = 2
    num_frame = 2
    t = num_frame * window_length  # 128

    key = jax.random.PRNGKey(0)
    pkey, xkey = jax.random.split(key)
    params = init_params(pkey, codebook_size, hidden_channels, window_length)
    x = jax.random.normal(xkey, (batch, 1, t), jnp.float32)

    fwd = jax.jit(
        functools.partial(
            neural_celp_forward,
            codebook_size=codebook_size,
            hidden_channels=hidden_channels,
            window_length=window_length,
        )
    )
    out = fwd(params, x)
    jax.block_until_ready(out)
    assert out.shape == (batch, 1, t), out.shape
    assert out.dtype == jnp.float32
    assert bool(jnp.all(jnp.isfinite(out)))
    print("KERNEL_OK")
</pallas_src>

<mosaic_0001>
module attributes {stable_mosaic.version = 11 : i64} {
  func.func @_neural_celp_kernel(%arg0: i32, %arg1: memref<2x128x1xf32, #tpu.memory_space<vmem>>, %arg2: memref<7x32xf32, #tpu.memory_space<vmem>>, %arg3: memref<1x32xf32, #tpu.memory_space<vmem>>, %arg4: memref<4x128x32xbf16, #tpu.memory_space<vmem>>, %arg5: memref<4x1x32xf32, #tpu.memory_space<vmem>>, %arg6: memref<128x1024xbf16, #tpu.memory_space<vmem>>, %arg7: memref<1x1024xf32, #tpu.memory_space<vmem>>, %arg8: memref<1024x64xbf16, #tpu.memory_space<vmem>>, %arg9: memref<1x64xf32, #tpu.memory_space<vmem>>, %arg10: memref<64x64xbf16, #tpu.memory_space<vmem>>, %arg11: memref<4x64xf32, #tpu.memory_space<vmem>>, %arg12: memref<136x32xf32, #tpu.memory_space<vmem>>, %arg13: memref<16x32xf32, #tpu.memory_space<vmem>>) attributes {dimension_semantics = [#tpu.dimension_semantics<parallel>], iteration_bounds = array<i64: 1>, scalar_prefetch = 0 : i64, scratch_operands = 2 : i64, tpu.core_type = #tpu.core_type<tc>, window_params = [{transform_indices = @transform_0, window_bounds = array<i64: 2, 128, 1>}, {pipeline_mode = #tpu.pipeline_mode<synchronous>, transform_indices = @transform_1, window_bounds = array<i64: 7, 32>}, {pipeline_mode = #tpu.pipeline_mode<synchronous>, transform_indices = @transform_2, window_bounds = array<i64: 1, 32>}, {pipeline_mode = #tpu.pipeline_mode<synchronous>, transform_indices = @transform_3, window_bounds = array<i64: 4, 128, 32>}, {pipeline_mode = #tpu.pipeline_mode<synchronous>, transform_indices = @transform_4, window_bounds = array<i64: 4, 1, 32>}, {pipeline_mode = #tpu.pipeline_mode<synchronous>, transform_indices = @transform_5, window_bounds = array<i64: 128, 1024>}, {pipeline_mode = #tpu.pipeline_mode<synchronous>, transform_indices = @transform_6, window_bounds = array<i64: 1, 1024>}, {pipeline_mode = #tpu.pipeline_mode<synchronous>, transform_indices = @transform_7, window_bounds = array<i64: 1024, 64>}, {pipeline_mode = #tpu.pipeline_mode<synchronous>, transform_indices = @transform_8, window_bounds = array<i64: 1, 64>}, {pipeline_mode = #tpu.pipeline_mode<synchronous>, transform_indices = @transform_9, window_bounds = array<i64: 64, 64>}, {transform_indices = @transform_10, window_bounds = array<i64: 4, 64>}]} {
    %c0 = arith.constant 0 : index
    %c0_0 = arith.constant 0 : index
    %0 = vector.load %arg2[%c0, %c0_0] : memref<7x32xf32, #tpu.memory_space<vmem>>, vector<7x32xf32>
    %c0_1 = arith.constant 0 : index
    %c0_2 = arith.constant 0 : index
    %1 = vector.load %arg3[%c0_1, %c0_2] : memref<1x32xf32, #tpu.memory_space<vmem>>, vector<1x32xf32>
    %cst = arith.constant 0.000000e+00 : f32
    %2 = vector.broadcast %cst : f32 to vector<3x32xf32>
    %c0_3 = arith.constant 0 : index
    %c0_4 = arith.constant 0 : index
    %3 = vector.load %arg12[%c0_3, %c0_4] : memref<136x32xf32, #tpu.memory_space<vmem>>, vector<3x32xf32>
    tpu.vector_store %arg12[%c0_3, %c0_4], %2 {strides = array<i32>} : memref<136x32xf32, #tpu.memory_space<vmem>>, vector<3x32xf32>,
    %c131 = arith.constant 131 : index
    %c0_5 = arith.constant 0 : index
    %4 = vector.load %arg12[%c131, %c0_5] : memref<136x32xf32, #tpu.memory_space<vmem>>, vector<3x32xf32>
    tpu.vector_store %arg12[%c131, %c0_5], %2 {strides = array<i32>} : memref<136x32xf32, #tpu.memory_space<vmem>>, vector<3x32xf32>,
    %c0_6 = arith.constant 0 : index
    %c0_7 = arith.constant 0 : index
    %c0_8 = arith.constant 0 : index
    %5 = vector.load %arg1[%c0_6, %c0_7, %c0_8] : memref<2x128x1xf32, #tpu.memory_space<vmem>>, vector<1x128x1xf32>
    %6 = vector.shape_cast %5 : vector<1x128x1xf32> to vector<128x1xf32>
    %7 = vector.shape_cast %6 : vector<128x1xf32> to vector<128x1xf32>
    %8 = vector.broadcast %7 : vector<128x1xf32> to vector<128x32xf32>
    %c3 = arith.constant 3 : index
    %c0_9 = arith.constant 0 : index
    %9 = vector.load %arg12[%c3, %c0_9] : memref<136x32xf32, #tpu.memory_space<vmem>>, vector<128x32xf32>
    tpu.vector_store %arg12[%c3, %c0_9], %8 {strides = array<i32>} : memref<136x32xf32, #tpu.memory_space<vmem>>, vector<128x32xf32>,
    %cst_10 = arith.constant 0.000000e+00 : f32
    %10 = vector.broadcast %cst_10 : f32 to vector<128x32xf32>
    %c0_11 = arith.constant 0 : index
    %c0_12 = arith.constant 0 : index
    %11 = vector.load %arg12[%c0_11, %c0_12] : memref<136x32xf32, #tpu.memory_space<vmem>>, vector<128x32xf32>
    %12 = vector.extract_strided_slice %0 {offsets = [0, 0], sizes = [1, 32], strides = [1, 1]} : vector<7x32xf32> to vector<1x32xf32>
    %13 = vector.broadcast %12 : vector<1x32xf32> to vector<128x32xf32>
    %14 = arith.mulf %11, %13 : vector<128x32xf32>
    %15 = arith.addf %10, %14 : vector<128x32xf32>
    %c1 = arith.constant 1 : index
    %c0_13 = arith.constant 0 : index
    %16 = vector.load %arg12[%c1, %c0_13] : memref<136x32xf32, #tpu.memory_space<vmem>>, vector<128x32xf32>
    %17 = vector.extract_strided_slice %0 {offsets = [1, 0], sizes = [1, 32], strides = [1, 1]} : vector<7x32xf32> to vector<1x32xf32>
    %18 = vector.broadcast %17 : vector<1x32xf32> to vector<128x32xf32>
    %19 = arith.mulf %16, %18 : vector<128x32xf32>
    %20 = arith.addf %15, %19 : vector<128x32xf32>
    %c2 = arith.constant 2 : index
    %c0_14 = arith.constant 0 : index
    %21 = vector.load %arg12[%c2, %c0_14] : memref<136x32xf32, #tpu.memory_space<vmem>>, vector<128x32xf32>
    %22 = vector.extract_strided_slice %0 {offsets = [2, 0], sizes = [1, 32], strides = [1, 1]} : vector<7x32xf32> to vector<1x32xf32>
    %23 = vector.broadcast %22 : vector<1x32xf32> to vector<128x32xf32>
    %24 = arith.mulf %21, %23 : vector<128x32xf32>
    %25 = arith.addf %20, %24 : vector<128x32xf32>
    %c3_15 = arith.constant 3 : index
    %c0_16 = arith.constant 0 : index
    %26 = vector.load %arg12[%c3_15, %c0_16] : memref<136x32xf32, #tpu.memory_space<vmem>>, vector<128x32xf32>
    %27 = vector.extract_strided_slice %0 {offsets = [3, 0], sizes = [1, 32], strides = [1, 1]} : vector<7x32xf32> to vector<1x32xf32>
    %28 = vector.broadcast %27 : vector<1x32xf32> to vector<128x32xf32>
    %29 = arith.mulf %26, %28 : vector<128x32xf32>
    %30 = arith.addf %25, %29 : vector<128x32xf32>
    %c4 = arith.constant 4 : index
    %c0_17 = arith.constant 0 : index
    %31 = vector.load %arg12[%c4, %c0_17] : memref<136x32xf32, #tpu.memory_space<vmem>>, vector<128x32xf32>
    %32 = vector.extract_strided_slice %0 {offsets = [4, 0], sizes = [1, 32], strides = [1, 1]} : vector<7x32xf32> to vector<1x32xf32>
    %33 = vector.broadcast %32 : vector<1x32xf32> to vector<128x32xf32>
    %34 = arith.mulf %31, %33 : vector<128x32xf32>
    %35 = arith.addf %30, %34 : vector<128x32xf32>
    %c5 = arith.constant 5 : index
    %c0_18 = arith.constant 0 : index
    %36 = vector.load %arg12[%c5, %c0_18] : memref<136x32xf32, #tpu.memory_space<vmem>>, vector<128x32xf32>
    %37 = vector.extract_strided_slice %0 {offsets = [5, 0], sizes = [1, 32], strides = [1, 1]} : vector<7x32xf32> to vector<1x32xf32>
    %38 = vector.broadcast %37 : vector<1x32xf32> to vector<128x32xf32>
    %39 = arith.mulf %36, %38 : vector<128x32xf32>
    %40 = arith.addf %35, %39 : vector<128x32xf32>
    %c6 = arith.constant 6 : index
    %c0_19 = arith.constant 0 : index
    %41 = vector.load %arg12[%c6, %c0_19] : memref<136x32xf32, #tpu.memory_space<vmem>>, vector<128x32xf32>
    %42 = vector.extract_strided_slice %0 {offsets = [6, 0], sizes = [1, 32], strides = [1, 1]} : vector<7x32xf32> to vector<1x32xf32>
    %43 = vector.broadcast %42 : vector<1x32xf32> to vector<128x32xf32>
    %44 = arith.mulf %41, %43 : vector<128x32xf32>
    %45 = arith.addf %40, %44 : vector<128x32xf32>
    %46 = vector.broadcast %1 : vector<1x32xf32> to vector<128x32xf32>
    %47 = arith.addf %45, %46 : vector<128x32xf32>
    %cst_20 = arith.constant 0.000000e+00 : f32
    %48 = vector.broadcast %cst_20 : f32 to vector<128x32xf32>
    %49 = arith.cmpf ogt, %47, %48 : vector<128x32xf32>
    %cst_21 = arith.constant 2.000000e-01 : f32
    %50 = vector.broadcast %cst_21 : f32 to vector<128x32xf32>
    %51 = arith.mulf %50, %47 : vector<128x32xf32>
    %52 = arith.select %49, %47, %51 : vector<128x32xi1>, vector<128x32xf32>
    %cst_22 = arith.constant 0.000000e+00 : f32
    %53 = vector.broadcast %cst_22 : f32 to vector<1x32xf32>
    %c0_23 = arith.constant 0 : index
    %c0_24 = arith.constant 0 : index
    %54 = vector.load %arg12[%c0_23, %c0_24] : memref<136x32xf32, #tpu.memory_space<vmem>>, vector<1x32xf32>
    tpu.vector_store %arg12[%c0_23, %c0_24], %53 {strides = array<i32>} : memref<136x32xf32, #tpu.memory_space<vmem>>, vector<1x32xf32>,
    %c129 = arith.constant 129 : index
    %c0_25 = arith.constant 0 : index
    %55 = vector.load %arg12[%c129, %c0_25] : memref<136x32xf32, #tpu.memory_space<vmem>>, vector<1x32xf32>
    tpu.vector_store %arg12[%c129, %c0_25], %53 {strides = array<i32>} : memref<136x32xf32, #tpu.memory_space<vmem>>, vector<1x32xf32>,
    %c1_26 = arith.constant 1 : index
    %c0_27 = arith.constant 0 : index
    %56 = vector.load %arg12[%c1_26, %c0_27] : memref<136x32xf32, #tpu.memory_space<vmem>>, vector<128x32xf32>
    tpu.vector_store %arg12[%c1_26, %c0_27], %52 {strides = array<i32>} : memref<136x32xf32, #tpu.memory_space<vmem>>, vector<128x32xf32>,
    %c0_28 = arith.constant 0 : index
    %c0_29 = arith.constant 0 : index
    %57 = tpu.strided_load %arg12[%c0_28, %c0_29] {strides = array<i32: 2, 1>} : memref<136x32xf32, #tpu.memory_space<vmem>>, vector<64x32xf32>
    %c1_30 = arith.constant 1 : index
    %c0_31 = arith.constant 0 : index
    %58 = tpu.strided_load %arg12[%c1_30, %c0_31] {strides = array<i32: 2, 1>} : memref<136x32xf32, #tpu.memory_space<vmem>>, vector<64x32xf32>
    %c2_32 = arith.constant 2 : index
    %c0_33 = arith.constant 0 : index
    %59 = tpu.strided_load %arg12[%c2_32, %c0_33] {strides = array<i32: 2, 1>} : memref<136x32xf32, #tpu.memory_space<vmem>>, vector<64x32xf32>
    %c3_34 = arith.constant 3 : index
    %c0_35 = arith.constant 0 : index
    %60 = tpu.strided_load %arg12[%c3_34, %c0_35] {strides = array<i32: 2, 1>} : memref<136x32xf32, #tpu.memory_space<vmem>>, vector<64x32xf32>
    %61 = tpu.concatenate %57, %58, %59, %60 in 1 : vector<64x32xf32>, vector<64x32xf32>, vector<64x32xf32>, vector<64x32xf32> -> vector<64x128xf32>
    %62 = arith.truncf %61 : vector<64x128xf32> to vector<64x128xbf16>
    %c0_36 = arith.constant 0 : index
    %c0_37 = arith.constant 0 : index
    %c0_38 = arith.constant 0 : index
    %63 = vector.load %arg4[%c0_36, %c0_37, %c0_38] : memref<4x128x32xbf16, #tpu.memory_space<vmem>>, vector<1x128x32xbf16>
    %64 = vector.shape_cast %63 : vector<1x128x32xbf16> to vector<128x32xbf16>
    %cst_39 = arith.constant dense<0.000000e+00> : vector<64x32xf32>
    %65 = tpu.matmul %62, %64, %cst_39 {dimension_numbers = #tpu.dot_dimension_numbers<[1], [0], [0], [1], [0, 0, 1, 1], [], []>} : vector<64x128xbf16>, vector<128x32xbf16>, vector<64x32xf32> -> vector<64x32xf32>
    %c0_40 = arith.constant 0 : index
    %c0_41 = arith.constant 0 : index
    %c0_42 = arith.constant 0 : index
    %66 = vector.load %arg5[%c0_40, %c0_41, %c0_42] : memref<4x1x32xf32, #tpu.memory_space<vmem>>, vector<1x1x32xf32>
    %67 = vector.shape_cast %66 : vector<1x1x32xf32> to vector<1x32xf32>
    %68 = vector.broadcast %67 : vector<1x32xf32> to vector<64x32xf32>
    %69 = arith.addf %65, %68 : vector<64x32xf32>
    %cst_43 = arith.constant 0.000000e+00 : f32
    %70 = vector.broadcast %cst_43 : f32 to vector<64x32xf32>
    %71 = arith.cmpf ogt, %69, %70 : vector<64x32xf32>
    %cst_44 = arith.constant 2.000000e-01 : f32
    %72 = vector.broadcast %cst_44 : f32 to vector<64x32xf32>
    %73 = arith.mulf %72, %69 : vector<64x32xf32>
    %74 = arith.select %71, %69, %73 : vector<64x32xi1>, vector<64x32xf32>
    %c0_45 = arith.constant 0 : index
    %c0_46 = arith.constant 0 : index
    %75 = vector.load %arg12[%c0_45, %c0_46] : memref<136x32xf32, #tpu.memory_space<vmem>>, vector<1x32xf32>
    tpu.vector_store %arg12[%c0_45, %c0_46], %53 {strides = array<i32>} : memref<136x32xf32, #tpu.memory_space<vmem>>, vector<1x32xf32>,
    %c65 = arith.constant 65 : index
    %c0_47 = arith.constant 0 : index
    %76 = vector.load %arg12[%c65, %c0_47] : memref<136x32xf32, #tpu.memory_space<vmem>>, vector<1x32xf32>
    tpu.vector_store %arg12[%c65, %c0_47], %53 {strides = array<i32>} : memref<136x32xf32, #tpu.memory_space<vmem>>, vector<1x32xf32>,
    %c1_48 = arith.constant 1 : index
    %c0_49 = arith.constant 0 : index
    %77 = vector.load %arg12[%c1_48, %c0_49] : memref<136x32xf32, #tpu.memory_space<vmem>>, vector<64x32xf32>
    tpu.vector_store %arg12[%c1_48, %c0_49], %74 {strides = array<i32>} : memref<136x32xf32, #tpu.memory_space<vmem>>, vector<64x32xf32>,
    %c0_50 = arith.constant 0 : index
    %c0_51 = arith.constant 0 : index
    %78 = tpu.strided_load %arg12[%c0_50, %c0_51] {strides = array<i32: 2, 1>} : memref<136x32xf32, #tpu.memory_space<vmem>>, vector<32x32xf32>
    %c1_52 = arith.constant 1 : index
    %c0_53 = arith.constant 0 : index
    %79 = tpu.strided_load %arg12[%c1_52, %c0_53] {strides = array<i32: 2, 1>} : memref<136x32xf32, #tpu.memory_space<vmem>>, vector<32x32xf32>
    %c2_54 = arith.constant 2 : index
    %c0_55 = arith.constant 0 : index
    %80 = tpu.strided_load %arg12[%c2_54, %c0_55] {strides = array<i32: 2, 1>} : memref<136x32xf32, #tpu.memory_space<vmem>>, vector<32x32xf32>
    %c3_56 = arith.constant 3 : index
    %c0_57 = arith.constant 0 : index
    %81 = tpu.strided_load %arg12[%c3_56, %c0_57] {strides = array<i32: 2, 1>} : memref<136x32xf32, #tpu.memory_space<vmem>>, vector<32x32xf32>
    %82 = tpu.concatenate %78, %79, %80, %81 in 1 : vector<32x32xf32>, vector<32x32xf32>, vector<32x32xf32>, vector<32x32xf32> -> vector<32x128xf32>
    %83 = arith.truncf %82 : vector<32x128xf32> to vector<32x128xbf16>
    %c1_58 = arith.constant 1 : index
    %c0_59 = arith.constant 0 : index
    %c0_60 = arith.constant 0 : index
    %84 = vector.load %arg4[%c1_58, %c0_59, %c0_60] : memref<4x128x32xbf16, #tpu.memory_space<vmem>>, vector<1x128x32xbf16>
    %85 = vector.shape_cast %84 : vector<1x128x32xbf16> to vector<128x32xbf16>
    %cst_61 = arith.constant dense<0.000000e+00> : vector<32x32xf32>
    %86 = tpu.matmul %83, %85, %cst_61 {dimension_numbers = #tpu.dot_dimension_numbers<[1], [0], [0], [1], [0, 0, 1, 1], [], []>} : vector<32x128xbf16>, vector<128x32xbf16>, vector<32x32xf32> -> vector<32x32xf32>
    %c1_62 = arith.constant 1 : index
    %c0_63 = arith.constant 0 : index
    %c0_64 = arith.constant 0 : index
    %87 = vector.load %arg5[%c1_62, %c0_63, %c0_64] : memref<4x1x32xf32, #tpu.memory_space<vmem>>, vector<1x1x32xf32>
    %88 = vector.shape_cast %87 : vector<1x1x32xf32> to vector<1x32xf32>
    %89 = vector.broadcast %88 : vector<1x32xf32> to vector<32x32xf32>
    %90 = arith.addf %86, %89 : vector<32x32xf32>
    %cst_65 = arith.constant 0.000000e+00 : f32
    %91 = vector.broadcast %cst_65 : f32 to vector<32x32xf32>
    %92 = arith.cmpf ogt, %90, %91 : vector<32x32xf32>
    %cst_66 = arith.constant 2.000000e-01 : f32
    %93 = vector.broadcast %cst_66 : f32 to vector<32x32xf32>
    %94 = arith.mulf %93, %90 : vector<32x32xf32>
    %95 = arith.select %92, %90, %94 : vector<32x32xi1>, vector<32x32xf32>
    %c0_67 = arith.constant 0 : index
    %c0_68 = arith.constant 0 : index
    %96 = vector.load %arg12[%c0_67, %c0_68] : memref<136x32xf32, #tpu.memory_space<vmem>>, vector<1x32xf32>
    tpu.vector_store %arg12[%c0_67, %c0_68], %53 {strides = array<i32>} : memref<136x32xf32, #tpu.memory_space<vmem>>, vector<1x32xf32>,
    %c33 = arith.constant 33 : index
    %c0_69 = arith.constant 0 : index
    %97 = vector.load %arg12[%c33, %c0_69] : memref<136x32xf32, #tpu.memory_space<vmem>>, vector<1x32xf32>
    tpu.vector_store %arg12[%c33, %c0_69], %53 {strides = array<i32>} : memref<136x32xf32, #tpu.memory_space<vmem>>, vector<1x32xf32>,
    %c1_70 = arith.constant 1 : index
    %c0_71 = arith.constant 0 : index
    %98 = vector.load %arg12[%c1_70, %c0_71] : memref<136x32xf32, #tpu.memory_space<vmem>>, vector<32x32xf32>
    tpu.vector_store %arg12[%c1_70, %c0_71], %95 {strides = array<i32>} : memref<136x32xf32, #tpu.memory_space<vmem>>, vector<32x32xf32>,
    %c0_72 = arith.constant 0 : index
    %c0_73 = arith.constant 0 : index
    %99 = tpu.strided_load %arg12[%c0_72, %c0_73] {strides = array<i32: 2, 1>} : memref<136x32xf32, #tpu.memory_space<vmem>>, vector<16x32xf32>
    %c1_74 = arith.constant 1 : index
    %c0_75 = arith.constant 0 : index
    %100 = tpu.strided_load %arg12[%c1_74, %c0_75] {strides = array<i32: 2, 1>} : memref<136x32xf32, #tpu.memory_space<vmem>>, vector<16x32xf32>
    %c2_76 = arith.constant 2 : index
    %c0_77 = arith.constant 0 : index
    %101 = tpu.strided_load %arg12[%c2_76, %c0_77] {strides = array<i32: 2, 1>} : memref<136x32xf32, #tpu.memory_space<vmem>>, vector<16x32xf32>
    %c3_78 = arith.constant 3 : index
    %c0_79 = arith.constant 0 : index
    %102 = tpu.strided_load %arg12[%c3_78, %c0_79] {strides = array<i32: 2, 1>} : memref<136x32xf32, #tpu.memory_space<vmem>>, vector<16x32xf32>
    %103 = tpu.concatenate %99, %100, %101, %102 in 1 : vector<16x32xf32>, vector<16x32xf32>, vector<16x32xf32>, vector<16x32xf32> -> vector<16x128xf32>
    %104 = arith.truncf %103 : vector<16x128xf32> to vector<16x128xbf16>
    %c2_80 = arith.constant 2 : index
    %c0_81 = arith.constant 0 : index
    %c0_82 = arith.constant 0 : index
    %105 = vector.load %arg4[%c2_80, %c0_81, %c0_82] : memref<4x128x32xbf16, #tpu.memory_space<vmem>>, vector<1x128x32xbf16>
    %106 = vector.shape_cast %105 : vector<1x128x32xbf16> to vector<128x32xbf16>
    %cst_83 = arith.constant dense<0.000000e+00> : vector<16x32xf32>
    %107 = tpu.matmul %104, %106, %cst_83 {dimension_numbers = #tpu.dot_dimension_numbers<[1], [0], [0], [1], [0, 0, 1, 1], [], []>} : vector<16x128xbf16>, vector<128x32xbf16>, vector<16x32xf32> -> vector<16x32xf32>
    %c2_84 = arith.constant 2 : index
    %c0_85 = arith.constant 0 : index
    %c0_86 = arith.constant 0 : index
    %108 = vector.load %arg5[%c2_84, %c0_85, %c0_86] : memref<4x1x32xf32, #tpu.memory_space<vmem>>, vector<1x1x32xf32>
    %109 = vector.shape_cast %108 : vector<1x1x32xf32> to vector<1x32xf32>
    %110 = vector.broadcast %109 : vector<1x32xf32> to vector<16x32xf32>
    %111 = arith.addf %107, %110 : vector<16x32xf32>
    %cst_87 = arith.constant 0.000000e+00 : f32
    %112 = vector.broadcast %cst_87 : f32 to vector<16x32xf32>
    %113 = arith.cmpf ogt, %111, %112 : vector<16x32xf32>
    %cst_88 = arith.constant 2.000000e-01 : f32
    %114 = vector.broadcast %cst_88 : f32 to vector<16x32xf32>
    %115 = arith.mulf %114, %111 : vector<16x32xf32>
    %116 = arith.select %113, %111, %115 : vector<16x32xi1>, vector<16x32xf32>
    %c0_89 = arith.constant 0 : index
    %c0_90 = arith.constant 0 : index
    %117 = vector.load %arg12[%c0_89, %c0_90] : memref<136x32xf32, #tpu.memory_space<vmem>>, vector<1x32xf32>
    tpu.vector_store %arg12[%c0_89, %c0_90], %53 {strides = array<i32>} : memref<136x32xf32, #tpu.memory_space<vmem>>, vector<1x32xf32>,
    %c17 = arith.constant 17 : index
    %c0_91 = arith.constant 0 : index
    %118 = vector.load %arg12[%c17, %c0_91] : memref<136x32xf32, #tpu.memory_space<vmem>>, vector<1x32xf32>
    tpu.vector_store %arg12[%c17, %c0_91], %53 {strides = array<i32>} : memref<136x32xf32, #tpu.memory_space<vmem>>, vector<1x32xf32>,
    %c1_92 = arith.constant 1 : index
    %c0_93 = arith.constant 0 : index
    %119 = vector.load %arg12[%c1_92, %c0_93] : memref<136x32xf32, #tpu.memory_space<vmem>>, vector<16x32xf32>
    tpu.vector_store %arg12[%c1_92, %c0_93], %116 {strides = array<i32>} : memref<136x32xf32, #tpu.memory_space<vmem>>, vector<16x32xf32>,
    %c0_94 = arith.constant 0 : index
    %c0_95 = arith.constant 0 : index
    %120 = tpu.strided_load %arg12[%c0_94, %c0_95] {strides = array<i32: 2, 1>} : memref<136x32xf32, #tpu.memory_space<vmem>>, vector<8x32xf32>
    %c1_96 = arith.constant 1 : index
    %c0_97 = arith.constant 0 : index
    %121 = tpu.strided_load %arg12[%c1_96, %c0_97] {strides = array<i32: 2, 1>} : memref<136x32xf32, #tpu.memory_space<vmem>>, vector<8x32xf32>
    %c2_98 = arith.constant 2 : index
    %c0_99 = arith.constant 0 : index
    %122 = tpu.strided_load %arg12[%c2_98, %c0_99] {strides = array<i32: 2, 1>} : memref<136x32xf32, #tpu.memory_space<vmem>>, vector<8x32xf32>
    %c3_100 = arith.constant 3 : index
    %c0_101 = arith.constant 0 : index
    %123 = tpu.strided_load %arg12[%c3_100, %c0_101] {strides = array<i32: 2, 1>} : memref<136x32xf32, #tpu.memory_space<vmem>>, vector<8x32xf32>
    %124 = tpu.concatenate %120, %121, %122, %123 in 1 : vector<8x32xf32>, vector<8x32xf32>, vector<8x32xf32>, vector<8x32xf32> -> vector<8x128xf32>
    %125 = arith.truncf %124 : vector<8x128xf32> to vector<8x128xbf16>
    %c3_102 = arith.constant 3 : index
    %c0_103 = arith.constant 0 : index
    %c0_104 = arith.constant 0 : index
    %126 = vector.load %arg4[%c3_102, %c0_103, %c0_104] : memref<4x128x32xbf16, #tpu.memory_space<vmem>>, vector<1x128x32xbf16>
    %127 = vector.shape_cast %126 : vector<1x128x32xbf16> to vector<128x32xbf16>
    %cst_105 = arith.constant dense<0.000000e+00> : vector<8x32xf32>
    %128 = tpu.matmul %125, %127, %cst_105 {dimension_numbers = #tpu.dot_dimension_numbers<[1], [0], [0], [1], [0, 0, 1, 1], [], []>} : vector<8x128xbf16>, vector<128x32xbf16>, vector<8x32xf32> -> vector<8x32xf32>
    %c3_106 = arith.constant 3 : index
    %c0_107 = arith.constant 0 : index
    %c0_108 = arith.constant 0 : index
    %129 = vector.load %arg5[%c3_106, %c0_107, %c0_108] : memref<4x1x32xf32, #tpu.memory_space<vmem>>, vector<1x1x32xf32>
    %130 = vector.shape_cast %129 : vector<1x1x32xf32> to vector<1x32xf32>
    %131 = vector.broadcast %130 : vector<1x32xf32> to vector<8x32xf32>
    %132 = arith.addf %128, %131 : vector<8x32xf32>
    %cst_109 = arith.constant 0.000000e+00 : f32
    %133 = vector.broadcast %cst_109 : f32 to vector<8x32xf32>
    %134 = arith.cmpf ogt, %132, %133 : vector<8x32xf32>
    %cst_110 = arith.constant 2.000000e-01 : f32
    %135 = vector.broadcast %cst_110 : f32 to vector<8x32xf32>
    %136 = arith.mulf %135, %132 : vector<8x32xf32>
    %137 = arith.select %134, %132, %136 : vector<8x32xi1>, vector<8x32xf32>
    %c0_111 = arith.constant 0 : index
    %c0_112 = arith.constant 0 : index
    %138 = vector.load %arg13[%c0_111, %c0_112] : memref<16x32xf32, #tpu.memory_space<vmem>>, vector<8x32xf32>
    tpu.vector_store %arg13[%c0_111, %c0_112], %137 {strides = array<i32>} : memref<16x32xf32, #tpu.memory_space<vmem>>, vector<8x32xf32>,
    %cst_113 = arith.constant 0.000000e+00 : f32
    %139 = vector.broadcast %cst_113 : f32 to vector<3x32xf32>
    %c0_114 = arith.constant 0 : index
    %c0_115 = arith.constant 0 : index
    %140 = vector.load %arg12[%c0_114, %c0_115] : memref<136x32xf32, #tpu.memory_space<vmem>>, vector<3x32xf32>
    tpu.vector_store %arg12[%c0_114, %c0_115], %139 {strides = array<i32>} : memref<136x32xf32, #tpu.memory_space<vmem>>, vector<3x32xf32>,
    %c131_116 = arith.constant 131 : index
    %c0_117 = arith.constant 0 : index
    %141 = vector.load %arg12[%c131_116, %c0_117] : memref<136x32xf32, #tpu.memory_space<vmem>>, vector<3x32xf32>
    tpu.vector_store %arg12[%c131_116, %c0_117], %139 {strides = array<i32>} : memref<136x32xf32, #tpu.memory_space<vmem>>, vector<3x32xf32>,
    %c1_118 = arith.constant 1 : index
    %c0_119 = arith.constant 0 : index
    %c0_120 = arith.constant 0 : index
    %142 = vector.load %arg1[%c1_118, %c0_119, %c0_120] : memref<2x128x1xf32, #tpu.memory_space<vmem>>, vector<1x128x1xf32>
    %143 = vector.shape_cast %142 : vector<1x128x1xf32> to vector<128x1xf32>
    %144 = vector.shape_cast %143 : vector<128x1xf32> to vector<128x1xf32>
    %145 = vector.broadcast %144 : vector<128x1xf32> to vector<128x32xf32>
    %c3_121 = arith.constant 3 : index
    %c0_122 = arith.constant 0 : index
    %146 = vector.load %arg12[%c3_121, %c0_122] : memref<136x32xf32, #tpu.memory_space<vmem>>, vector<128x32xf32>
    tpu.vector_store %arg12[%c3_121, %c0_122], %145 {strides = array<i32>} : memref<136x32xf32, #tpu.memory_space<vmem>>, vector<128x32xf32>,
    %cst_123 = arith.constant 0.000000e+00 : f32
    %147 = vector.broadcast %cst_123 : f32 to vector<128x32xf32>
    %c0_124 = arith.constant 0 : index
    %c0_125 = arith.constant 0 : index
    %148 = vector.load %arg12[%c0_124, %c0_125] : memref<136x32xf32, #tpu.memory_space<vmem>>, vector<128x32xf32>
    %149 = vector.extract_strided_slice %0 {offsets = [0, 0], sizes = [1, 32], strides = [1, 1]} : vector<7x32xf32> to vector<1x32xf32>
    %150 = vector.broadcast %149 : vector<1x32xf32> to vector<128x32xf32>
    %151 = arith.mulf %148, %150 : vector<128x32xf32>
    %152 = arith.addf %147, %151 : vector<128x32xf32>
    %c1_126 = arith.constant 1 : index
    %c0_127 = arith.constant 0 : index
    %153 = vector.load %arg12[%c1_126, %c0_127] : memref<136x32xf32, #tpu.memory_space<vmem>>, vector<128x32xf32>
    %154 = vector.extract_strided_slice %0 {offsets = [1, 0], sizes = [1, 32], strides = [1, 1]} : vector<7x32xf32> to vector<1x32xf32>
    %155 = vector.broadcast %154 : vector<1x32xf32> to vector<128x32xf32>
    %156 = arith.mulf %153, %155 : vector<128x32xf32>
    %157 = arith.addf %152, %156 : vector<128x32xf32>
    %c2_128 = arith.constant 2 : index
    %c0_129 = arith.constant 0 : index
    %158 = vector.load %arg12[%c2_128, %c0_129] : memref<136x32xf32, #tpu.memory_space<vmem>>, vector<128x32xf32>
    %159 = vector.extract_strided_slice %0 {offsets = [2, 0], sizes = [1, 32], strides = [1, 1]} : vector<7x32xf32> to vector<1x32xf32>
    %160 = vector.broadcast %159 : vector<1x32xf32> to vector<128x32xf32>
    %161 = arith.mulf %158, %160 : vector<128x32xf32>
    %162 = arith.addf %157, %161 : vector<128x32xf32>
    %c3_130 = arith.constant 3 : index
    %c0_131 = arith.constant 0 : index
    %163 = vector.load %arg12[%c3_130, %c0_131] : memref<136x32xf32, #tpu.memory_space<vmem>>, vector<128x32xf32>
    %164 = vector.extract_strided_slice %0 {offsets = [3, 0], sizes = [1, 32], strides = [1, 1]} : vector<7x32xf32> to vector<1x32xf32>
    %165 = vector.broadcast %164 : vector<1x32xf32> to vector<128x32xf32>
    %166 = arith.mulf %163, %165 : vector<128x32xf32>
    %167 = arith.addf %162, %166 : vector<128x32xf32>
    %c4_132 = arith.constant 4 : index
    %c0_133 = arith.constant 0 : index
    %168 = vector.load %arg12[%c4_132, %c0_133] : memref<136x32xf32, #tpu.memory_space<vmem>>, vector<128x32xf32>
    %169 = vector.extract_strided_slice %0 {offsets = [4, 0], sizes = [1, 32], strides = [1, 1]} : vector<7x32xf32> to vector<1x32xf32>
    %170 = vector.broadcast %169 : vector<1x32xf32> to vector<128x32xf32>
    %171 = arith.mulf %168, %170 : vector<128x32xf32>
    %172 = arith.addf %167, %171 : vector<128x32xf32>
    %c5_134 = arith.constant 5 : index
    %c0_135 = arith.constant 0 : index
    %173 = vector.load %arg12[%c5_134, %c0_135] : memref<136x32xf32, #tpu.memory_space<vmem>>, vector<128x32xf32>
    %174 = vector.extract_strided_slice %0 {offsets = [5, 0], sizes = [1, 32], strides = [1, 1]} : vector<7x32xf32> to vector<1x32xf32>
    %175 = vector.broadcast %174 : vector<1x32xf32> to vector<128x32xf32>
    %176 = arith.mulf %173, %175 : vector<128x32xf32>
    %177 = arith.addf %172, %176 : vector<128x32xf32>
    %c6_136 = arith.constant 6 : index
    %c0_137 = arith.constant 0 : index
    %178 = vector.load %arg12[%c6_136, %c0_137] : memref<136x32xf32, #tpu.memory_space<vmem>>, vector<128x32xf32>
    %179 = vector.extract_strided_slice %0 {offsets = [6, 0], sizes = [1, 32], strides = [1, 1]} : vector<7x32xf32> to vector<1x32xf32>
    %180 = vector.broadcast %179 : vector<1x32xf32> to vector<128x32xf32>
    %181 = arith.mulf %178, %180 : vector<128x32xf32>
    %182 = arith.addf %177, %181 : vector<128x32xf32>
    %183 = vector.broadcast %1 : vector<1x32xf32> to vector<128x32xf32>
    %184 = arith.addf %182, %183 : vector<128x32xf32>
    %cst_138 = arith.constant 0.000000e+00 : f32
    %185 = vector.broadcast %cst_138 : f32 to vector<128x32xf32>
    %186 = arith.cmpf ogt, %184, %185 : vector<128x32xf32>
    %cst_139 = arith.constant 2.000000e-01 : f32
    %187 = vector.broadcast %cst_139 : f32 to vector<128x32xf32>
    %188 = arith.mulf %187, %184 : vector<128x32xf32>
    %189 = arith.select %186, %184, %188 : vector<128x32xi1>, vector<128x32xf32>
    %cst_140 = arith.constant 0.000000e+00 : f32
    %190 = vector.broadcast %cst_140 : f32 to vector<1x32xf32>
    %c0_141 = arith.constant 0 : index
    %c0_142 = arith.constant 0 : index
    %191 = vector.load %arg12[%c0_141, %c0_142] : memref<136x32xf32, #tpu.memory_space<vmem>>, vector<1x32xf32>
    tpu.vector_store %arg12[%c0_141, %c0_142], %190 {strides = array<i32>} : memref<136x32xf32, #tpu.memory_space<vmem>>, vector<1x32xf32>,
    %c129_143 = arith.constant 129 : index
    %c0_144 = arith.constant 0 : index
    %192 = vector.load %arg12[%c129_143, %c0_144] : memref<136x32xf32, #tpu.memory_space<vmem>>, vector<1x32xf32>
    tpu.vector_store %arg12[%c129_143, %c0_144], %190 {strides = array<i32>} : memref<136x32xf32, #tpu.memory_space<vmem>>, vector<1x32xf32>,
    %c1_145 = arith.constant 1 : index
    %c0_146 = arith.constant 0 : index
    %193 = vector.load %arg12[%c1_145, %c0_146] : memref<136x32xf32, #tpu.memory_space<vmem>>, vector<128x32xf32>
    tpu.vector_store %arg12[%c1_145, %c0_146], %189 {strides = array<i32>} : memref<136x32xf32, #tpu.memory_space<vmem>>, vector<128x32xf32>,
    %c0_147 = arith.constant 0 : index
    %c0_148 = arith.constant 0 : index
    %194 = tpu.strided_load %arg12[%c0_147, %c0_148] {strides = array<i32: 2, 1>} : memref<136x32xf32, #tpu.memory_space<vmem>>, vector<64x32xf32>
    %c1_149 = arith.constant 1 : index
    %c0_150 = arith.constant 0 : index
    %195 = tpu.strided_load %arg12[%c1_149, %c0_150] {strides = array<i32: 2, 1>} : memref<136x32xf32, #tpu.memory_space<vmem>>, vector<64x32xf32>
    %c2_151 = arith.constant 2 : index
    %c0_152 = arith.constant 0 : index
    %196 = tpu.strided_load %arg12[%c2_151, %c0_152] {strides = array<i32: 2, 1>} : memref<136x32xf32, #tpu.memory_space<vmem>>, vector<64x32xf32>
    %c3_153 = arith.constant 3 : index
    %c0_154 = arith.constant 0 : index
    %197 = tpu.strided_load %arg12[%c3_153, %c0_154] {strides = array<i32: 2, 1>} : memref<136x32xf32, #tpu.memory_space<vmem>>, vector<64x32xf32>
    %198 = tpu.concatenate %194, %195, %196, %197 in 1 : vector<64x32xf32>, vector<64x32xf32>, vector<64x32xf32>, vector<64x32xf32> -> vector<64x128xf32>
    %199 = arith.truncf %198 : vector<64x128xf32> to vector<64x128xbf16>
    %c0_155 = arith.constant 0 : index
    %c0_156 = arith.constant 0 : index
    %c0_157 = arith.constant 0 : index
    %200 = vector.load %arg4[%c0_155, %c0_156, %c0_157] : memref<4x128x32xbf16, #tpu.memory_space<vmem>>, vector<1x128x32xbf16>
    %201 = vector.shape_cast %200 : vector<1x128x32xbf16> to vector<128x32xbf16>
    %cst_158 = arith.constant dense<0.000000e+00> : vector<64x32xf32>
    %202 = tpu.matmul %199, %201, %cst_158 {dimension_numbers = #tpu.dot_dimension_numbers<[1], [0], [0], [1], [0, 0, 1, 1], [], []>} : vector<64x128xbf16>, vector<128x32xbf16>, vector<64x32xf32> -> vector<64x32xf32>
    %c0_159 = arith.constant 0 : index
    %c0_160 = arith.constant 0 : index
    %c0_161 = arith.constant 0 : index
    %203 = vector.load %arg5[%c0_159, %c0_160, %c0_161] : memref<4x1x32xf32, #tpu.memory_space<vmem>>, vector<1x1x32xf32>
    %204 = vector.shape_cast %203 : vector<1x1x32xf32> to vector<1x32xf32>
    %205 = vector.broadcast %204 : vector<1x32xf32> to vector<64x32xf32>
    %206 = arith.addf %202, %205 : vector<64x32xf32>
    %cst_162 = arith.constant 0.000000e+00 : f32
    %207 = vector.broadcast %cst_162 : f32 to vector<64x32xf32>
    %208 = arith.cmpf ogt, %206, %207 : vector<64x32xf32>
    %cst_163 = arith.constant 2.000000e-01 : f32
    %209 = vector.broadcast %cst_163 : f32 to vector<64x32xf32>
    %210 = arith.mulf %209, %206 : vector<64x32xf32>
    %211 = arith.select %208, %206, %210 : vector<64x32xi1>, vector<64x32xf32>
    %c0_164 = arith.constant 0 : index
    %c0_165 = arith.constant 0 : index
    %212 = vector.load %arg12[%c0_164, %c0_165] : memref<136x32xf32, #tpu.memory_space<vmem>>, vector<1x32xf32>
    tpu.vector_store %arg12[%c0_164, %c0_165], %190 {strides = array<i32>} : memref<136x32xf32, #tpu.memory_space<vmem>>, vector<1x32xf32>,
    %c65_166 = arith.constant 65 : index
    %c0_167 = arith.constant 0 : index
    %213 = vector.load %arg12[%c65_166, %c0_167] : memref<136x32xf32, #tpu.memory_space<vmem>>, vector<1x32xf32>
    tpu.vector_store %arg12[%c65_166, %c0_167], %190 {strides = array<i32>} : memref<136x32xf32, #tpu.memory_space<vmem>>, vector<1x32xf32>,
    %c1_168 = arith.constant 1 : index
    %c0_169 = arith.constant 0 : index
    %214 = vector.load %arg12[%c1_168, %c0_169] : memref<136x32xf32, #tpu.memory_space<vmem>>, vector<64x32xf32>
    tpu.vector_store %arg12[%c1_168, %c0_169], %211 {strides = array<i32>} : memref<136x32xf32, #tpu.memory_space<vmem>>, vector<64x32xf32>,
    %c0_170 = arith.constant 0 : index
    %c0_171 = arith.constant 0 : index
    %215 = tpu.strided_load %arg12[%c0_170, %c0_171] {strides = array<i32: 2, 1>} : memref<136x32xf32, #tpu.memory_space<vmem>>, vector<32x32xf32>
    %c1_172 = arith.constant 1 : index
    %c0_173 = arith.constant 0 : index
    %216 = tpu.strided_load %arg12[%c1_172, %c0_173] {strides = array<i32: 2, 1>} : memref<136x32xf32, #tpu.memory_space<vmem>>, vector<32x32xf32>
    %c2_174 = arith.constant 2 : index
    %c0_175 = arith.constant 0 : index
    %217 = tpu.strided_load %arg12[%c2_174, %c0_175] {strides = array<i32: 2, 1>} : memref<136x32xf32, #tpu.memory_space<vmem>>, vector<32x32xf32>
    %c3_176 = arith.constant 3 : index
    %c0_177 = arith.constant 0 : index
    %218 = tpu.strided_load %arg12[%c3_176, %c0_177] {strides = array<i32: 2, 1>} : memref<136x32xf32, #tpu.memory_space<vmem>>, vector<32x32xf32>
    %219 = tpu.concatenate %215, %216, %217, %218 in 1 : vector<32x32xf32>, vector<32x32xf32>, vector<32x32xf32>, vector<32x32xf32> -> vector<32x128xf32>
    %220 = arith.truncf %219 : vector<32x128xf32> to vector<32x128xbf16>
    %c1_178 = arith.constant 1 : index
    %c0_179 = arith.constant 0 : index
    %c0_180 = arith.constant 0 : index
    %221 = vector.load %arg4[%c1_178, %c0_179, %c0_180] : memref<4x128x32xbf16, #tpu.memory_space<vmem>>, vector<1x128x32xbf16>
    %222 = vector.shape_cast %221 : vector<1x128x32xbf16> to vector<128x32xbf16>
    %cst_181 = arith.constant dense<0.000000e+00> : vector<32x32xf32>
    %223 = tpu.matmul %220, %222, %cst_181 {dimension_numbers = #tpu.dot_dimension_numbers<[1], [0], [0], [1], [0, 0, 1, 1], [], []>} : vector<32x128xbf16>, vector<128x32xbf16>, vector<32x32xf32> -> vector<32x32xf32>
    %c1_182 = arith.constant 1 : index
    %c0_183 = arith.constant 0 : index
    %c0_184 = arith.constant 0 : index
    %224 = vector.load %arg5[%c1_182, %c0_183, %c0_184] : memref<4x1x32xf32, #tpu.memory_space<vmem>>, vector<1x1x32xf32>
    %225 = vector.shape_cast %224 : vector<1x1x32xf32> to vector<1x32xf32>
    %226 = vector.broadcast %225 : vector<1x32xf32> to vector<32x32xf32>
    %227 = arith.addf %223, %226 : vector<32x32xf32>
    %cst_185 = arith.constant 0.000000e+00 : f32
    %228 = vector.broadcast %cst_185 : f32 to vector<32x32xf32>
    %229 = arith.cmpf ogt, %227, %228 : vector<32x32xf32>
    %cst_186 = arith.constant 2.000000e-01 : f32
    %230 = vector.broadcast %cst_186 : f32 to vector<32x32xf32>
    %231 = arith.mulf %230, %227 : vector<32x32xf32>
    %232 = arith.select %229, %227, %231 : vector<32x32xi1>, vector<32x32xf32>
    %c0_187 = arith.constant 0 : index
    %c0_188 = arith.constant 0 : index
    %233 = vector.load %arg12[%c0_187, %c0_188] : memref<136x32xf32, #tpu.memory_space<vmem>>, vector<1x32xf32>
    tpu.vector_store %arg12[%c0_187, %c0_188], %190 {strides = array<i32>} : memref<136x32xf32, #tpu.memory_space<vmem>>, vector<1x32xf32>,
    %c33_189 = arith.constant 33 : index
    %c0_190 = arith.constant 0 : index
    %234 = vector.load %arg12[%c33_189, %c0_190] : memref<136x32xf32, #tpu.memory_space<vmem>>, vector<1x32xf32>
    tpu.vector_store %arg12[%c33_189, %c0_190], %190 {strides = array<i32>} : memref<136x32xf32, #tpu.memory_space<vmem>>, vector<1x32xf32>,
    %c1_191 = arith.constant 1 : index
    %c0_192 = arith.constant 0 : index
    %235 = vector.load %arg12[%c1_191, %c0_192] : memref<136x32xf32, #tpu.memory_space<vmem>>, vector<32x32xf32>
    tpu.vector_store %arg12[%c1_191, %c0_192], %232 {strides = array<i32>} : memref<136x32xf32, #tpu.memory_space<vmem>>, vector<32x32xf32>,
    %c0_193 = arith.constant 0 : index
    %c0_194 = arith.constant 0 : index
    %236 = tpu.strided_load %arg12[%c0_193, %c0_194] {strides = array<i32: 2, 1>} : memref<136x32xf32, #tpu.memory_space<vmem>>, vector<16x32xf32>
    %c1_195 = arith.constant 1 : index
    %c0_196 = arith.constant 0 : index
    %237 = tpu.strided_load %arg12[%c1_195, %c0_196] {strides = array<i32: 2, 1>} : memref<136x32xf32, #tpu.memory_space<vmem>>, vector<16x32xf32>
    %c2_197 = arith.constant 2 : index
    %c0_198 = arith.constant 0 : index
    %238 = tpu.strided_load %arg12[%c2_197, %c0_198] {strides = array<i32: 2, 1>} : memref<136x32xf32, #tpu.memory_space<vmem>>, vector<16x32xf32>
    %c3_199 = arith.constant 3 : index
    %c0_200 = arith.constant 0 : index
    %239 = tpu.strided_load %arg12[%c3_199, %c0_200] {strides = array<i32: 2, 1>} : memref<136x32xf32, #tpu.memory_space<vmem>>, vector<16x32xf32>
    %240 = tpu.concatenate %236, %237, %238, %239 in 1 : vector<16x32xf32>, vector<16x32xf32>, vector<16x32xf32>, vector<16x32xf32> -> vector<16x128xf32>
    %241 = arith.truncf %240 : vector<16x128xf32> to vector<16x128xbf16>
    %c2_201 = arith.constant 2 : index
    %c0_202 = arith.constant 0 : index
    %c0_203 = arith.constant 0 : index
    %242 = vector.load %arg4[%c2_201, %c0_202, %c0_203] : memref<4x128x32xbf16, #tpu.memory_space<vmem>>, vector<1x128x32xbf16>
    %243 = vector.shape_cast %242 : vector<1x128x32xbf16> to vector<128x32xbf16>
    %cst_204 = arith.constant dense<0.000000e+00> : vector<16x32xf32>
    %244 = tpu.matmul %241, %243, %cst_204 {dimension_numbers = #tpu.dot_dimension_numbers<[1], [0], [0], [1], [0, 0, 1, 1], [], []>} : vector<16x128xbf16>, vector<128x32xbf16>, vector<16x32xf32> -> vector<16x32xf32>
    %c2_205 = arith.constant 2 : index
    %c0_206 = arith.constant 0 : index
    %c0_207 = arith.constant 0 : index
    %245 = vector.load %arg5[%c2_205, %c0_206, %c0_207] : memref<4x1x32xf32, #tpu.memory_space<vmem>>, vector<1x1x32xf32>
    %246 = vector.shape_cast %245 : vector<1x1x32xf32> to vector<1x32xf32>
    %247 = vector.broadcast %246 : vector<1x32xf32> to vector<16x32xf32>
    %248 = arith.addf %244, %247 : vector<16x32xf32>
    %cst_208 = arith.constant 0.000000e+00 : f32
    %249 = vector.broadcast %cst_208 : f32 to vector<16x32xf32>
    %250 = arith.cmpf ogt, %248, %249 : vector<16x32xf32>
    %cst_209 = arith.constant 2.000000e-01 : f32
    %251 = vector.broadcast %cst_209 : f32 to vector<16x32xf32>
    %252 = arith.mulf %251, %248 : vector<16x32xf32>
    %253 = arith.select %250, %248, %252 : vector<16x32xi1>, vector<16x32xf32>
    %c0_210 = arith.constant 0 : index
    %c0_211 = arith.constant 0 : index
    %254 = vector.load %arg12[%c0_210, %c0_211] : memref<136x32xf32, #tpu.memory_space<vmem>>, vector<1x32xf32>
    tpu.vector_store %arg12[%c0_210, %c0_211], %190 {strides = array<i32>} : memref<136x32xf32, #tpu.memory_space<vmem>>, vector<1x32xf32>,
    %c17_212 = arith.constant 17 : index
    %c0_213 = arith.constant 0 : index
    %255 = vector.load %arg12[%c17_212, %c0_213] : memref<136x32xf32, #tpu.memory_space<vmem>>, vector<1x32xf32>
    tpu.vector_store %arg12[%c17_212, %c0_213], %190 {strides = array<i32>} : memref<136x32xf32, #tpu.memory_space<vmem>>, vector<1x32xf32>,
    %c1_214 = arith.constant 1 : index
    %c0_215 = arith.constant 0 : index
    %256 = vector.load %arg12[%c1_214, %c0_215] : memref<136x32xf32, #tpu.memory_space<vmem>>, vector<16x32xf32>
    tpu.vector_store %arg12[%c1_214, %c0_215], %253 {strides = array<i32>} : memref<136x32xf32, #tpu.memory_space<vmem>>, vector<16x32xf32>,
    %c0_216 = arith.constant 0 : index
    %c0_217 = arith.constant 0 : index
    %257 = tpu.strided_load %arg12[%c0_216, %c0_217] {strides = array<i32: 2, 1>} : memref<136x32xf32, #tpu.memory_space<vmem>>, vector<8x32xf32>
    %c1_218 = arith.constant 1 : index
    %c0_219 = arith.constant 0 : index
    %258 = tpu.strided_load %arg12[%c1_218, %c0_219] {strides = array<i32: 2, 1>} : memref<136x32xf32, #tpu.memory_space<vmem>>, vector<8x32xf32>
    %c2_220 = arith.constant 2 : index
    %c0_221 = arith.constant 0 : index
    %259 = tpu.strided_load %arg12[%c2_220, %c0_221] {strides = array<i32: 2, 1>} : memref<136x32xf32, #tpu.memory_space<vmem>>, vector<8x32xf32>
    %c3_222 = arith.constant 3 : index
    %c0_223 = arith.constant 0 : index
    %260 = tpu.strided_load %arg12[%c3_222, %c0_223] {strides = array<i32: 2, 1>} : memref<136x32xf32, #tpu.memory_space<vmem>>, vector<8x32xf32>
    %261 = tpu.concatenate %257, %258, %259, %260 in 1 : vector<8x32xf32>, vector<8x32xf32>, vector<8x32xf32>, vector<8x32xf32> -> vector<8x128xf32>
    %262 = arith.truncf %261 : vector<8x128xf32> to vector<8x128xbf16>
    %c3_224 = arith.constant 3 : index
    %c0_225 = arith.constant 0 : index
    %c0_226 = arith.constant 0 : index
    %263 = vector.load %arg4[%c3_224, %c0_225, %c0_226] : memref<4x128x32xbf16, #tpu.memory_space<vmem>>, vector<1x128x32xbf16>
    %264 = vector.shape_cast %263 : vector<1x128x32xbf16> to vector<128x32xbf16>
    %cst_227 = arith.constant dense<0.000000e+00> : vector<8x32xf32>
    %265 = tpu.matmul %262, %264, %cst_227 {dimension_numbers = #tpu.dot_dimension_numbers<[1], [0], [0], [1], [0, 0, 1, 1], [], []>} : vector<8x128xbf16>, vector<128x32xbf16>, vector<8x32xf32> -> vector<8x32xf32>
    %c3_228 = arith.constant 3 : index
    %c0_229 = arith.constant 0 : index
    %c0_230 = arith.constant 0 : index
    %266 = vector.load %arg5[%c3_228, %c0_229, %c0_230] : memref<4x1x32xf32, #tpu.memory_space<vmem>>, vector<1x1x32xf32>
    %267 = vector.shape_cast %266 : vector<1x1x32xf32> to vector<1x32xf32>
    %268 = vector.broadcast %267 : vector<1x32xf32> to vector<8x32xf32>
    %269 = arith.addf %265, %268 : vector<8x32xf32>
    %cst_231 = arith.constant 0.000000e+00 : f32
    %270 = vector.broadcast %cst_231 : f32 to vector<8x32xf32>
    %271 = arith.cmpf ogt, %269, %270 : vector<8x32xf32>
    %cst_232 = arith.constant 2.000000e-01 : f32
    %272 = vector.broadcast %cst_232 : f32 to vector<8x32xf32>
    %273 = arith.mulf %272, %269 : vector<8x32xf32>
    %274 = arith.select %271, %269, %273 : vector<8x32xi1>, vector<8x32xf32>
    %c8 = arith.constant 8 : index
    %c0_233 = arith.constant 0 : index
    %275 = vector.load %arg13[%c8, %c0_233] : memref<16x32xf32, #tpu.memory_space<vmem>>, vector<8x32xf32>
    tpu.vector_store %arg13[%c8, %c0_233], %274 {strides = array<i32>} : memref<16x32xf32, #tpu.memory_space<vmem>>, vector<8x32xf32>,
    %c0_234 = arith.constant 0 : index
    %c0_235 = arith.constant 0 : index
    %276 = tpu.strided_load %arg13[%c0_234, %c0_235] {strides = array<i32: 4, 1>} : memref<16x32xf32, #tpu.memory_space<vmem>>, vector<4x32xf32>
    %c1_236 = arith.constant 1 : index
    %c0_237 = arith.constant 0 : index
    %277 = tpu.strided_load %arg13[%c1_236, %c0_237] {strides = array<i32: 4, 1>} : memref<16x32xf32, #tpu.memory_space<vmem>>, vector<4x32xf32>
    %c2_238 = arith.constant 2 : index
    %c0_239 = arith.constant 0 : index
    %278 = tpu.strided_load %arg13[%c2_238, %c0_239] {strides = array<i32: 4, 1>} : memref<16x32xf32, #tpu.memory_space<vmem>>, vector<4x32xf32>
    %c3_240 = arith.constant 3 : index
    %c0_241 = arith.constant 0 : index
    %279 = tpu.strided_load %arg13[%c3_240, %c0_241] {strides = array<i32: 4, 1>} : memref<16x32xf32, #tpu.memory_space<vmem>>, vector<4x32xf32>
    %280 = tpu.concatenate %276, %277, %278, %279 in 1 : vector<4x32xf32>, vector<4x32xf32>, vector<4x32xf32>, vector<4x32xf32> -> vector<4x128xf32>
    %281 = arith.truncf %280 : vector<4x128xf32> to vector<4x128xbf16>
    %c0_242 = arith.constant 0 : index
    %c0_243 = arith.constant 0 : index
    %282 = vector.load %arg6[%c0_242, %c0_243] : memref<128x1024xbf16, #tpu.memory_space<vmem>>, vector<128x1024xbf16>
    %cst_244 = arith.constant dense<0.000000e+00> : vector<4x1024xf32>
    %283 = tpu.matmul %281, %282, %cst_244 {dimension_numbers = #tpu.dot_dimension_numbers<[1], [0], [0], [1], [0, 0, 1, 1], [], []>} : vector<4x128xbf16>, vector<128x1024xbf16>, vector<4x1024xf32> -> vector<4x1024xf32>
    %c0_245 = arith.constant 0 : index
    %c0_246 = arith.constant 0 : index
    %284 = vector.load %arg7[%c0_245, %c0_246] : memref<1x1024xf32, #tpu.memory_space<vmem>>, vector<1x1024xf32>
    %285 = vector.broadcast %284 : vector<1x1024xf32> to vector<4x1024xf32>
    %286 = arith.addf %283, %285 : vector<4x1024xf32>
    %cst_247 = arith.constant 0.000000e+00 : f32
    %287 = vector.broadcast %cst_247 : f32 to vector<4x1024xf32>
    %288 = arith.cmpf ogt, %286, %287 : vector<4x1024xf32>
    %cst_248 = arith.constant 2.000000e-01 : f32
    %289 = vector.broadcast %cst_248 : f32 to vector<4x1024xf32>
    %290 = arith.mulf %289, %286 : vector<4x1024xf32>
    %291 = arith.select %288, %286, %290 : vector<4x1024xi1>, vector<4x1024xf32>
    %292 = arith.truncf %291 : vector<4x1024xf32> to vector<4x1024xbf16>
    %c0_249 = arith.constant 0 : index
    %c0_250 = arith.constant 0 : index
    %293 = vector.load %arg8[%c0_249, %c0_250] : memref<1024x64xbf16, #tpu.memory_space<vmem>>, vector<1024x64xbf16>
    %cst_251 = arith.constant dense<0.000000e+00> : vector<4x64xf32>
    %294 = tpu.matmul %292, %293, %cst_251 {dimension_numbers = #tpu.dot_dimension_numbers<[1], [0], [0], [1], [0, 0, 1, 1], [], []>} : vector<4x1024xbf16>, vector<1024x64xbf16>, vector<4x64xf32> -> vector<4x64xf32>
    %c0_252 = arith.constant 0 : index
    %c0_253 = arith.constant 0 : index
    %295 = vector.load %arg9[%c0_252, %c0_253] : memref<1x64xf32, #tpu.memory_space<vmem>>, vector<1x64xf32>
    %296 = vector.broadcast %295 : vector<1x64xf32> to vector<4x64xf32>
    %297 = arith.addf %294, %296 : vector<4x64xf32>
    %cst_254 = arith.constant 5.000000e-01 : f32
    %298 = vector.broadcast %cst_254 : f32 to vector<4x64xf32>
    %299 = arith.mulf %297, %298 : vector<4x64xf32>
    %cst_255 = arith.constant dense<0xFF800000> : vector<4xf32>
    %300 = vector.multi_reduction <maximumf>, %299, %cst_255 [1] : vector<4x64xf32> to vector<4xf32>
    %301 = vector.shape_cast %300 : vector<4xf32> to vector<4x1xf32>
    %cst_256 = arith.constant 1.000000e+00 : f32
    %302 = vector.broadcast %cst_256 : f32 to vector<4x1xf32>
    %303 = arith.subf %301, %302 : vector<4x1xf32>
    %cst_257 = arith.constant 4.375000e-01 : f32
    %304 = vector.broadcast %cst_257 : f32 to vector<4x1xf32>
    %305 = arith.addf %303, %304 : vector<4x1xf32>
    %306 = vector.broadcast %305 : vector<4x1xf32> to vector<4x64xf32>
    %307 = arith.subf %299, %306 : vector<4x64xf32>
    %cst_258 = arith.constant 0.000000e+00 : f32
    %308 = vector.broadcast %cst_258 : f32 to vector<4x64xf32>
    %309 = arith.maximumf %307, %308 : vector<4x64xf32>
    %310 = arith.mulf %309, %309 : vector<4x64xf32>
    %cst_259 = arith.constant dense<0.000000e+00> : vector<4xf32>
    %311 = vector.multi_reduction <add>, %310, %cst_259 [1] : vector<4x64xf32> to vector<4xf32>
    %312 = vector.shape_cast %311 : vector<4xf32> to vector<4x1xf32>
    %cst_260 = arith.constant 1.000000e+00 : f32
    %313 = vector.broadcast %cst_260 : f32 to vector<4x1xf32>
    %314 = arith.subf %312, %313 : vector<4x1xf32>
    %cst_261 = arith.constant 0.000000e+00 : f32
    %315 = vector.broadcast %cst_261 : f32 to vector<4x1xf32>
    %316 = arith.cmpf oge, %314, %315 : vector<4x1xf32>
    %317 = arith.select %316, %305, %303 : vector<4x1xi1>, vector<4x1xf32>
    %cst_262 = arith.constant 2.187500e-01 : f32
    %318 = vector.broadcast %cst_262 : f32 to vector<4x1xf32>
    %319 = arith.addf %317, %318 : vector<4x1xf32>
    %320 = vector.broadcast %319 : vector<4x1xf32> to vector<4x64xf32>
    %321 = arith.subf %299, %320 : vector<4x64xf32>
    %cst_263 = arith.constant 0.000000e+00 : f32
    %322 = vector.broadcast %cst_263 : f32 to vector<4x64xf32>
    %323 = arith.maximumf %321, %322 : vector<4x64xf32>
    %324 = arith.mulf %323, %323 : vector<4x64xf32>
    %cst_264 = arith.constant dense<0.000000e+00> : vector<4xf32>
    %325 = vector.multi_reduction <add>, %324, %cst_264 [1] : vector<4x64xf32> to vector<4xf32>
    %326 = vector.shape_cast %325 : vector<4xf32> to vector<4x1xf32>
    %cst_265 = arith.constant 1.000000e+00 : f32
    %327 = vector.broadcast %cst_265 : f32 to vector<4x1xf32>
    %328 = arith.subf %326, %327 : vector<4x1xf32>
    %cst_266 = arith.constant 0.000000e+00 : f32
    %329 = vector.broadcast %cst_266 : f32 to vector<4x1xf32>
    %330 = arith.cmpf oge, %328, %329 : vector<4x1xf32>
    %331 = arith.select %330, %319, %317 : vector<4x1xi1>, vector<4x1xf32>
    %cst_267 = arith.constant 1.093750e-01 : f32
    %332 = vector.broadcast %cst_267 : f32 to vector<4x1xf32>
    %333 = arith.addf %331, %332 : vector<4x1xf32>
    %334 = vector.broadcast %333 : vector<4x1xf32> to vector<4x64xf32>
    %335 = arith.subf %299, %334 : vector<4x64xf32>
    %cst_268 = arith.constant 0.000000e+00 : f32
    %336 = vector.broadcast %cst_268 : f32 to vector<4x64xf32>
    %337 = arith.maximumf %335, %336 : vector<4x64xf32>
    %338 = arith.mulf %337, %337 : vector<4x64xf32>
    %cst_269 = arith.constant dense<0.000000e+00> : vector<4xf32>
    %339 = vector.multi_reduction <add>, %338, %cst_269 [1] : vector<4x64xf32> to vector<4xf32>
    %340 = vector.shape_cast %339 : vector<4xf32> to vector<4x1xf32>
    %cst_270 = arith.constant 1.000000e+00 : f32
    %341 = vector.broadcast %cst_270 : f32 to vector<4x1xf32>
    %342 = arith.subf %340, %341 : vector<4x1xf32>
    %cst_271 = arith.constant 0.000000e+00 : f32
    %343 = vector.broadcast %cst_271 : f32 to vector<4x1xf32>
    %344 = arith.cmpf oge, %342, %343 : vector<4x1xf32>
    %345 = arith.select %344, %333, %331 : vector<4x1xi1>, vector<4x1xf32>
    %cst_272 = arith.constant 5.468750e-02 : f32
    %346 = vector.broadcast %cst_272 : f32 to vector<4x1xf32>
    %347 = arith.addf %345, %346 : vector<4x1xf32>
    %348 = vector.broadcast %347 : vector<4x1xf32> to vector<4x64xf32>
    %349 = arith.subf %299, %348 : vector<4x64xf32>
    %cst_273 = arith.constant 0.000000e+00 : f32
    %350 = vector.broadcast %cst_273 : f32 to vector<4x64xf32>
    %351 = arith.maximumf %349, %350 : vector<4x64xf32>
    %352 = arith.mulf %351, %351 : vector<4x64xf32>
    %cst_274 = arith.constant dense<0.000000e+00> : vector<4xf32>
    %353 = vector.multi_reduction <add>, %352, %cst_274 [1] : vector<4x64xf32> to vector<4xf32>
    %354 = vector.shape_cast %353 : vector<4xf32> to vector<4x1xf32>
    %cst_275 = arith.constant 1.000000e+00 : f32
    %355 = vector.broadcast %cst_275 : f32 to vector<4x1xf32>
    %356 = arith.subf %354, %355 : vector<4x1xf32>
    %cst_276 = arith.constant 0.000000e+00 : f32
    %357 = vector.broadcast %cst_276 : f32 to vector<4x1xf32>
    %358 = arith.cmpf oge, %356, %357 : vector<4x1xf32>
    %359 = arith.select %358, %347, %345 : vector<4x1xi1>, vector<4x1xf32>
    %cst_277 = arith.constant 0.02734375 : f32
    %360 = vector.broadcast %cst_277 : f32 to vector<4x1xf32>
    %361 = arith.addf %359, %360 : vector<4x1xf32>
    %362 = vector.broadcast %361 : vector<4x1xf32> to vector<4x64xf32>
    %363 = arith.subf %299, %362 : vector<4x64xf32>
    %cst_278 = arith.constant 0.000000e+00 : f32
    %364 = vector.broadcast %cst_278 : f32 to vector<4x64xf32>
    %365 = arith.maximumf %363, %364 : vector<4x64xf32>
    %366 = arith.mulf %365, %365 : vector<4x64xf32>
    %cst_279 = arith.constant dense<0.000000e+00> : vector<4xf32>
    %367 = vector.multi_reduction <add>, %366, %cst_279 [1] : vector<4x64xf32> to vector<4xf32>
    %368 = vector.shape_cast %367 : vector<4xf32> to vector<4x1xf32>
    %cst_280 = arith.constant 1.000000e+00 : f32
    %369 = vector.broadcast %cst_280 : f32 to vector<4x1xf32>
    %370 = arith.subf %368, %369 : vector<4x1xf32>
    %cst_281 = arith.constant 0.000000e+00 : f32
    %371 = vector.broadcast %cst_281 : f32 to vector<4x1xf32>
    %372 = arith.cmpf oge, %370, %371 : vector<4x1xf32>
    %373 = arith.select %372, %361, %359 : vector<4x1xi1>, vector<4x1xf32>
    %cst_282 = arith.constant 0.013671875 : f32
    %374 = vector.broadcast %cst_282 : f32 to vector<4x1xf32>
    %375 = arith.addf %373, %374 : vector<4x1xf32>
    %376 = vector.broadcast %375 : vector<4x1xf32> to vector<4x64xf32>
    %377 = arith.subf %299, %376 : vector<4x64xf32>
    %cst_283 = arith.constant 0.000000e+00 : f32
    %378 = vector.broadcast %cst_283 : f32 to vector<4x64xf32>
    %379 = arith.maximumf %377, %378 : vector<4x64xf32>
    %380 = arith.mulf %379, %379 : vector<4x64xf32>
    %cst_284 = arith.constant dense<0.000000e+00> : vector<4xf32>
    %381 = vector.multi_reduction <add>, %380, %cst_284 [1] : vector<4x64xf32> to vector<4xf32>
    %382 = vector.shape_cast %381 : vector<4xf32> to vector<4x1xf32>
    %cst_285 = arith.constant 1.000000e+00 : f32
    %383 = vector.broadcast %cst_285 : f32 to vector<4x1xf32>
    %384 = arith.subf %382, %383 : vector<4x1xf32>
    %cst_286 = arith.constant 0.000000e+00 : f32
    %385 = vector.broadcast %cst_286 : f32 to vector<4x1xf32>
    %386 = arith.cmpf oge, %384, %385 : vector<4x1xf32>
    %387 = arith.select %386, %375, %373 : vector<4x1xi1>, vector<4x1xf32>
    %cst_287 = arith.constant 0.0068359375 : f32
    %388 = vector.broadcast %cst_287 : f32 to vector<4x1xf32>
    %389 = arith.addf %387, %388 : vector<4x1xf32>
    %390 = vector.broadcast %389 : vector<4x1xf32> to vector<4x64xf32>
    %391 = arith.subf %299, %390 : vector<4x64xf32>
    %cst_288 = arith.constant 0.000000e+00 : f32
    %392 = vector.broadcast %cst_288 : f32 to vector<4x64xf32>
    %393 = arith.maximumf %391, %392 : vector<4x64xf32>
    %394 = arith.mulf %393, %393 : vector<4x64xf32>
    %cst_289 = arith.constant dense<0.000000e+00> : vector<4xf32>
    %395 = vector.multi_reduction <add>, %394, %cst_289 [1] : vector<4x64xf32> to vector<4xf32>
    %396 = vector.shape_cast %395 : vector<4xf32> to vector<4x1xf32>
    %cst_290 = arith.constant 1.000000e+00 : f32
    %397 = vector.broadcast %cst_290 : f32 to vector<4x1xf32>
    %398 = arith.subf %396, %397 : vector<4x1xf32>
    %cst_291 = arith.constant 0.000000e+00 : f32
    %399 = vector.broadcast %cst_291 : f32 to vector<4x1xf32>
    %400 = arith.cmpf oge, %398, %399 : vector<4x1xf32>
    %401 = arith.select %400, %389, %387 : vector<4x1xi1>, vector<4x1xf32>
    %cst_292 = arith.constant 0.00341796875 : f32
    %402 = vector.broadcast %cst_292 : f32 to vector<4x1xf32>
    %403 = arith.addf %401, %402 : vector<4x1xf32>
    %404 = vector.broadcast %403 : vector<4x1xf32> to vector<4x64xf32>
    %405 = arith.subf %299, %404 : vector<4x64xf32>
    %cst_293 = arith.constant 0.000000e+00 : f32
    %406 = vector.broadcast %cst_293 : f32 to vector<4x64xf32>
    %407 = arith.maximumf %405, %406 : vector<4x64xf32>
    %408 = arith.mulf %407, %407 : vector<4x64xf32>
    %cst_294 = arith.constant dense<0.000000e+00> : vector<4xf32>
    %409 = vector.multi_reduction <add>, %408, %cst_294 [1] : vector<4x64xf32> to vector<4xf32>
    %410 = vector.shape_cast %409 : vector<4xf32> to vector<4x1xf32>
    %cst_295 = arith.constant 1.000000e+00 : f32
    %411 = vector.broadcast %cst_295 : f32 to vector<4x1xf32>
    %412 = arith.subf %410, %411 : vector<4x1xf32>
    %cst_296 = arith.constant 0.000000e+00 : f32
    %413 = vector.broadcast %cst_296 : f32 to vector<4x1xf32>
    %414 = arith.cmpf oge, %412, %413 : vector<4x1xf32>
    %415 = arith.select %414, %403, %401 : vector<4x1xi1>, vector<4x1xf32>
    %cst_297 = arith.constant 0.00170898438 : f32
    %416 = vector.broadcast %cst_297 : f32 to vector<4x1xf32>
    %417 = arith.addf %415, %416 : vector<4x1xf32>
    %418 = vector.broadcast %417 : vector<4x1xf32> to vector<4x64xf32>
    %419 = arith.subf %299, %418 : vector<4x64xf32>
    %cst_298 = arith.constant 0.000000e+00 : f32
    %420 = vector.broadcast %cst_298 : f32 to vector<4x64xf32>
    %421 = arith.maximumf %419, %420 : vector<4x64xf32>
    %422 = arith.mulf %421, %421 : vector<4x64xf32>
    %cst_299 = arith.constant dense<0.000000e+00> : vector<4xf32>
    %423 = vector.multi_reduction <add>, %422, %cst_299 [1] : vector<4x64xf32> to vector<4xf32>
    %424 = vector.shape_cast %423 : vector<4xf32> to vector<4x1xf32>
    %cst_300 = arith.constant 1.000000e+00 : f32
    %425 = vector.broadcast %cst_300 : f32 to vector<4x1xf32>
    %426 = arith.subf %424, %425 : vector<4x1xf32>
    %cst_301 = arith.constant 0.000000e+00 : f32
    %427 = vector.broadcast %cst_301 : f32 to vector<4x1xf32>
    %428 = arith.cmpf oge, %426, %427 : vector<4x1xf32>
    %429 = arith.select %428, %417, %415 : vector<4x1xi1>, vector<4x1xf32>
    %cst_302 = arith.constant 8.54492188E-4 : f32
    %430 = vector.broadcast %cst_302 : f32 to vector<4x1xf32>
    %431 = arith.addf %429, %430 : vector<4x1xf32>
    %432 = vector.broadcast %431 : vector<4x1xf32> to vector<4x64xf32>
    %433 = arith.subf %299, %432 : vector<4x64xf32>
    %cst_303 = arith.constant 0.000000e+00 : f32
    %434 = vector.broadcast %cst_303 : f32 to vector<4x64xf32>
    %435 = arith.maximumf %433, %434 : vector<4x64xf32>
    %436 = arith.mulf %435, %435 : vector<4x64xf32>
    %cst_304 = arith.constant dense<0.000000e+00> : vector<4xf32>
    %437 = vector.multi_reduction <add>, %436, %cst_304 [1] : vector<4x64xf32> to vector<4xf32>
    %438 = vector.shape_cast %437 : vector<4xf32> to vector<4x1xf32>
    %cst_305 = arith.constant 1.000000e+00 : f32
    %439 = vector.broadcast %cst_305 : f32 to vector<4x1xf32>
    %440 = arith.subf %438, %439 : vector<4x1xf32>
    %cst_306 = arith.constant 0.000000e+00 : f32
    %441 = vector.broadcast %cst_306 : f32 to vector<4x1xf32>
    %442 = arith.cmpf oge, %440, %441 : vector<4x1xf32>
    %443 = arith.select %442, %431, %429 : vector<4x1xi1>, vector<4x1xf32>
    %cst_307 = arith.constant 4.27246094E-4 : f32
    %444 = vector.broadcast %cst_307 : f32 to vector<4x1xf32>
    %445 = arith.addf %443, %444 : vector<4x1xf32>
    %446 = vector.broadcast %445 : vector<4x1xf32> to vector<4x64xf32>
    %447 = arith.subf %299, %446 : vector<4x64xf32>
    %cst_308 = arith.constant 0.000000e+00 : f32
    %448 = vector.broadcast %cst_308 : f32 to vector<4x64xf32>
    %449 = arith.maximumf %447, %448 : vector<4x64xf32>
    %450 = arith.mulf %449, %449 : vector<4x64xf32>
    %cst_309 = arith.constant dense<0.000000e+00> : vector<4xf32>
    %451 = vector.multi_reduction <add>, %450, %cst_309 [1] : vector<4x64xf32> to vector<4xf32>
    %452 = vector.shape_cast %451 : vector<4xf32> to vector<4x1xf32>
    %cst_310 = arith.constant 1.000000e+00 : f32
    %453 = vector.broadcast %cst_310 : f32 to vector<4x1xf32>
    %454 = arith.subf %452, %453 : vector<4x1xf32>
    %cst_311 = arith.constant 0.000000e+00 : f32
    %455 = vector.broadcast %cst_311 : f32 to vector<4x1xf32>
    %456 = arith.cmpf oge, %454, %455 : vector<4x1xf32>
    %457 = arith.select %456, %445, %443 : vector<4x1xi1>, vector<4x1xf32>
    %cst_312 = arith.constant 2.13623047E-4 : f32
    %458 = vector.broadcast %cst_312 : f32 to vector<4x1xf32>
    %459 = arith.addf %457, %458 : vector<4x1xf32>
    %460 = vector.broadcast %459 : vector<4x1xf32> to vector<4x64xf32>
    %461 = arith.subf %299, %460 : vector<4x64xf32>
    %cst_313 = arith.constant 0.000000e+00 : f32
    %462 = vector.broadcast %cst_313 : f32 to vector<4x64xf32>
    %463 = arith.maximumf %461, %462 : vector<4x64xf32>
    %464 = arith.mulf %463, %463 : vector<4x64xf32>
    %cst_314 = arith.constant dense<0.000000e+00> : vector<4xf32>
    %465 = vector.multi_reduction <add>, %464, %cst_314 [1] : vector<4x64xf32> to vector<4xf32>
    %466 = vector.shape_cast %465 : vector<4xf32> to vector<4x1xf32>
    %cst_315 = arith.constant 1.000000e+00 : f32
    %467 = vector.broadcast %cst_315 : f32 to vector<4x1xf32>
    %468 = arith.subf %466, %467 : vector<4x1xf32>
    %cst_316 = arith.constant 0.000000e+00 : f32
    %469 = vector.broadcast %cst_316 : f32 to vector<4x1xf32>
    %470 = arith.cmpf oge, %468, %469 : vector<4x1xf32>
    %471 = arith.select %470, %459, %457 : vector<4x1xi1>, vector<4x1xf32>
    %cst_317 = arith.constant 1.06811523E-4 : f32
    %472 = vector.broadcast %cst_317 : f32 to vector<4x1xf32>
    %473 = arith.addf %471, %472 : vector<4x1xf32>
    %474 = vector.broadcast %473 : vector<4x1xf32> to vector<4x64xf32>
    %475 = arith.subf %299, %474 : vector<4x64xf32>
    %cst_318 = arith.constant 0.000000e+00 : f32
    %476 = vector.broadcast %cst_318 : f32 to vector<4x64xf32>
    %477 = arith.maximumf %475, %476 : vector<4x64xf32>
    %478 = arith.mulf %477, %477 : vector<4x64xf32>
    %cst_319 = arith.constant dense<0.000000e+00> : vector<4xf32>
    %479 = vector.multi_reduction <add>, %478, %cst_319 [1] : vector<4x64xf32> to vector<4xf32>
    %480 = vector.shape_cast %479 : vector<4xf32> to vector<4x1xf32>
    %cst_320 = arith.constant 1.000000e+00 : f32
    %481 = vector.broadcast %cst_320 : f32 to vector<4x1xf32>
    %482 = arith.subf %480, %481 : vector<4x1xf32>
    %cst_321 = arith.constant 0.000000e+00 : f32
    %483 = vector.broadcast %cst_321 : f32 to vector<4x1xf32>
    %484 = arith.cmpf oge, %482, %483 : vector<4x1xf32>
    %485 = arith.select %484, %473, %471 : vector<4x1xi1>, vector<4x1xf32>
    %cst_322 = arith.constant 5.34057617E-5 : f32
    %486 = vector.broadcast %cst_322 : f32 to vector<4x1xf32>
    %487 = arith.addf %485, %486 : vector<4x1xf32>
    %488 = vector.broadcast %487 : vector<4x1xf32> to vector<4x64xf32>
    %489 = arith.subf %299, %488 : vector<4x64xf32>
    %cst_323 = arith.constant 0.000000e+00 : f32
    %490 = vector.broadcast %cst_323 : f32 to vector<4x64xf32>
    %491 = arith.maximumf %489, %490 : vector<4x64xf32>
    %492 = arith.mulf %491, %491 : vector<4x64xf32>
    %cst_324 = arith.constant dense<0.000000e+00> : vector<4xf32>
    %493 = vector.multi_reduction <add>, %492, %cst_324 [1] : vector<4x64xf32> to vector<4xf32>
    %494 = vector.shape_cast %493 : vector<4xf32> to vector<4x1xf32>
    %cst_325 = arith.constant 1.000000e+00 : f32
    %495 = vector.broadcast %cst_325 : f32 to vector<4x1xf32>
    %496 = arith.subf %494, %495 : vector<4x1xf32>
    %cst_326 = arith.constant 0.000000e+00 : f32
    %497 = vector.broadcast %cst_326 : f32 to vector<4x1xf32>
    %498 = arith.cmpf oge, %496, %497 : vector<4x1xf32>
    %499 = arith.select %498, %487, %485 : vector<4x1xi1>, vector<4x1xf32>
    %cst_327 = arith.constant 2.67028809E-5 : f32
    %500 = vector.broadcast %cst_327 : f32 to vector<4x1xf32>
    %501 = arith.addf %499, %500 : vector<4x1xf32>
    %502 = vector.broadcast %501 : vector<4x1xf32> to vector<4x64xf32>
    %503 = arith.subf %299, %502 : vector<4x64xf32>
    %cst_328 = arith.constant 0.000000e+00 : f32
    %504 = vector.broadcast %cst_328 : f32 to vector<4x64xf32>
    %505 = arith.maximumf %503, %504 : vector<4x64xf32>
    %506 = arith.mulf %505, %505 : vector<4x64xf32>
    %cst_329 = arith.constant dense<0.000000e+00> : vector<4xf32>
    %507 = vector.multi_reduction <add>, %506, %cst_329 [1] : vector<4x64xf32> to vector<4xf32>
    %508 = vector.shape_cast %507 : vector<4xf32> to vector<4x1xf32>
    %cst_330 = arith.constant 1.000000e+00 : f32
    %509 = vector.broadcast %cst_330 : f32 to vector<4x1xf32>
    %510 = arith.subf %508, %509 : vector<4x1xf32>
    %cst_331 = arith.constant 0.000000e+00 : f32
    %511 = vector.broadcast %cst_331 : f32 to vector<4x1xf32>
    %512 = arith.cmpf oge, %510, %511 : vector<4x1xf32>
    %513 = arith.select %512, %501, %499 : vector<4x1xi1>, vector<4x1xf32>
    %cst_332 = arith.constant 1.33514404E-5 : f32
    %514 = vector.broadcast %cst_332 : f32 to vector<4x1xf32>
    %515 = arith.addf %513, %514 : vector<4x1xf32>
    %516 = vector.broadcast %515 : vector<4x1xf32> to vector<4x64xf32>
    %517 = arith.subf %299, %516 : vector<4x64xf32>
    %cst_333 = arith.constant 0.000000e+00 : f32
    %518 = vector.broadcast %cst_333 : f32 to vector<4x64xf32>
    %519 = arith.maximumf %517, %518 : vector<4x64xf32>
    %520 = arith.mulf %519, %519 : vector<4x64xf32>
    %cst_334 = arith.constant dense<0.000000e+00> : vector<4xf32>
    %521 = vector.multi_reduction <add>, %520, %cst_334 [1] : vector<4x64xf32> to vector<4xf32>
    %522 = vector.shape_cast %521 : vector<4xf32> to vector<4x1xf32>
    %cst_335 = arith.constant 1.000000e+00 : f32
    %523 = vector.broadcast %cst_335 : f32 to vector<4x1xf32>
    %524 = arith.subf %522, %523 : vector<4x1xf32>
    %cst_336 = arith.constant 0.000000e+00 : f32
    %525 = vector.broadcast %cst_336 : f32 to vector<4x1xf32>
    %526 = arith.cmpf oge, %524, %525 : vector<4x1xf32>
    %527 = arith.select %526, %515, %513 : vector<4x1xi1>, vector<4x1xf32>
    %cst_337 = arith.constant 6.675720e-06 : f32
    %528 = vector.broadcast %cst_337 : f32 to vector<4x1xf32>
    %529 = arith.addf %527, %528 : vector<4x1xf32>
    %530 = vector.broadcast %529 : vector<4x1xf32> to vector<4x64xf32>
    %531 = arith.subf %299, %530 : vector<4x64xf32>
    %cst_338 = arith.constant 0.000000e+00 : f32
    %532 = vector.broadcast %cst_338 : f32 to vector<4x64xf32>
    %533 = arith.maximumf %531, %532 : vector<4x64xf32>
    %534 = arith.mulf %533, %533 : vector<4x64xf32>
    %cst_339 = arith.constant dense<0.000000e+00> : vector<4xf32>
    %535 = vector.multi_reduction <add>, %534, %cst_339 [1] : vector<4x64xf32> to vector<4xf32>
    %536 = vector.shape_cast %535 : vector<4xf32> to vector<4x1xf32>
    %cst_340 = arith.constant 1.000000e+00 : f32
    %537 = vector.broadcast %cst_340 : f32 to vector<4x1xf32>
    %538 = arith.subf %536, %537 : vector<4x1xf32>
    %cst_341 = arith.constant 0.000000e+00 : f32
    %539 = vector.broadcast %cst_341 : f32 to vector<4x1xf32>
    %540 = arith.cmpf oge, %538, %539 : vector<4x1xf32>
    %541 = arith.select %540, %529, %527 : vector<4x1xi1>, vector<4x1xf32>
    %cst_342 = arith.constant 3.337860e-06 : f32
    %542 = vector.broadcast %cst_342 : f32 to vector<4x1xf32>
    %543 = arith.addf %541, %542 : vector<4x1xf32>
    %544 = vector.broadcast %543 : vector<4x1xf32> to vector<4x64xf32>
    %545 = arith.subf %299, %544 : vector<4x64xf32>
    %cst_343 = arith.constant 0.000000e+00 : f32
    %546 = vector.broadcast %cst_343 : f32 to vector<4x64xf32>
    %547 = arith.maximumf %545, %546 : vector<4x64xf32>
    %548 = arith.mulf %547, %547 : vector<4x64xf32>
    %cst_344 = arith.constant dense<0.000000e+00> : vector<4xf32>
    %549 = vector.multi_reduction <add>, %548, %cst_344 [1] : vector<4x64xf32> to vector<4xf32>
    %550 = vector.shape_cast %549 : vector<4xf32> to vector<4x1xf32>
    %cst_345 = arith.constant 1.000000e+00 : f32
    %551 = vector.broadcast %cst_345 : f32 to vector<4x1xf32>
    %552 = arith.subf %550, %551 : vector<4x1xf32>
    %cst_346 = arith.constant 0.000000e+00 : f32
    %553 = vector.broadcast %cst_346 : f32 to vector<4x1xf32>
    %554 = arith.cmpf oge, %552, %553 : vector<4x1xf32>
    %555 = arith.select %554, %543, %541 : vector<4x1xi1>, vector<4x1xf32>
    %cst_347 = arith.constant 1.668930e-06 : f32
    %556 = vector.broadcast %cst_347 : f32 to vector<4x1xf32>
    %557 = arith.addf %555, %556 : vector<4x1xf32>
    %558 = vector.broadcast %557 : vector<4x1xf32> to vector<4x64xf32>
    %559 = arith.subf %299, %558 : vector<4x64xf32>
    %cst_348 = arith.constant 0.000000e+00 : f32
    %560 = vector.broadcast %cst_348 : f32 to vector<4x64xf32>
    %561 = arith.maximumf %559, %560 : vector<4x64xf32>
    %562 = arith.mulf %561, %561 : vector<4x64xf32>
    %cst_349 = arith.constant dense<0.000000e+00> : vector<4xf32>
    %563 = vector.multi_reduction <add>, %562, %cst_349 [1] : vector<4x64xf32> to vector<4xf32>
    %564 = vector.shape_cast %563 : vector<4xf32> to vector<4x1xf32>
    %cst_350 = arith.constant 1.000000e+00 : f32
    %565 = vector.broadcast %cst_350 : f32 to vector<4x1xf32>
    %566 = arith.subf %564, %565 : vector<4x1xf32>
    %cst_351 = arith.constant 0.000000e+00 : f32
    %567 = vector.broadcast %cst_351 : f32 to vector<4x1xf32>
    %568 = arith.cmpf oge, %566, %567 : vector<4x1xf32>
    %569 = arith.select %568, %557, %555 : vector<4x1xi1>, vector<4x1xf32>
    %cst_352 = arith.constant 8.344650e-07 : f32
    %570 = vector.broadcast %cst_352 : f32 to vector<4x1xf32>
    %571 = arith.addf %569, %570 : vector<4x1xf32>
    %572 = vector.broadcast %571 : vector<4x1xf32> to vector<4x64xf32>
    %573 = arith.subf %299, %572 : vector<4x64xf32>
    %cst_353 = arith.constant 0.000000e+00 : f32
    %574 = vector.broadcast %cst_353 : f32 to vector<4x64xf32>
    %575 = arith.maximumf %573, %574 : vector<4x64xf32>
    %576 = arith.mulf %575, %575 : vector<4x64xf32>
    %cst_354 = arith.constant dense<0.000000e+00> : vector<4xf32>
    %577 = vector.multi_reduction <add>, %576, %cst_354 [1] : vector<4x64xf32> to vector<4xf32>
    %578 = vector.shape_cast %577 : vector<4xf32> to vector<4x1xf32>
    %cst_355 = arith.constant 1.000000e+00 : f32
    %579 = vector.broadcast %cst_355 : f32 to vector<4x1xf32>
    %580 = arith.subf %578, %579 : vector<4x1xf32>
    %cst_356 = arith.constant 0.000000e+00 : f32
    %581 = vector.broadcast %cst_356 : f32 to vector<4x1xf32>
    %582 = arith.cmpf oge, %580, %581 : vector<4x1xf32>
    %583 = arith.select %582, %571, %569 : vector<4x1xi1>, vector<4x1xf32>
    %cst_357 = arith.constant 4.17232513E-7 : f32
    %584 = vector.broadcast %cst_357 : f32 to vector<4x1xf32>
    %585 = arith.addf %583, %584 : vector<4x1xf32>
    %586 = vector.broadcast %585 : vector<4x1xf32> to vector<4x64xf32>
    %587 = arith.subf %299, %586 : vector<4x64xf32>
    %cst_358 = arith.constant 0.000000e+00 : f32
    %588 = vector.broadcast %cst_358 : f32 to vector<4x64xf32>
    %589 = arith.maximumf %587, %588 : vector<4x64xf32>
    %590 = arith.mulf %589, %589 : vector<4x64xf32>
    %cst_359 = arith.constant dense<0.000000e+00> : vector<4xf32>
    %591 = vector.multi_reduction <add>, %590, %cst_359 [1] : vector<4x64xf32> to vector<4xf32>
    %592 = vector.shape_cast %591 : vector<4xf32> to vector<4x1xf32>
    %cst_360 = arith.constant 1.000000e+00 : f32
    %593 = vector.broadcast %cst_360 : f32 to vector<4x1xf32>
    %594 = arith.subf %592, %593 : vector<4x1xf32>
    %cst_361 = arith.constant 0.000000e+00 : f32
    %595 = vector.broadcast %cst_361 : f32 to vector<4x1xf32>
    %596 = arith.cmpf oge, %594, %595 : vector<4x1xf32>
    %597 = arith.select %596, %585, %583 : vector<4x1xi1>, vector<4x1xf32>
    %cst_362 = arith.constant 2.08616257E-7 : f32
    %598 = vector.broadcast %cst_362 : f32 to vector<4x1xf32>
    %599 = arith.addf %597, %598 : vector<4x1xf32>
    %600 = vector.broadcast %599 : vector<4x1xf32> to vector<4x64xf32>
    %601 = arith.subf %299, %600 : vector<4x64xf32>
    %cst_363 = arith.constant 0.000000e+00 : f32
    %602 = vector.broadcast %cst_363 : f32 to vector<4x64xf32>
    %603 = arith.maximumf %601, %602 : vector<4x64xf32>
    %604 = arith.mulf %603, %603 : vector<4x64xf32>
    %cst_364 = arith.constant dense<0.000000e+00> : vector<4xf32>
    %605 = vector.multi_reduction <add>, %604, %cst_364 [1] : vector<4x64xf32> to vector<4xf32>
    %606 = vector.shape_cast %605 : vector<4xf32> to vector<4x1xf32>
    %cst_365 = arith.constant 1.000000e+00 : f32
    %607 = vector.broadcast %cst_365 : f32 to vector<4x1xf32>
    %608 = arith.subf %606, %607 : vector<4x1xf32>
    %cst_366 = arith.constant 0.000000e+00 : f32
    %609 = vector.broadcast %cst_366 : f32 to vector<4x1xf32>
    %610 = arith.cmpf oge, %608, %609 : vector<4x1xf32>
    %611 = arith.select %610, %599, %597 : vector<4x1xi1>, vector<4x1xf32>
    %cst_367 = arith.constant 1.04308128E-7 : f32
    %612 = vector.broadcast %cst_367 : f32 to vector<4x1xf32>
    %613 = arith.addf %611, %612 : vector<4x1xf32>
    %614 = vector.broadcast %613 : vector<4x1xf32> to vector<4x64xf32>
    %615 = arith.subf %299, %614 : vector<4x64xf32>
    %cst_368 = arith.constant 0.000000e+00 : f32
    %616 = vector.broadcast %cst_368 : f32 to vector<4x64xf32>
    %617 = arith.maximumf %615, %616 : vector<4x64xf32>
    %618 = arith.mulf %617, %617 : vector<4x64xf32>
    %cst_369 = arith.constant dense<0.000000e+00> : vector<4xf32>
    %619 = vector.multi_reduction <add>, %618, %cst_369 [1] : vector<4x64xf32> to vector<4xf32>
    %620 = vector.shape_cast %619 : vector<4xf32> to vector<4x1xf32>
    %cst_370 = arith.constant 1.000000e+00 : f32
    %621 = vector.broadcast %cst_370 : f32 to vector<4x1xf32>
    %622 = arith.subf %620, %621 : vector<4x1xf32>
    %cst_371 = arith.constant 0.000000e+00 : f32
    %623 = vector.broadcast %cst_371 : f32 to vector<4x1xf32>
    %624 = arith.cmpf oge, %622, %623 : vector<4x1xf32>
    %625 = arith.select %624, %613, %611 : vector<4x1xi1>, vector<4x1xf32>
    %cst_372 = arith.constant 5.21540642E-8 : f32
    %626 = vector.broadcast %cst_372 : f32 to vector<4x1xf32>
    %627 = arith.addf %625, %626 : vector<4x1xf32>
    %628 = vector.broadcast %627 : vector<4x1xf32> to vector<4x64xf32>
    %629 = arith.subf %299, %628 : vector<4x64xf32>
    %cst_373 = arith.constant 0.000000e+00 : f32
    %630 = vector.broadcast %cst_373 : f32 to vector<4x64xf32>
    %631 = arith.maximumf %629, %630 : vector<4x64xf32>
    %632 = arith.mulf %631, %631 : vector<4x64xf32>
    %cst_374 = arith.constant dense<0.000000e+00> : vector<4xf32>
    %633 = vector.multi_reduction <add>, %632, %cst_374 [1] : vector<4x64xf32> to vector<4xf32>
    %634 = vector.shape_cast %633 : vector<4xf32> to vector<4x1xf32>
    %cst_375 = arith.constant 1.000000e+00 : f32
    %635 = vector.broadcast %cst_375 : f32 to vector<4x1xf32>
    %636 = arith.subf %634, %635 : vector<4x1xf32>
    %cst_376 = arith.constant 0.000000e+00 : f32
    %637 = vector.broadcast %cst_376 : f32 to vector<4x1xf32>
    %638 = arith.cmpf oge, %636, %637 : vector<4x1xf32>
    %639 = arith.select %638, %627, %625 : vector<4x1xi1>, vector<4x1xf32>
    %640 = vector.broadcast %639 : vector<4x1xf32> to vector<4x64xf32>
    %641 = arith.subf %299, %640 : vector<4x64xf32>
    %cst_377 = arith.constant 0.000000e+00 : f32
    %642 = vector.broadcast %cst_377 : f32 to vector<4x64xf32>
    %643 = arith.maximumf %641, %642 : vector<4x64xf32>
    %644 = arith.mulf %643, %643 : vector<4x64xf32>
    %cst_378 = arith.constant dense<0.000000e+00> : vector<4xf32>
    %645 = vector.multi_reduction <add>, %644, %cst_378 [1] : vector<4x64xf32> to vector<4xf32>
    %646 = vector.shape_cast %645 : vector<4xf32> to vector<4x1xf32>
    %647 = vector.broadcast %646 : vector<4x1xf32> to vector<4x64xf32>
    %648 = arith.divf %644, %647 : vector<4x64xf32>
    %649 = arith.truncf %648 : vector<4x64xf32> to vector<4x64xbf16>
    %c0_379 = arith.constant 0 : index
    %c0_380 = arith.constant 0 : index
    %650 = vector.load %arg10[%c0_379, %c0_380] : memref<64x64xbf16, #tpu.memory_space<vmem>>, vector<64x64xbf16>
    %cst_381 = arith.constant dense<0.000000e+00> : vector<4x64xf32>
    %651 = tpu.matmul %649, %650, %cst_381 {dimension_numbers = #tpu.dot_dimension_numbers<[1], [0], [0], [1], [0, 0, 1, 1], [], []>} : vector<4x64xbf16>, vector<64x64xbf16>, vector<4x64xf32> -> vector<4x64xf32>
    %c0_382 = arith.constant 0 : index
    %c0_383 = arith.constant 0 : index
    %652 = vector.load %arg11[%c0_382, %c0_383] : memref<4x64xf32, #tpu.memory_space<vmem>>, vector<4x64xf32>
    tpu.vector_store %arg11[%c0_382, %c0_383], %651 {strides = array<i32>} : memref<4x64xf32, #tpu.memory_space<vmem>>, vector<4x64xf32>,
    return
  }
  func.func @transform_0(%arg0: i32) -> (i32, i32, i32) {
    %c0_i32 = arith.constant 0 : i32
    %c0_i32_0 = arith.constant 0 : i32
    %c0_i32_1 = arith.constant 0 : i32
    return %arg0, %c0_i32, %c0_i32_0 : i32, i32, i32
  }
  func.func @transform_1(%arg0: i32) -> (i32, i32) {
    %c0_i32 = arith.constant 0 : i32
    %c0_i32_0 = arith.constant 0 : i32
    %c0_i32_1 = arith.constant 0 : i32
    return %c0_i32, %c0_i32_0 : i32, i32
  }
  func.func @transform_2(%arg0: i32) -> (i32, i32) {
    %c0_i32 = arith.constant 0 : i32
    %c0_i32_0 = arith.constant 0 : i32
    %c0_i32_1 = arith.constant 0 : i32
    return %c0_i32, %c0_i32_0 : i32, i32
  }
  func.func @transform_3(%arg0: i32) -> (i32, i32, i32) {
    %c0_i32 = arith.constant 0 : i32
    %c0_i32_0 = arith.constant 0 : i32
    %c0_i32_1 = arith.constant 0 : i32
    %c0_i32_2 = arith.constant 0 : i32
    return %c0_i32, %c0_i32_0, %c0_i32_1 : i32, i32, i32
  }
  func.func @transform_4(%arg0: i32) -> (i32, i32, i32) {
    %c0_i32 = arith.constant 0 : i32
    %c0_i32_0 = arith.constant 0 : i32
    %c0_i32_1 = arith.constant 0 : i32
    %c0_i32_2 = arith.constant 0 : i32
    return %c0_i32, %c0_i32_0, %c0_i32_1 : i32, i32, i32
  }
  func.func @transform_5(%arg0: i32) -> (i32, i32) {
    %c0_i32 = arith.constant 0 : i32
    %c0_i32_0 = arith.constant 0 : i32
    %c0_i32_1 = arith.constant 0 : i32
    return %c0_i32, %c0_i32_0 : i32, i32
  }
  func.func @transform_6(%arg0: i32) -> (i32, i32) {
    %c0_i32 = arith.constant 0 : i32
    %c0_i32_0 = arith.constant 0 : i32
    %c0_i32_1 = arith.constant 0 : i32
    return %c0_i32, %c0_i32_0 : i32, i32
  }
  func.func @transform_7(%arg0: i32) -> (i32, i32) {
    %c0_i32 = arith.constant 0 : i32
    %c0_i32_0 = arith.constant 0 : i32
    %c0_i32_1 = arith.constant 0 : i32
    return %c0_i32, %c0_i32_0 : i32, i32
  }
  func.func @transform_8(%arg0: i32) -> (i32, i32) {
    %c0_i32 = arith.constant 0 : i32
    %c0_i32_0 = arith.constant 0 : i32
    %c0_i32_1 = arith.constant 0 : i32
    return %c0_i32, %c0_i32_0 : i32, i32
  }
  func.func @transform_9(%arg0: i32) -> (i32, i32) {
    %c0_i32 = arith.constant 0 : i32
    %c0_i32_0 = arith.constant 0 : i32
    %c0_i32_1 = arith.constant 0 : i32
    return %c0_i32, %c0_i32_0 : i32, i32
  }
  func.func @transform_10(%arg0: i32) -> (i32, i32) {
    %c0_i32 = arith.constant 0 : i32
    %c0_i32_0 = arith.constant 0 : i32
    return %arg0, %c0_i32 : i32, i32
  }
}

</mosaic_0001>

<bundles_post_ra>
// kernel: neural_celp_forward.1
= control target key start
LH: loop header
LB: loop body
LE: loop exit
PB: predicated region body
PF: predicated region fallthrough
CT: control target
= control target key end

     0   :  { %v5424_v0 = vmov 0   ;;  %vm38_vm0 = vcmask 256000   ;;  %v5425_v17 = vmov 0.0   ;;  %vm137_vm1 = vcmask 261120   ;;  %s5426_s28 = smov 96   ;;  %s5427_s29 = smov 64   ;;  %s7172_s0 = inlined_call_operand.vmem [shape: f32[2,128,1], index: 0, kind: input, shape index: {}]   ;;  %s7173_s2 = inlined_call_operand.vmem [shape: f32[1,32], index: 2, kind: input, shape index: {}]   ;;  %s7174_s1 = inlined_call_operand.vmem [shape: f32[7,32], index: 1, kind: input, shape index: {}]   ;;  %s7175_s4 = inlined_call_operand.vmem [shape: f32[4,1,32], index: 4, kind: input, shape index: {}]   ;;  %s7176_s3 = inlined_call_operand.vmem [shape: bf16[4,128,32], index: 3, kind: input, shape index: {}]   ;;  %s7177_s5 = inlined_call_operand.vmem [shape: bf16[128,1024], index: 5, kind: input, shape index: {}]   ;;  %s7178_s7 = inlined_call_operand.vmem [shape: bf16[1024,64], index: 7, kind: input, shape index: {}]   ;;  %s7179_s6 = inlined_call_operand.vmem [shape: f32[1,1024], index: 6, kind: input, shape index: {}]   ;;  %s7180_s8 = inlined_call_operand.vmem [shape: f32[1,64], index: 8, kind: input, shape index: {}]   ;;  %s7181_s9 = inlined_call_operand.vmem [shape: bf16[64,64], index: 9, kind: input, shape index: {}]   ;;  %s7182_s10 = inlined_call_operand.vmem [shape: f32[4,64], index: 10, kind: output, shape index: {}]  }
   0x1   :  { %5200 = vset.pattern.permute.xlu2 %v5424_v0  ;;  %5199 = vset.pattern.permute.xlu1 %v5424_v0  ;;  %v45_v1 = vld [vmem:[%s7172_s0 + $0x20] sm:$0xff]  ;;  %v43_v2 = vld [vmem:[%s7172_s0 + $0x10] sm:$0xff]  ;;  %v46_v4 = vld [vmem:[%s7172_s0 + $0x28] sm:$0xff]  ;;  %39 = vst.msk [vmem:[#allocation2] sm:$0x7] %vm38_vm0, %v5425_v17  ;;  %vm564_vm2 = vcmask 253952  }
   0x2   :  { %v41_v3 = vld [vmem:[%s7172_s0] sm:$0xff]  ;;  %5198 = vset.pattern.permute.xlu0 %v5424_v0  ;;  %79 = vperm.xlu2 %5200, %v45_v1   ;;  %v44_v5 = vld [vmem:[%s7172_s0 + $0x18] sm:$0xff]  ;;  %v42_v6 = vld [vmem:[%s7172_s0 + $0x8] sm:$0xff]  ;;  %40 = vst.msk [vmem:[#allocation2 + $0x83] sm:$0x7] %vm38_vm0, %v5425_v17  ;;  %s5428_s30 = smov 32  }
   0x3   :  { %69 = vperm.xlu1 %5199, %v43_v2   ;;  %59 = vperm.xlu0 %5198, %v41_v3   ;;  %v49_v7 = vld [vmem:[%s7172_s0 + $0x40] sm:$0xff]  ;;  %v48_v8 = vld [vmem:[%s7172_s0 + $0x38] sm:$0xff]  ;;  %v47_v9 = vld [vmem:[%s7172_s0 + $0x30] sm:$0xff] }
   0x4   :  { %v52_v10 = vld [vmem:[%s7172_s0 + $0x58] sm:$0xff]  ;;  %v51_v11 = vld [vmem:[%s7172_s0 + $0x50] sm:$0xff]  ;;  %v50_v12 = vld [vmem:[%s7172_s0 + $0x48] sm:$0xff] }
   0x5   :  { %v55_v13 = vld [vmem:[%s7172_s0 + $0x70] sm:$0xff]  ;;  %v54_v14 = vld [vmem:[%s7172_s0 + $0x68] sm:$0xff]  ;;  %v53_v15 = vld [vmem:[%s7172_s0 + $0x60] sm:$0xff] }
   0x6   :  { %v56_v16 = vld [vmem:[%s7172_s0 + $0x78] sm:$0xff]  ;;  %v36_v21 = vld [vmem:[%s7174_s1] sm:$0x7f] }
   0x7   :  { %v5544_v27 = vperm.slane %v36_v21, 0  ;;  %v5546_v28 = vperm.slane %v36_v21, 1  ;;  %v5551_v32 = vperm.slane %v36_v21, 2  ;;  %v5556_v42 = vperm.slane %v36_v21, 3 }
   0x8   :  { %v5562_v45 = vperm.slane %v36_v21, 4  ;;  %v5564_v46 = vperm.slane %v36_v21, 5  ;;  %v5566_v47 = vperm.slane %v36_v21, 6 }
   0xa   :  { %84 = vperm.xlu2 %5200, %v46_v4  }
   0xb   :  { %74 = vperm.xlu1 %5199, %v44_v5   ;;  %64 = vperm.xlu0 %5198, %v42_v6  }
  0x12   :  { %99 = vperm.xlu2 %5200, %v49_v7  }
  0x13   :  { %94 = vperm.xlu1 %5199, %v48_v8   ;;  %89 = vperm.xlu0 %5198, %v47_v9  }
  0x1a   :  { %114 = vperm.xlu2 %5200, %v52_v10  }
  0x1b   :  { %109 = vperm.xlu1 %5199, %v51_v11   ;;  %104 = vperm.xlu0 %5198, %v50_v12  }
  0x22   :  { %129 = vperm.xlu2 %5200, %v55_v13  }
  0x23   :  { %124 = vperm.xlu1 %5199, %v54_v14   ;;  %119 = vperm.xlu0 %5198, %v53_v15  }
  0x2b   :  { %134 = vperm.xlu0 %5198, %v56_v16  }
  0x5c   :  { %v80_v18 = vpop.permute.xlu2 %79 }
  0x5d   :  { %142 = vst.msk [vmem:[#allocation2 + $0x23] sm:$0xff] %vm137_vm1, %v80_v18 }
  0x64   :  { %v85_v19 = vpop.permute.xlu2 %84  ;;  %v305_v48 = vld [vmem:[#allocation2 + $0x23] sm:$0xff] }
  0x65   :  { %143 = vst.msk [vmem:[#allocation2 + $0x2b] sm:$0xff] %vm137_vm1, %v85_v19  ;;  %v322_v62 = vmul.f32 %v5556_v42, %v305_v48 }
  0x6c   :  { %v100_v20 = vpop.permute.xlu2 %99  ;;  %v159_v25 = vld [vmem:[#allocation2 + $0x28] sm:$0xff] }
  0x6d   :  { %146 = vst.msk [vmem:[#allocation2 + $0x43] sm:$0xff] %vm137_vm1, %v100_v20  ;;  %v208_v26 = vld [vmem:[#allocation2 + $0x29] sm:$0xff]  ;;  %v176_v29 = vmul.f32 %v5544_v27, %v159_v25 }
  0x6e   :  { %v225_v30 = vmul.f32 %v5546_v28, %v208_v26  ;;  %v257_v31 = vld [vmem:[#allocation2 + $0x2a] sm:$0xff] }
  0x6f   :  { %v274_v35 = vmul.f32 %v5551_v32, %v257_v31  ;;  %v306_v36 = vld [vmem:[#allocation2 + $0x2b] sm:$0xff] }
  0x70   :  { %v241_v34 = vadd.f32 %v225_v30, %v176_v29  ;;  %v323_v50 = vmul.f32 %v5556_v42, %v306_v36  ;;  %v354_v51 = vld [vmem:[#allocation2 + $0x24] sm:$0xff] }
  0x71   :  { %v403_v52 = vld [vmem:[#allocation2 + $0x25] sm:$0xff]  ;;  %v5573_v63 = vmul.f32 %v5562_v45, %v354_v51 }
  0x72   :  { %v290_v49 = vadd.f32 %v274_v35, %v241_v34  ;;  %v452_v55 = vld [vmem:[#allocation2 + $0x26] sm:$0xff]  ;;  %v5576_v0 = vmul.f32 %v5564_v46, %v403_v52 }
  0x73   :  { %v5585_v4 = vmul.f32 %v5566_v47, %v452_v55 }
  0x74   :  { %v115_v22 = vpop.permute.xlu2 %114  ;;  %v309_v56 = vld [vmem:[#allocation2 + $0x43] sm:$0xff]  ;;  %v5578_v1 = vadd.f32 %v323_v50, %v290_v49 }
  0x75   :  { %149 = vst.msk [vmem:[#allocation2 + $0x5b] sm:$0xff] %vm137_vm1, %v115_v22  ;;  %v70_v23 = vpop.permute.xlu1 %69  ;;  %v60_v24 = vpop.permute.xlu0 %59  ;;  %v5581_v2 = vmul.f32 %v5556_v42, %v309_v56 }
  0x76   :  { %140 = vst.msk [vmem:[#allocation2 + $0x13] sm:$0xff] %vm137_vm1, %v70_v23 }
  0x77   :  { %138 = vst.msk [vmem:[#allocation2 + $0x3] sm:$0xff] %vm137_vm1, %v60_v24 }
  0x7c   :  { %v130_v33 = vpop.permute.xlu2 %129  ;;  %v312_v58 = vld [vmem:[#allocation2 + $0x5b] sm:$0xff] }
  0x7d   :  { %152 = vst.msk [vmem:[#allocation2 + $0x73] sm:$0xff] %vm137_vm1, %v130_v33  ;;  %v75_v37 = vpop.permute.xlu1 %74  ;;  %v65_v38 = vpop.permute.xlu0 %64  ;;  %v303_v60 = vld [vmem:[#allocation2 + $0x13] sm:$0xff]  ;;  %v5588_v10 = vmul.f32 %v5556_v42, %v312_v58 }
  0x7e   :  { %v154_v39 = vld [vmem:[#allocation2] sm:$0xff]  ;;  %141 = vst.msk [vmem:[#allocation2 + $0x1b] sm:$0xff] %vm137_vm1, %v75_v37  ;;  %v5599_v24 = vmul.f32 %v5556_v42, %v303_v60 }
  0x7f   :  { %v203_v40 = vld [vmem:[#allocation2 + $0x1] sm:$0xff]  ;;  %v171_v43 = vmul.f32 %v5544_v27, %v154_v39  ;;  %565 = vst.msk [vmem:[#allocation2] sm:$0x1] %vm564_vm2, %v5425_v17 }
  0x80   :  { %v252_v41 = vld [vmem:[#allocation2 + $0x2] sm:$0xff]  ;;  %v220_v44 = vmul.f32 %v5546_v28, %v203_v40  ;;  %139 = vst.msk [vmem:[#allocation2 + $0xb] sm:$0xff] %vm137_vm1, %v65_v38 }
  0x81   :  { %v269_v54 = vmul.f32 %v5551_v32, %v252_v41  ;;  %v301_v57 = vld [vmem:[#allocation2 + $0x3] sm:$0xff] }
  0x82   :  { %v236_v53 = vadd.f32 %v220_v44, %v171_v43  ;;  %v318_v3 = vmul.f32 %v5556_v42, %v301_v57 }
  0x84   :  { %v285_v59 = vadd.f32 %v269_v54, %v236_v53  ;;  %v315_v61 = vld [vmem:[#allocation2 + $0x73] sm:$0xff] }
  0x85   :  { %v157_v5 = vld [vmem:[#allocation2 + $0x18] sm:$0xff]  ;;  %v158_v6 = vld [vmem:[#allocation2 + $0x20] sm:$0xff]  ;;  %v95_v8 = vpop.permute.xlu1 %94  ;;  %v90_v9 = vpop.permute.xlu0 %89  ;;  %v5595_v19 = vmul.f32 %v5556_v42, %v315_v61 }
  0x86   :  { %v206_v7 = vld [vmem:[#allocation2 + $0x19] sm:$0xff]  ;;  %v174_v11 = vmul.f32 %v5544_v27, %v157_v5  ;;  %v175_v12 = vmul.f32 %v5544_v27, %v158_v6  ;;  %v207_v13 = vld [vmem:[#allocation2 + $0x21] sm:$0xff]  ;;  %145 = vst.msk [vmem:[#allocation2 + $0x3b] sm:$0xff] %vm137_vm1, %v95_v8  ;;  %v334_v18 = vadd.f32 %v318_v3, %v285_v59 }
  0x87   :  { %v223_v14 = vmul.f32 %v5546_v28, %v206_v7  ;;  %v255_v15 = vld [vmem:[#allocation2 + $0x1a] sm:$0xff]  ;;  %v256_v16 = vld [vmem:[#allocation2 + $0x22] sm:$0xff]  ;;  %v224_v20 = vmul.f32 %v5546_v28, %v207_v13  ;;  %144 = vst.msk [vmem:[#allocation2 + $0x33] sm:$0xff] %vm137_vm1, %v90_v9  ;;  %v156_v41 = vld [vmem:[#allocation2 + $0x10] sm:$0xff] }
  0x88   :  { %v304_v21 = vld [vmem:[#allocation2 + $0x1b] sm:$0xff]  ;;  %v272_v26 = vmul.f32 %v5551_v32, %v255_v15  ;;  %v273_v29 = vmul.f32 %v5551_v32, %v256_v16  ;;  %v155_v40 = vld [vmem:[#allocation2 + $0x8] sm:$0xff]  ;;  %v173_v49 = vmul.f32 %v5544_v27, %v156_v41  ;;  %v205_v51 = vld [vmem:[#allocation2 + $0x11] sm:$0xff] }
  0x89   :  { %v352_v22 = vld [vmem:[#allocation2 + $0x14] sm:$0xff]  ;;  %v353_v23 = vld [vmem:[#allocation2 + $0x1c] sm:$0xff]  ;;  %v239_v25 = vadd.f32 %v223_v14, %v174_v11  ;;  %v321_v30 = vmul.f32 %v5556_v42, %v304_v21  ;;  %v240_v35 = vadd.f32 %v224_v20, %v175_v12  ;;  %v172_v48 = vmul.f32 %v5544_v27, %v155_v40  ;;  %v204_v50 = vld [vmem:[#allocation2 + $0x9] sm:$0xff] }
  0x8a   :  { %v401_v31 = vld [vmem:[#allocation2 + $0x15] sm:$0xff]  ;;  %v402_v33 = vld [vmem:[#allocation2 + $0x1d] sm:$0xff]  ;;  %v370_v36 = vmul.f32 %v5562_v45, %v353_v23  ;;  %v369_v39 = vmul.f32 %v5562_v45, %v352_v22  ;;  %v253_v52 = vld [vmem:[#allocation2 + $0xa] sm:$0xff]  ;;  %v221_v55 = vmul.f32 %v5546_v28, %v204_v50  ;;  %v222_v56 = vmul.f32 %v5546_v28, %v205_v51 }
  0x8b   :  { %v450_v34 = vld [vmem:[#allocation2 + $0x16] sm:$0xff]  ;;  %v419_v37 = vmul.f32 %v5564_v46, %v402_v33  ;;  %v451_v38 = vld [vmem:[#allocation2 + $0x1e] sm:$0xff]  ;;  %v288_v43 = vadd.f32 %v272_v26, %v239_v25  ;;  %v5609_v44 = vmul.f32 %v5564_v46, %v401_v31  ;;  %v289_v53 = vadd.f32 %v273_v29, %v240_v35  ;;  %v302_v58 = vld [vmem:[#allocation2 + $0xb] sm:$0xff] }
  0x8c   :  { %v5614_v54 = vmul.f32 %v5566_v47, %v450_v34  ;;  %v254_v57 = vld [vmem:[#allocation2 + $0x12] sm:$0xff]  ;;  %v350_v59 = vld [vmem:[#allocation2 + $0x4] sm:$0xff]  ;;  %v468_v61 = vmul.f32 %v5566_v47, %v451_v38  ;;  %v270_v3 = vmul.f32 %v5551_v32, %v253_v52  ;;  %v237_v9 = vadd.f32 %v221_v55, %v172_v48  ;;  %v5631_v34 = vld [vmem:[%s7173_s2] ss:$0 sm:$0xff] }
  0x8d   :  { %v337_v60 = vadd.f32 %v321_v30, %v288_v43  ;;  %v351_v5 = vld [vmem:[#allocation2 + $0xc] sm:$0xff]  ;;  %v367_v6 = vmul.f32 %v5562_v45, %v350_v59  ;;  %v338_v8 = vadd.f32 %v322_v62, %v289_v53  ;;  %v238_v11 = vadd.f32 %v222_v56, %v173_v49  ;;  %v162_v14 = vld [vmem:[#allocation2 + $0x40] sm:$0xff]  ;;  %v110_v15 = vpop.permute.xlu1 %109  ;;  %v105_v16 = vpop.permute.xlu0 %104 }
  0x8e   :  { %v399_v7 = vld [vmem:[#allocation2 + $0x5] sm:$0xff]  ;;  %v271_v12 = vmul.f32 %v5551_v32, %v254_v57  ;;  %v319_v21 = vmul.f32 %v5556_v42, %v302_v58  ;;  %148 = vst.msk [vmem:[#allocation2 + $0x53] sm:$0xff] %vm137_vm1, %v110_v15  ;;  %v286_v62 = vadd.f32 %v270_v3, %v237_v9  ;;  %v368_v30 = vmul.f32 %v5562_v45, %v351_v5  ;;  %v400_v31 = vld [vmem:[#allocation2 + $0xd] sm:$0xff]  ;;  %v308_v49 = vld [vmem:[#allocation2 + $0x3b] sm:$0xff] }
  0x8f   :  { %v448_v13 = vld [vmem:[#allocation2 + $0x6] sm:$0xff]  ;;  %v386_v20 = vadd.f32 %v370_v36, %v337_v60  ;;  %v383_v22 = vadd.f32 %v367_v6, %v334_v18  ;;  %v416_v23 = vmul.f32 %v5564_v46, %v399_v7  ;;  %v387_v26 = vadd.f32 %v5573_v63, %v338_v8  ;;  %147 = vst.msk [vmem:[#allocation2 + $0x4b] sm:$0xff] %vm137_vm1, %v105_v16  ;;  %v449_v43 = vld [vmem:[#allocation2 + $0xe] sm:$0xff]  ;;  %v357_v6 = vld [vmem:[#allocation2 + $0x3c] sm:$0xff] }
  0x90   :  { %v211_v25 = vld [vmem:[#allocation2 + $0x41] sm:$0xff]  ;;  %v287_v29 = vadd.f32 %v271_v12, %v238_v11  ;;  %v465_v36 = vmul.f32 %v5566_v47, %v448_v13  ;;  %v179_v38 = vmul.f32 %v5544_v27, %v162_v14  ;;  %v335_v40 = vadd.f32 %v319_v21, %v286_v62  ;;  %v160_v7 = vld [vmem:[#allocation2 + $0x30] sm:$0xff]  ;;  %v161_v15 = vld [vmem:[#allocation2 + $0x38] sm:$0xff] }
  0x91   :  { %v260_v33 = vld [vmem:[#allocation2 + $0x42] sm:$0xff]  ;;  %v435_v18 = vadd.f32 %v419_v37, %v386_v20  ;;  %v432_v35 = vadd.f32 %v416_v23, %v383_v22  ;;  %v436_v63 = vadd.f32 %v5576_v0, %v387_v26  ;;  %v228_v48 = vmul.f32 %v5546_v28, %v211_v25  ;;  %v209_v16 = vld [vmem:[#allocation2 + $0x31] sm:$0xff]  ;;  %v210_v20 = vld [vmem:[#allocation2 + $0x39] sm:$0xff] }
  0x92   :  { %v336_v41 = vadd.f32 %v5599_v24, %v287_v29  ;;  %v417_v51 = vmul.f32 %v5564_v46, %v400_v31  ;;  %v277_v37 = vmul.f32 %v5551_v32, %v260_v33  ;;  %v384_v55 = vadd.f32 %v368_v30, %v335_v40  ;;  %v258_v30 = vld [vmem:[#allocation2 + $0x32] sm:$0xff]  ;;  %v259_v31 = vld [vmem:[#allocation2 + $0x3a] sm:$0xff] }
  0x93   :  { %v484_v50 = vadd.f32 %v468_v61, %v435_v18  ;;  %v481_v52 = vadd.f32 %v465_v36, %v432_v35  ;;  %v485_v53 = vadd.f32 %v5585_v4, %v436_v63  ;;  %v244_v57 = vadd.f32 %v228_v48, %v179_v38  ;;  %v406_v4 = vld [vmem:[#allocation2 + $0x3d] sm:$0xff]  ;;  %v307_v38 = vld [vmem:[#allocation2 + $0x33] sm:$0xff] }
  0x94   :  { %v385_v56 = vadd.f32 %v369_v39, %v336_v41  ;;  %v466_v58 = vmul.f32 %v5566_v47, %v449_v43  ;;  %v5645_v59 = vmul.f32 %v5556_v42, %v308_v49  ;;  %v433_v61 = vadd.f32 %v417_v51, %v384_v55  ;;  %v355_v63 = vld [vmem:[#allocation2 + $0x2c] sm:$0xff]  ;;  %v356_v40 = vld [vmem:[#allocation2 + $0x34] sm:$0xff] }
  0x95   :  { %v503_v0 = vadd.f32 %v5631_v34, %v484_v50  ;;  %v500_v24 = vadd.f32 %v5631_v34, %v481_v52  ;;  %v504_v60 = vadd.f32 %v5631_v34, %v485_v53  ;;  %v293_v5 = vadd.f32 %v277_v37, %v244_v57  ;;  %v125_v39 = vpop.permute.xlu1 %124  ;;  %v120_v8 = vpop.permute.xlu0 %119  ;;  %v404_v51 = vld [vmem:[#allocation2 + $0x2d] sm:$0xff]  ;;  %v405_v52 = vld [vmem:[#allocation2 + $0x35] sm:$0xff] }
  0x96   :  { %v434_v3 = vadd.f32 %v5609_v44, %v385_v56  ;;  %v482_v13 = vadd.f32 %v466_v58, %v433_v61  ;;  %v5651_v22 = vmul.f32 %v5562_v45, %v357_v6  ;;  %v5654_v23 = vmul.f32 %v5564_v46, %v406_v4  ;;  %151 = vst.msk [vmem:[#allocation2 + $0x6b] sm:$0xff] %vm137_vm1, %v125_v39  ;;  %v165_v37 = vld [vmem:[#allocation2 + $0x58] sm:$0xff] }
  0x97   :  { %vm519_vm3 = vcmp.gt.f32.partialorder %v503_v0, 0.0  ;;  %v535_v9 = vmul.f32 0.2, %v503_v0  ;;  %vm516_vm4 = vcmp.gt.f32.partialorder %v500_v24, 0.0  ;;  %v532_v11 = vmul.f32 0.2, %v500_v24 }
  0x98   :  { %vm520_vm5 = vcmp.gt.f32.partialorder %v504_v60, 0.0  ;;  %v536_v12 = vmul.f32 0.2, %v504_v60  ;;  %v483_v14 = vadd.f32 %v5614_v54, %v434_v3  ;;  %v501_v26 = vadd.f32 %v5631_v34, %v482_v13  ;;  %v455_v54 = vld [vmem:[#allocation2 + $0x3e] sm:$0xff]  ;;  %150 = vst.msk [vmem:[#allocation2 + $0x63] sm:$0xff] %vm137_vm1, %v120_v8  ;;  %v454_v6 = vld [vmem:[#allocation2 + $0x36] sm:$0xff] }
  0x99   :  { %v551_v21 = vsel %vm519_vm3, %v503_v0, %v535_v9  ;;  %v548_v44 = vsel %vm516_vm4, %v500_v24, %v532_v11  ;;  %v177_v29 = vmul.f32 %v5544_v27, %v160_v7  ;;  %v5663_v33 = vadd.f32 %v5581_v2, %v293_v5  ;;  %v453_v0 = vld [vmem:[#allocation2 + $0x2e] sm:$0xff]  ;;  %v214_v58 = vld [vmem:[#allocation2 + $0x59] sm:$0xff] }
  0x9a   :  { %v552_v25 = vsel %vm520_vm5, %v504_v60, %v536_v12  ;;  %v502_v62 = vadd.f32 %v5631_v34, %v483_v14  ;;  %567 = vst.msk [vmem:[#allocation2 + $0x1] sm:$0xff] %vm137_vm1, %v548_v44  ;;  %v178_v18 = vmul.f32 %v5544_v27, %v161_v15  ;;  %v226_v35 = vmul.f32 %v5546_v28, %v209_v16  ;;  %v263_v4 = vld [vmem:[#allocation2 + $0x5a] sm:$0xff]  ;;  %v212_v44 = vld [vmem:[#allocation2 + $0x49] sm:$0xff] }
  0x9b   :  { %571 = vst.msk [vmem:[#allocation2 + $0x21] sm:$0xff] %vm137_vm1, %v552_v25  ;;  %v227_v36 = vmul.f32 %v5546_v28, %v210_v20  ;;  %vm517_vm6 = vcmp.gt.f32.partialorder %v501_v26, 0.0  ;;  %v533_v41 = vmul.f32 0.2, %v501_v26  ;;  %v275_v2 = vmul.f32 %v5551_v32, %v258_v30  ;;  %v311_v7 = vld [vmem:[#allocation2 + $0x53] sm:$0xff]  ;;  %v163_v20 = vld [vmem:[#allocation2 + $0x48] sm:$0xff] }
  0x9c   :  { %vm518_vm7 = vcmp.gt.f32.partialorder %v502_v62, 0.0  ;;  %v534_v43 = vmul.f32 0.2, %v502_v62  ;;  %570 = vst.msk [vmem:[#allocation2 + $0x19] sm:$0xff] %vm137_vm1, %v551_v21  ;;  %v242_v48 = vadd.f32 %v226_v35, %v177_v29  ;;  %v276_v50 = vmul.f32 %v5551_v32, %v259_v31  ;;  %v409_v12 = vld [vmem:[#allocation2 + $0x55] sm:$0xff]  ;;  %v261_v35 = vld [vmem:[#allocation2 + $0x4a] sm:$0xff] }
  0x9d   :  { %v243_v49 = vadd.f32 %v227_v36, %v178_v18  ;;  %v549_v53 = vsel %vm517_vm6, %v501_v26, %v533_v41  ;;  %v472_v56 = vmul.f32 %v5566_v47, %v455_v54  ;;  %v372_v57 = vmul.f32 %v5562_v45, %v355_v63  ;;  %v135_v24 = vpop.permute.xlu0 %134  ;;  %v164_v21 = vld [vmem:[#allocation2 + $0x50] sm:$0xff] }
  0x9e   :  { %v550_v55 = vsel %vm518_vm7, %v502_v62, %v534_v43  ;;  %568 = vst.msk [vmem:[#allocation2 + $0x9] sm:$0xff] %vm137_vm1, %v549_v53  ;;  %v291_v60 = vadd.f32 %v275_v2, %v242_v48  ;;  %v324_v3 = vmul.f32 %v5556_v42, %v307_v38  ;;  %v373_v5 = vmul.f32 %v5562_v45, %v356_v40  ;;  %v360_v54 = vld [vmem:[#allocation2 + $0x54] sm:$0xff]  ;;  %v310_v2 = vld [vmem:[#allocation2 + $0x4b] sm:$0xff] }
  0x9f   :  { %v292_v61 = vadd.f32 %v276_v50, %v243_v49  ;;  %569 = vst.msk [vmem:[#allocation2 + $0x11] sm:$0xff] %vm137_vm1, %v550_v55  ;;  %v388_v39 = vadd.f32 %v372_v57, %v5578_v1  ;;  %v421_v9 = vmul.f32 %v5564_v46, %v404_v51  ;;  %v422_v8 = vmul.f32 %v5564_v46, %v405_v52  ;;  %v213_v29 = vld [vmem:[#allocation2 + $0x51] sm:$0xff]  ;;  %v358_v55 = vld [vmem:[#allocation2 + $0x44] sm:$0xff] }
  0xa0   :  { %v182_v11 = vmul.f32 %v5544_v27, %v165_v37  ;;  %v340_v13 = vadd.f32 %v324_v3, %v291_v60  ;;  %v470_v15 = vmul.f32 %v5566_v47, %v453_v0  ;;  %v231_v16 = vmul.f32 %v5546_v28, %v214_v58  ;;  %153 = vst.msk [vmem:[#allocation2 + $0x7b] sm:$0xff] %vm137_vm1, %v135_v24  ;;  %v262_v41 = vld [vmem:[#allocation2 + $0x52] sm:$0xff]  ;;  %v407_v60 = vld [vmem:[#allocation2 + $0x45] sm:$0xff] }
  0xa1   :  { %v341_v14 = vadd.f32 %v5645_v59, %v292_v61  ;;  %v437_v1 = vadd.f32 %v421_v9, %v388_v39  ;;  %v471_v25 = vmul.f32 %v5566_v47, %v454_v6  ;;  %v280_v26 = vmul.f32 %v5551_v32, %v263_v4  ;;  %v359_v24 = vld [vmem:[#allocation2 + $0x4c] sm:$0xff] }
  0xa2   :  { %v328_v62 = vmul.f32 %v5556_v42, %v311_v7  ;;  %v389_v30 = vadd.f32 %v373_v5, %v340_v13  ;;  %v247_v31 = vadd.f32 %v231_v16, %v182_v11  ;;  %v5691_v18 = vmul.f32 %v5564_v46, %v409_v12  ;;  %v408_v9 = vld [vmem:[#allocation2 + $0x4d] sm:$0xff] }
  0xa3   :  { %v390_v59 = vadd.f32 %v5651_v22, %v341_v14  ;;  %v486_v36 = vadd.f32 %v470_v15, %v437_v1  ;;  %v180_v38 = vmul.f32 %v5544_v27, %v163_v20  ;;  %v181_v63 = vmul.f32 %v5544_v27, %v164_v21  ;;  %v456_v14 = vld [vmem:[#allocation2 + $0x46] sm:$0xff]  ;;  %v457_v15 = vld [vmem:[#allocation2 + $0x4e] sm:$0xff] }
  0xa4   :  { %v229_v40 = vmul.f32 %v5546_v28, %v212_v44  ;;  %v438_v43 = vadd.f32 %v422_v8, %v389_v30  ;;  %v377_v49 = vmul.f32 %v5562_v45, %v360_v54  ;;  %v230_v22 = vmul.f32 %v5546_v28, %v213_v29  ;;  %v168_v16 = vld [vmem:[#allocation2 + $0x70] sm:$0xff] }
  0xa5   :  { %v439_v48 = vadd.f32 %v5654_v23, %v390_v59  ;;  %v5699_v50 = vld [vmem:[#allocation2] ss:$2 sm:$0xff]  ;;  %v505_v51 = vadd.f32 %v5631_v34, %v486_v36  ;;  %v296_v52 = vadd.f32 %v280_v26, %v247_v31  ;;  %v278_v53 = vmul.f32 %v5551_v32, %v261_v35  ;;  %v217_v54 = vld [vmem:[#allocation2 + $0x71] sm:$0xff] }
  0xa6   :  { %v245_v37 = vadd.f32 %v229_v40, %v180_v38  ;;  %893 = vst.msk [vmem:[#allocation2] sm:$0x1] %vm564_vm2, %v5425_v17  ;;  %v487_v57 = vadd.f32 %v471_v25, %v438_v43  ;;  %v246_v23 = vadd.f32 %v230_v22, %v181_v63  ;;  %v279_v58 = vmul.f32 %v5551_v32, %v262_v41  ;;  %v266_v29 = vld [vmem:[#allocation2 + $0x72] sm:$0xff]  ;;  %v166_v63 = vld [vmem:[#allocation2 + $0x60] sm:$0xff]  ;;  %v167_v40 = vld [vmem:[#allocation2 + $0x68] sm:$0xff] }
  0xa7   :  { %v488_v0 = vadd.f32 %v472_v56, %v439_v48  ;;  %vm521_vm8 = vcmp.gt.f32.partialorder %v505_v51, 0.0  ;;  %v537_v61 = vmul.f32 0.2, %v505_v51  ;;  %v327_v5 = vmul.f32 %v5556_v42, %v310_v2  ;;  %v458_v56 = vld [vmem:[#allocation2 + $0x56] sm:$0xff]  ;;  %v314_v30 = vld [vmem:[#allocation2 + $0x6b] sm:$0xff]  ;;  %v215_v48 = vld [vmem:[#allocation2 + $0x61] sm:$0xff] }
  0xa8   :  { %v294_v3 = vadd.f32 %v278_v53, %v245_v37  ;;  %v506_v6 = vadd.f32 %v5631_v34, %v487_v57  ;;  %v295_v7 = vadd.f32 %v279_v58, %v246_v23  ;;  %v375_v39 = vmul.f32 %v5562_v45, %v358_v55  ;;  %v412_v38 = vld [vmem:[#allocation2 + $0x6d] sm:$0xff]  ;;  %v5719_v22 = vld [vmem:[#allocation2 + $0x7a] sm:$0xff] }
  0xa9   :  { %v507_v4 = vadd.f32 %v5631_v34, %v488_v0  ;;  %v553_v8 = vsel %vm521_vm8, %v505_v51, %v537_v61  ;;  %v376_v12 = vmul.f32 %v5562_v45, %v359_v24  ;;  %v424_v13 = vmul.f32 %v5564_v46, %v407_v60  ;;  %v5721_v2 = vld [vmem:[#allocation2 + $0x7b] sm:$0xff] }
  0xaa   :  { %v343_v11 = vadd.f32 %v327_v5, %v294_v3  ;;  %vm522_vm9 = vcmp.gt.f32.partialorder %v506_v6, 0.0  ;;  %v538_v20 = vmul.f32 0.2, %v506_v6  ;;  %572 = vst.msk [vmem:[#allocation2 + $0x29] sm:$0xff] %vm137_vm1, %v553_v8  ;;  %v344_v44 = vadd.f32 %v328_v62, %v295_v7  ;;  %v5730_v55 = vld [vmem:[#allocation2 + $0x7c] sm:$0xff]  ;;  %v265_v8 = vld [vmem:[#allocation2 + $0x6a] sm:$0xff] }
  0xab   :  { %vm523_vm10 = vcmp.gt.f32.partialorder %v507_v4, 0.0  ;;  %v539_v21 = vmul.f32 0.2, %v507_v4  ;;  %v391_v1 = vadd.f32 %v375_v39, %v5663_v33  ;;  %v425_v26 = vmul.f32 %v5564_v46, %v408_v9  ;;  %v5732_v57 = vld [vmem:[#allocation2 + $0x7d] sm:$0xff] }
  0xac   :  { %v392_v25 = vadd.f32 %v376_v12, %v343_v11  ;;  %v554_v59 = vsel %vm522_vm9, %v506_v6, %v538_v20  ;;  %v473_v35 = vmul.f32 %v5566_v47, %v456_v14  ;;  %v474_v36 = vmul.f32 %v5566_v47, %v457_v15  ;;  %v5734_v0 = vld [vmem:[#allocation2 + $0x7e] sm:$0xff] }
  0xad   :  { %v555_v31 = vsel %vm523_vm10, %v507_v4, %v539_v21  ;;  %573 = vst.msk [vmem:[#allocation2 + $0x31] sm:$0xff] %vm137_vm1, %v554_v59  ;;  %v393_v62 = vadd.f32 %v377_v49, %v344_v44  ;;  %v440_v41 = vadd.f32 %v424_v13, %v391_v1  ;;  %v185_v43 = vmul.f32 %v5544_v27, %v168_v16  ;;  %v264_v61 = vld [vmem:[#allocation2 + $0x62] sm:$0xff]  ;;  %v363_v44 = vld [vmem:[#allocation2 + $0x6c] sm:$0xff] }
  0xae   :  { %v441_v33 = vadd.f32 %v425_v26, %v392_v25  ;;  %574 = vst.msk [vmem:[#allocation2 + $0x39] sm:$0xff] %vm137_vm1, %v555_v31  ;;  %v5725_v51 = vadd.f32 %v5588_v10, %v296_v52  ;;  %v475_v37 = vmul.f32 %v5566_v47, %v458_v56  ;;  %v234_v53 = vmul.f32 %v5546_v28, %v217_v54  ;;  %v461_v10 = vld [vmem:[#allocation2 + $0x6e] sm:$0xff]  ;;  %v313_v14 = vld [vmem:[#allocation2 + $0x63] sm:$0xff] }
  0xaf   :  { %v283_v49 = vmul.f32 %v5551_v32, %v266_v29  ;;  %v442_v23 = vadd.f32 %v5691_v18, %v393_v62  ;;  %v489_v58 = vadd.f32 %v473_v35, %v440_v41  ;;  %v331_v60 = vmul.f32 %v5556_v42, %v314_v30  ;;  %v216_v52 = vld [vmem:[#allocation2 + $0x69] sm:$0xff]  ;;  %566 = vst.msk [vmem:[#allocation2 + $0x81] sm:$0x1] %vm564_vm2, %v5425_v17  ;;  %v361_v20 = vld [vmem:[#allocation2 + $0x5c] sm:$0xff] }
  0xb0   :  { %v490_v24 = vadd.f32 %v474_v36, %v441_v33  ;;  %v250_v3 = vadd.f32 %v234_v53, %v185_v43  ;;  %v5741_v5 = vmul.f32 %v5564_v46, %v412_v38  ;;  %v183_v6 = vmul.f32 %v5544_v27, %v166_v63  ;;  %1329 = vst.msk [vmem:[#allocation2 + $0x83] sm:$0x7] %vm38_vm0, %v5425_v17  ;;  %v362_v54 = vld [vmem:[#allocation2 + $0x64] sm:$0xff]  ;;  %v169_v41 = vld [vmem:[#allocation2 + $0x78] sm:$0xff] }
  0xb1   :  { %v184_v4 = vmul.f32 %v5544_v27, %v167_v40  ;;  %v491_v18 = vadd.f32 %v475_v37, %v442_v23  ;;  %v508_v7 = vadd.f32 %v5631_v34, %v489_v58  ;;  %v232_v9 = vmul.f32 %v5546_v28, %v215_v48  ;;  %v410_v31 = vld [vmem:[#allocation2 + $0x5d] sm:$0xff]  ;;  %v411_v35 = vld [vmem:[#allocation2 + $0x65] sm:$0xff] }
  0xb2   :  { %v509_v39 = vadd.f32 %v5631_v34, %v490_v24  ;;  %v299_v56 = vadd.f32 %v283_v49, %v250_v3  ;;  %v5751_v11 = vmul.f32 %v5566_v47, %v461_v10  ;;  %v233_v12 = vmul.f32 %v5546_v28, %v216_v52  ;;  %v459_v62 = vld [vmem:[#allocation2 + $0x5e] sm:$0xff]  ;;  %v460_v49 = vld [vmem:[#allocation2 + $0x66] sm:$0xff]  ;;  %v364_v52 = vld [vmem:[#allocation2 + $0x74] sm:$0xff] }
  0xb3   :  { %v281_v13 = vmul.f32 %v5551_v32, %v264_v61  ;;  %v510_v15 = vadd.f32 %v5631_v34, %v491_v18  ;;  %vm524_vm11 = vcmp.gt.f32.partialorder %v508_v7, 0.0  ;;  %v540_v16 = vmul.f32 0.2, %v508_v7  ;;  %v218_v33 = vld [vmem:[#allocation2 + $0x79] sm:$0xff] }
  0xb4   :  { %vm525_vm12 = vcmp.gt.f32.partialorder %v509_v39, 0.0  ;;  %v541_v21 = vmul.f32 0.2, %v509_v39  ;;  %v248_v1 = vadd.f32 %v232_v9, %v183_v6  ;;  %v249_v25 = vadd.f32 %v233_v12, %v184_v4  ;;  %v413_v9 = vld [vmem:[#allocation2 + $0x75] sm:$0xff] }
  0xb5   :  { %v282_v26 = vmul.f32 %v5551_v32, %v265_v8  ;;  %vm526_vm13 = vcmp.gt.f32.partialorder %v510_v15, 0.0  ;;  %v542_v29 = vmul.f32 0.2, %v510_v15  ;;  %v556_v30 = vsel %vm524_vm11, %v508_v7, %v540_v16 }
  0xb6   :  { %v330_v59 = vmul.f32 %v5556_v42, %v313_v14  ;;  %v557_v36 = vsel %vm525_vm12, %v509_v39, %v541_v21  ;;  %575 = vst.msk [vmem:[#allocation2 + $0x41] sm:$0xff] %vm137_vm1, %v556_v30  ;;  %v297_v38 = vadd.f32 %v281_v13, %v248_v1  ;;  %v378_v40 = vmul.f32 %v5562_v45, %v361_v20  ;;  %v631_v13 = vld [vmem:[#allocation2 + $0x3] ss:$2 sm:$0xff]  ;;  %v633_v14 = vld [vmem:[#allocation2 + $0x13] ss:$2 sm:$0xff] }
  0xb7   :  { %v298_v63 = vadd.f32 %v282_v26, %v249_v25  ;;  %v558_v43 = vsel %vm526_vm13, %v510_v15, %v542_v29  ;;  %576 = vst.msk [vmem:[#allocation2 + $0x49] sm:$0xff] %vm137_vm1, %v557_v36  ;;  %v348_v48 = vadd.f32 %v5595_v19, %v299_v56  ;;  %v380_v37 = vmul.f32 %v5562_v45, %v363_v44  ;;  %v615_v15 = vld [vmem:[#allocation2 + $0x2] ss:$2 sm:$0xff]  ;;  %v617_v1 = vld [vmem:[#allocation2 + $0x12] ss:$2 sm:$0xff] }
  0xb8   :  { %v379_v53 = vmul.f32 %v5562_v45, %v362_v54  ;;  %577 = vst.msk [vmem:[#allocation2 + $0x51] sm:$0xff] %vm137_vm1, %v558_v43  ;;  %v346_v23 = vadd.f32 %v330_v59, %v297_v38  ;;  %v394_v24 = vadd.f32 %v378_v40, %v5725_v51  ;;  %v427_v10 = vmul.f32 %v5564_v46, %v410_v31  ;;  %v599_v25 = vld [vmem:[#allocation2 + $0x1] ss:$2 sm:$0xff]  ;;  %v601_v26 = vld [vmem:[#allocation2 + $0x11] ss:$2 sm:$0xff] }
  0xb9   :  { %v347_v58 = vadd.f32 %v331_v60, %v298_v63  ;;  %v428_v61 = vmul.f32 %v5564_v46, %v411_v35  ;;  %v476_v3 = vmul.f32 %v5566_v47, %v459_v62  ;;  %v186_v19 = vmul.f32 %v5544_v27, %v169_v41  ;;  %v462_v60 = vld [vmem:[#allocation2 + $0x76] sm:$0xff] }
  0xba   :  { %v235_v6 = vmul.f32 %v5546_v28, %v218_v33  ;;  %v395_v4 = vadd.f32 %v379_v53, %v346_v23  ;;  %v443_v7 = vadd.f32 %v427_v10, %v394_v24  ;;  %v477_v39 = vmul.f32 %v5566_v47, %v460_v49  ;;  %v605_v53 = vld [vmem:[#allocation2 + $0x31] ss:$2 sm:$0xff] }
  0xbb   :  { %v396_v18 = vadd.f32 %v380_v37, %v347_v58  ;;  %v284_v51 = vmul.f32 %v5551_v32, %v5719_v22  ;;  %v333_v56 = vmul.f32 %v5556_v42, %v5721_v2  ;;  %v381_v12 = vmul.f32 %v5562_v45, %v364_v52  ;;  %v621_v37 = vld [vmem:[#allocation2 + $0x32] ss:$2 sm:$0xff]  ;;  %v619_v52 = vld [vmem:[#allocation2 + $0x22] ss:$2 sm:$0xff] }
  0xbc   :  { %v251_v8 = vadd.f32 %v235_v6, %v186_v19  ;;  %v444_v16 = vadd.f32 %v428_v61, %v395_v4  ;;  %v492_v21 = vadd.f32 %v476_v3, %v443_v7  ;;  %v382_v44 = vmul.f32 %v5562_v45, %v5730_v55  ;;  %v635_v61 = vld [vmem:[#allocation2 + $0x23] ss:$2 sm:$0xff] }
  0xbd   :  { %v445_v20 = vadd.f32 %v5741_v5, %v396_v18  ;;  %v397_v22 = vadd.f32 %v381_v12, %v348_v48  ;;  %v430_v29 = vmul.f32 %v5564_v46, %v413_v9  ;;  %v479_v2 = vmul.f32 %v5566_v47, %v462_v60  ;;  %v637_v5 = vld [vmem:[#allocation2 + $0x33] ss:$2 sm:$0xff] }
  0xbe   :  { %v300_v54 = vadd.f32 %v284_v51, %v251_v8  ;;  %v493_v30 = vadd.f32 %v477_v39, %v444_v16  ;;  %v511_v31 = vadd.f32 %v5631_v34, %v492_v21  ;;  %v5211_v35 = vpack.i.bf16 %v633_v14, %v631_v13  ;;  %v5784_v36 = vld [vmem:[#allocation2 + $0x41] ss:$2 sm:$0xff] }
  0xbf   :  { %v494_v59 = vadd.f32 %v5751_v11, %v445_v20  ;;  %v446_v55 = vadd.f32 %v430_v29, %v397_v22  ;;  %v5206_v63 = vpack.i.bf16 %v617_v1, %v615_v15  ;;  %v5201_v40 = vpack.i.bf16 %v601_v26, %v599_v25  ;;  %894 = vst.msk [vmem:[#allocation2 + $0x41] sm:$0x1] %vm564_vm2, %v5425_v17  ;;  %v603_v4 = vld [vmem:[#allocation2 + $0x21] ss:$2 sm:$0xff] }
  0xc0   :  { %v349_v38 = vadd.f32 %v333_v56, %v300_v54  ;;  %v512_v62 = vadd.f32 %v5631_v34, %v493_v30  ;;  %vm527_vm14 = vcmp.gt.f32.partialorder %v511_v31, 0.0  ;;  %v543_v33 = vmul.f32 0.2, %v511_v31  ;;  %5212 = vrot.lane.b32.xlu0 %v5211_v35, %s5426_s28  ;;  %v623_v56 = vld [vmem:[#allocation2 + $0x42] ss:$2 sm:$0xff]  ;;  %v5004_v30 = vld [vmem:[%s7176_s3 + $0x38] sm:$0xff] }
  0xc1   :  { %v513_v41 = vadd.f32 %v5631_v34, %v494_v59  ;;  %v431_v43 = vmul.f32 %v5564_v46, %v5732_v57  ;;  %v495_v48 = vadd.f32 %v479_v2, %v446_v55  ;;  %5207 = vrot.lane.b32.xlu2 %v5206_v63, %s5427_s29  ;;  %5202 = vrot.lane.b32.xlu1 %v5201_v40, %s5428_s30  ;;  %v639_v14 = vld [vmem:[#allocation2 + $0x43] ss:$2 sm:$0xff]  ;;  %vm750_vm6 = vcmask 523264  }
  0xc2   :  { %v398_v11 = vadd.f32 %v382_v44, %v349_v38  ;;  %vm528_vm15 = vcmp.gt.f32.partialorder %v512_v62, 0.0  ;;  %v544_v49 = vmul.f32 0.2, %v512_v62  ;;  %v559_v58 = vsel %vm527_vm14, %v511_v31, %v543_v33  ;;  %840 = vmatpush.bf16.msra.mxu0 %v5004_v30  ;;  %v5003_v59 = vld [vmem:[%s7176_s3 + $0x30] sm:$0xff]  ;;  %v5002_v31 = vld [vmem:[%s7176_s3 + $0x28] sm:$0xff]  ;;  %v5001_v35 = vld [vmem:[%s7176_s3 + $0x20] sm:$0xff] }
  0xc3   :  { %vm529_vm3 = vcmp.gt.f32.partialorder %v513_v41, 0.0  ;;  %v545_v23 = vmul.f32 0.2, %v513_v41  ;;  %v480_v10 = vmul.f32 %v5566_v47, %v5734_v0  ;;  %v514_v57 = vadd.f32 %v5631_v34, %v495_v48  ;;  %578 = vst.msk [vmem:[#allocation2 + $0x59] sm:$0xff] %vm137_vm1, %v559_v58  ;;  %v4998_v38 = vld [vmem:[%s7176_s3 + $0x8] sm:$0xff]  ;;  %v4997_v55 = vld [vmem:[%s7176_s3] sm:$0xff] }
  0xc4   :  { %v447_v24 = vadd.f32 %v431_v43, %v398_v11  ;;  %v560_v3 = vsel %vm528_vm15, %v512_v62, %v544_v49  ;;  %v5221_v6 = vpack.i.bf16 %v621_v37, %v619_v52  ;;  %v5226_v18 = vpack.i.bf16 %v637_v5, %v635_v61  ;;  %v5000_v5 = vld [vmem:[%s7176_s3 + $0x18] sm:$0xff] }
  0xc5   :  { %v561_v19 = vsel %vm529_vm3, %v513_v41, %v545_v23  ;;  %579 = vst.msk [vmem:[#allocation2 + $0x61] sm:$0xff] %vm137_vm1, %v560_v3  ;;  %vm530_vm4 = vcmp.gt.f32.partialorder %v514_v57, 0.0  ;;  %v546_v39 = vmul.f32 0.2, %v514_v57  ;;  %v5216_v9 = vpack.i.bf16 %v605_v53, %v603_v4  ;;  %v585_v48 = vld [vmem:[#allocation2 + $0x10] ss:$2 sm:$0xff] }
  0xc6   :  { %v496_v7 = vadd.f32 %v480_v10, %v447_v24  ;;  %580 = vst.msk [vmem:[#allocation2 + $0x69] sm:$0xff] %vm137_vm1, %v561_v19  ;;  %841 = vmatpush.bf16.msra.mxu0 %v5003_v59  ;;  %vm759_vm7 = vcmask 785408   ;;  %v587_v4 = vld [vmem:[#allocation2 + $0x20] ss:$2 sm:$0xff] }
  0xc7   :  { %v562_v60 = vsel %vm530_vm4, %v514_v57, %v546_v39 }
  0xc8   :  { %v515_v0 = vadd.f32 %v5631_v34, %v496_v7  ;;  %581 = vst.msk [vmem:[#allocation2 + $0x71] sm:$0xff] %vm137_vm1, %v562_v60  ;;  %5227 = vrot.lane.b32.xlu0 %v5226_v18, %s5426_s28 }
  0xc9   :  { %5222 = vrot.lane.b32.xlu2 %v5221_v6, %s5427_s29  ;;  %5217 = vrot.lane.b32.xlu1 %v5216_v9, %s5428_s30 }
  0xca   :  { %vm531_vm5 = vcmp.gt.f32.partialorder %v515_v0, 0.0  ;;  %v547_v8 = vmul.f32 0.2, %v515_v0  ;;  %v625_v12 = vld [vmem:[#allocation2 + $0x52] ss:$2 sm:$0xff]  ;;  %842 = vmatpush.bf16.msra.mxu0 %v5002_v31 }
  0xcb   :  { %v609_v13 = vld [vmem:[#allocation2 + $0x51] ss:$2 sm:$0xff]  ;;  %v5236_v34 = vpack.i.bf16 %v625_v12, %v623_v56 }
  0xcc   :  { %v563_v51 = vsel %vm531_vm5, %v515_v0, %v547_v8  ;;  %v641_v15 = vld [vmem:[#allocation2 + $0x53] ss:$2 sm:$0xff]  ;;  %v5231_v16 = vpack.i.bf16 %v609_v13, %v5784_v36 }
  0xcd   :  { %582 = vst.msk [vmem:[#allocation2 + $0x79] sm:$0xff] %vm137_vm1, %v563_v51  ;;  %v5241_v20 = vpack.i.bf16 %v641_v15, %v639_v14  ;;  %v627_v54 = vld [vmem:[#allocation2 + $0x62] ss:$2 sm:$0xff]  ;;  %v611_v22 = vld [vmem:[#allocation2 + $0x61] ss:$2 sm:$0xff] }
  0xce   :  { %843 = vmatpush.bf16.msra.mxu0 %v5001_v35  ;;  %v4999_v36 = vld [vmem:[%s7176_s3 + $0x10] sm:$0xff] }
  0xcf   :  { %v643_v21 = vld [vmem:[#allocation2 + $0x63] ss:$2 sm:$0xff] }
  0xd0   :  { %5242 = vrot.lane.b32.xlu0 %v5241_v20, %s5426_s28 }
  0xd1   :  { %5237 = vrot.lane.b32.xlu2 %v5236_v34, %s5427_s29  ;;  %5232 = vrot.lane.b32.xlu1 %v5231_v16, %s5428_s30 }
  0xd2   :  { %844 = vmatpush.bf16.msra.mxu0 %v5000_v5 }
  0xd4   :  { %v645_v44 = vld [vmem:[#allocation2 + $0x73] ss:$2 sm:$0xff]  ;;  %v629_v1 = vld [vmem:[#allocation2 + $0x72] ss:$2 sm:$0xff] }
  0xd5   :  { %v613_v25 = vld [vmem:[#allocation2 + $0x71] ss:$2 sm:$0xff]  ;;  %v5256_v26 = vpack.i.bf16 %v645_v44, %v643_v21  ;;  %v5251_v29 = vpack.i.bf16 %v629_v1, %v627_v54  ;;  %v591_v44 = vld [vmem:[#allocation2 + $0x40] ss:$2 sm:$0xff]  ;;  %v593_v1 = vld [vmem:[#allocation2 + $0x50] ss:$2 sm:$0xff] }
  0xd6   :  { %v5246_v2 = vpack.i.bf16 %v613_v25, %v611_v22  ;;  %845 = vmatpush.bf16.msra.mxu0 %v4999_v36 }
  0xd8   :  { %5257 = vrot.lane.b32.xlu0 %v5256_v26, %s5426_s28 }
  0xd9   :  { %5252 = vrot.lane.b32.xlu2 %v5251_v29, %s5427_s29  ;;  %5247 = vrot.lane.b32.xlu1 %v5246_v2, %s5428_s30 }
  0xda   :  { %846 = vmatpush.bf16.msra.mxu0 %v4998_v38 }
  0xde   :  { %847 = vmatpush.bf16.msra.mxu0 %v4997_v55 }
 0x11b   :  { %v5208_v63 = vpop.permute.xlu2 %5207 }
 0x11c   :  { %v5210_v11 = vunpack.i.h.bf16 %v5208_v63  ;;  %v5209_v43 = vunpack.i.l.bf16 %v5208_v63 }
 0x123   :  { %v5223_v6 = vpop.permute.xlu2 %5222 }
 0x124   :  { %v5225_v9 = vunpack.i.h.bf16 %v5223_v6  ;;  %v5224_v0 = vunpack.i.l.bf16 %v5223_v6 }
 0x12b   :  { %v5238_v21 = vpop.permute.xlu2 %5237 }
 0x12c   :  { %v5240_v29 = vunpack.i.h.bf16 %v5238_v21  ;;  %v5239_v2 = vunpack.i.l.bf16 %v5238_v21 }
 0x132   :  { %v5213_v62 = vpop.permute.xlu0 %5212 }
 0x133   :  { %v5203_v40 = vpop.permute.xlu1 %5202  ;;  %v5215_v49 = vunpack.i.h.bf16 %v5213_v62  ;;  %v5214_v23 = vunpack.i.l.bf16 %v5213_v62  ;;  %v5253_v63 = vpop.permute.xlu2 %5252  ;;  %v597_v62 = vld [vmem:[#allocation2 + $0x70] ss:$2 sm:$0xff] }
 0x134   :  { %v5205_v41 = vunpack.i.h.bf16 %v5203_v40  ;;  %v5204_v33 = vunpack.i.l.bf16 %v5203_v40  ;;  %v595_v40 = vld [vmem:[#allocation2 + $0x60] ss:$2 sm:$0xff] }
 0x136   :  { %v742_v37 = vsel %vm137_vm1, %v5699_v50, %v5204_v33  ;;  %v743_v53 = vsel %vm137_vm1, %v585_v48, %v5205_v41  ;;  %v589_v50 = vld [vmem:[#allocation2 + $0x30] ss:$2 sm:$0xff] }
 0x137   :  { %v751_v58 = vsel %vm750_vm6, %v742_v37, %v5209_v43  ;;  %v752_v24 = vsel %vm750_vm6, %v743_v53, %v5210_v11  ;;  %v5255_v11 = vunpack.i.h.bf16 %v5253_v63  ;;  %v5254_v43 = vunpack.i.l.bf16 %v5253_v63 }
 0x138   :  { %v760_v10 = vsel %vm759_vm7, %v751_v58, %v5214_v23  ;;  %v761_v57 = vsel %vm759_vm7, %v752_v24, %v5215_v49 }
 0x139   :  { %v768_v52 = vpack.c.bf16 %v761_v57, %v760_v10  ;;  %v5412_v57 = vld [vmem:[%s7175_s4] ss:$0 sm:$0xff] }
 0x13a   :  { %v5228_v18 = vpop.permute.xlu0 %5227 }
 0x13b   :  { %v5218_v61 = vpop.permute.xlu1 %5217  ;;  %848 = vmatmul.bf16.vlgmr.msra.gmra.mxu0 %v768_v52  ;;  %v5230_v60 = vunpack.i.h.bf16 %v5228_v18  ;;  %v5229_v8 = vunpack.i.l.bf16 %v5228_v18 }
 0x13c   :  { %v5220_v3 = vunpack.i.h.bf16 %v5218_v61  ;;  %v5219_v19 = vunpack.i.l.bf16 %v5218_v61 }
 0x13e   :  { %v744_v7 = vsel %vm137_vm1, %v587_v4, %v5219_v19  ;;  %v745_v39 = vsel %vm137_vm1, %v589_v50, %v5220_v3 }
 0x13f   :  { %v753_v51 = vsel %vm750_vm6, %v744_v7, %v5224_v0  ;;  %v754_v56 = vsel %vm750_vm6, %v745_v39, %v5225_v9 }
 0x140   :  { %v762_v12 = vsel %vm759_vm7, %v753_v51, %v5229_v8  ;;  %v763_v13 = vsel %vm759_vm7, %v754_v56, %v5230_v60 }
 0x141   :  { %v769_v14 = vpack.c.bf16 %v763_v13, %v762_v12 }
 0x142   :  { %v5243_v20 = vpop.permute.xlu0 %5242 }
 0x143   :  { %v5233_v15 = vpop.permute.xlu1 %5232  ;;  %v5245_v54 = vunpack.i.h.bf16 %v5243_v20  ;;  %v5244_v22 = vunpack.i.l.bf16 %v5243_v20 }
 0x144   :  { %v5235_v34 = vunpack.i.h.bf16 %v5233_v15  ;;  %v5234_v16 = vunpack.i.l.bf16 %v5233_v15 }
 0x146   :  { %v746_v25 = vsel %vm137_vm1, %v591_v44, %v5234_v16  ;;  %v747_v26 = vsel %vm137_vm1, %v593_v1, %v5235_v34 }
 0x147   :  { %v755_v30 = vsel %vm750_vm6, %v746_v25, %v5239_v2  ;;  %v756_v59 = vsel %vm750_vm6, %v747_v26, %v5240_v29 }
 0x148   :  { %v764_v31 = vsel %vm759_vm7, %v755_v30, %v5244_v22  ;;  %v765_v35 = vsel %vm759_vm7, %v756_v59, %v5245_v54 }
 0x149   :  { %v770_v36 = vpack.c.bf16 %v765_v35, %v764_v31 }
 0x14a   :  { %v5258_v48 = vpop.permute.xlu0 %5257 }
 0x14b   :  { %853 = vmatmul.bf16.gmra.mxu0 %v769_v14  ;;  %v5248_v5 = vpop.permute.xlu1 %5247  ;;  %v5260_v49 = vunpack.i.h.bf16 %v5258_v48  ;;  %v5259_v23 = vunpack.i.l.bf16 %v5258_v48 }
 0x14c   :  { %v5250_v38 = vunpack.i.h.bf16 %v5248_v5  ;;  %v5249_v55 = vunpack.i.l.bf16 %v5248_v5 }
 0x14e   :  { %v748_v41 = vsel %vm137_vm1, %v595_v40, %v5249_v55  ;;  %v749_v33 = vsel %vm137_vm1, %v597_v62, %v5250_v38 }
 0x14f   :  { %v757_v37 = vsel %vm750_vm6, %v748_v41, %v5254_v43  ;;  %v758_v53 = vsel %vm750_vm6, %v749_v33, %v5255_v11 }
 0x150   :  { %v766_v58 = vsel %vm759_vm7, %v757_v37, %v5259_v23  ;;  %v767_v24 = vsel %vm759_vm7, %v758_v53, %v5260_v49  ;;  %v5012_v23 = vld [vmem:[%s7176_s3 + $0x78] sm:$0xff] }
 0x151   :  { %v771_v10 = vpack.c.bf16 %v767_v24, %v766_v58  ;;  %1051 = vmatpush.bf16.msra.mxu1 %v5012_v23  ;;  %v5011_v58 = vld [vmem:[%s7176_s3 + $0x70] sm:$0xff]  ;;  %v5010_v24 = vld [vmem:[%s7176_s3 + $0x68] sm:$0xff] }
 0x155   :  { %1052 = vmatpush.bf16.msra.mxu1 %v5011_v58 }
 0x159   :  { %1053 = vmatpush.bf16.msra.mxu1 %v5010_v24 }
 0x15b   :  { %858 = vmatmul.bf16.gmra.mxu0 %v770_v36 }
 0x16b   :  { %863 = vmatmul.bf16.gmra.mxu0 %v771_v10  ;;  %v5009_v10 = vld [vmem:[%s7176_s3 + $0x60] sm:$0xff] }
 0x16c   :  { %1054 = vmatpush.bf16.msra.mxu1 %v5009_v10 }
 0x1b8   :  { %v849_v52 = vpop.f32.mrf.mxu0 }
 0x1b9   :  { %v850_v61 = vadd.f32 %v5412_v57, %v849_v52  ;;  %v5007_v52 = vld [vmem:[%s7176_s3 + $0x50] sm:$0xff] }
 0x1bb   :  { %vm869_vm8 = vcmp.gt.f32.partialorder %v850_v61, 0.0  ;;  %v877_v3 = vmul.f32 0.2, %v850_v61 }
 0x1bd   :  { %v885_v19 = vsel %vm869_vm8, %v850_v61, %v877_v3  ;;  %v5006_v61 = vld [vmem:[%s7176_s3 + $0x48] sm:$0xff]  ;;  %v5005_v3 = vld [vmem:[%s7176_s3 + $0x40] sm:$0xff] }
 0x1be   :  { %895 = vst.msk [vmem:[#allocation2 + $0x1] sm:$0xff] %vm137_vm1, %v885_v19 }
 0x1c0   :  { %v851_v6 = vpop.f32.mrf.mxu0 }
 0x1c1   :  { %v852_v4 = vadd.f32 %v5412_v57, %v851_v6 }
 0x1c3   :  { %vm870_vm9 = vcmp.gt.f32.partialorder %v852_v4, 0.0  ;;  %v878_v50 = vmul.f32 0.2, %v852_v4 }
 0x1c5   :  { %v886_v18 = vsel %vm870_vm9, %v852_v4, %v878_v50 }
 0x1c6   :  { %896 = vst.msk [vmem:[#allocation2 + $0x9] sm:$0xff] %vm137_vm1, %v886_v18 }
 0x1c8   :  { %v854_v7 = vpop.f32.mrf.mxu0 }
 0x1c9   :  { %v855_v39 = vadd.f32 %v5412_v57, %v854_v7 }
 0x1cb   :  { %vm871_vm10 = vcmp.gt.f32.partialorder %v855_v39, 0.0  ;;  %v879_v9 = vmul.f32 0.2, %v855_v39 }
 0x1cd   :  { %v887_v0 = vsel %vm871_vm10, %v855_v39, %v879_v9  ;;  %v5870_v60 = vld [vmem:[#allocation2] ss:$2 sm:$0xff]  ;;  %v907_v21 = vld [vmem:[#allocation2 + $0x1] ss:$2 sm:$0xff] }
 0x1ce   :  { %897 = vst.msk [vmem:[#allocation2 + $0x11] sm:$0xff] %vm137_vm1, %v887_v0  ;;  %v911_v34 = vld [vmem:[#allocation2 + $0x2] ss:$2 sm:$0xff] }
 0x1cf   :  { %1082 = vst.msk [vmem:[#allocation2] sm:$0x1] %vm564_vm2, %v5425_v17 }
 0x1d0   :  { %v856_v8 = vpop.f32.mrf.mxu0 }
 0x1d1   :  { %v857_v51 = vadd.f32 %v5412_v57, %v856_v8 }
 0x1d3   :  { %vm872_vm11 = vcmp.gt.f32.partialorder %v857_v51, 0.0  ;;  %v880_v56 = vmul.f32 0.2, %v857_v51 }
 0x1d5   :  { %v888_v12 = vsel %vm872_vm11, %v857_v51, %v880_v56  ;;  %v915_v2 = vld [vmem:[#allocation2 + $0x3] ss:$2 sm:$0xff] }
 0x1d6   :  { %898 = vst.msk [vmem:[#allocation2 + $0x19] sm:$0xff] %vm137_vm1, %v888_v12 }
 0x1d8   :  { %v859_v13 = vpop.f32.mrf.mxu0 }
 0x1d9   :  { %v860_v14 = vadd.f32 %v5412_v57, %v859_v13 }
 0x1db   :  { %vm873_vm12 = vcmp.gt.f32.partialorder %v860_v14, 0.0  ;;  %v881_v15 = vmul.f32 0.2, %v860_v14 }
 0x1dd   :  { %v889_v16 = vsel %vm873_vm12, %v860_v14, %v881_v15  ;;  %v912_v20 = vld [vmem:[#allocation2 + $0x12] ss:$2 sm:$0xff]  ;;  %v908_v44 = vld [vmem:[#allocation2 + $0x11] ss:$2 sm:$0xff] }
 0x1de   :  { %899 = vst.msk [vmem:[#allocation2 + $0x21] sm:$0xff] %vm137_vm1, %v889_v16  ;;  %v5266_v1 = vpack.i.bf16 %v912_v20, %v911_v34  ;;  %v5261_v25 = vpack.i.bf16 %v908_v44, %v907_v21  ;;  %v904_v18 = vld [vmem:[#allocation2 + $0x10] ss:$2 sm:$0xff] }
 0x1e0   :  { %v861_v26 = vpop.f32.mrf.mxu0  ;;  %5267 = vrot.lane.b32.xlu2 %v5266_v1, %s5427_s29  ;;  %5262 = vrot.lane.b32.xlu1 %v5261_v25, %s5428_s30 }
 0x1e1   :  { %v862_v54 = vadd.f32 %v5412_v57, %v861_v26 }
 0x1e3   :  { %vm874_vm13 = vcmp.gt.f32.partialorder %v862_v54, 0.0  ;;  %v882_v22 = vmul.f32 0.2, %v862_v54 }
 0x1e5   :  { %v890_v29 = vsel %vm874_vm13, %v862_v54, %v882_v22  ;;  %v916_v30 = vld [vmem:[#allocation2 + $0x13] ss:$2 sm:$0xff] }
 0x1e6   :  { %900 = vst.msk [vmem:[#allocation2 + $0x29] sm:$0xff] %vm137_vm1, %v890_v29  ;;  %v5271_v59 = vpack.i.bf16 %v916_v30, %v915_v2 }
 0x1e8   :  { %v864_v31 = vpop.f32.mrf.mxu0  ;;  %5272 = vrot.lane.b32.xlu0 %v5271_v59, %s5426_s28 }
 0x1e9   :  { %v865_v35 = vadd.f32 %v5412_v57, %v864_v31 }
 0x1eb   :  { %vm875_vm14 = vcmp.gt.f32.partialorder %v865_v35, 0.0  ;;  %v883_v5 = vmul.f32 0.2, %v865_v35 }
 0x1ed   :  { %v891_v36 = vsel %vm875_vm14, %v865_v35, %v883_v5  ;;  %v909_v38 = vld [vmem:[#allocation2 + $0x21] ss:$2 sm:$0xff]  ;;  %v913_v33 = vld [vmem:[#allocation2 + $0x22] ss:$2 sm:$0xff] }
 0x1ee   :  { %901 = vst.msk [vmem:[#allocation2 + $0x31] sm:$0xff] %vm137_vm1, %v891_v36  ;;  %v905_v26 = vld [vmem:[#allocation2 + $0x20] ss:$2 sm:$0xff] }
 0x1ef   :  { %1083 = vst.msk [vmem:[#allocation2 + $0x21] sm:$0x1] %vm564_vm2, %v5425_v17 }
 0x1f0   :  { %v866_v55 = vpop.f32.mrf.mxu0 }
 0x1f1   :  { %v867_v63 = vadd.f32 %v5412_v57, %v866_v55  ;;  %v5008_v57 = vld [vmem:[%s7176_s3 + $0x58] sm:$0xff] }
 0x1f2   :  { %1055 = vmatpush.bf16.msra.mxu1 %v5008_v57 }
 0x1f3   :  { %vm876_vm15 = vcmp.gt.f32.partialorder %v867_v63, 0.0  ;;  %v884_v40 = vmul.f32 0.2, %v867_v63 }
 0x1f5   :  { %v892_v62 = vsel %vm876_vm15, %v867_v63, %v884_v40  ;;  %v917_v41 = vld [vmem:[#allocation2 + $0x23] ss:$2 sm:$0xff] }
 0x1f6   :  { %902 = vst.msk [vmem:[#allocation2 + $0x39] sm:$0xff] %vm137_vm1, %v892_v62  ;;  %1056 = vmatpush.bf16.msra.mxu1 %v5007_v52 }
 0x1fa   :  { %1057 = vmatpush.bf16.msra.mxu1 %v5006_v61 }
 0x1fd   :  { %v918_v11 = vld [vmem:[#allocation2 + $0x33] ss:$2 sm:$0xff]  ;;  %v914_v43 = vld [vmem:[#allocation2 + $0x32] ss:$2 sm:$0xff] }
 0x1fe   :  { %v910_v48 = vld [vmem:[#allocation2 + $0x31] ss:$2 sm:$0xff]  ;;  %v5286_v37 = vpack.i.bf16 %v918_v11, %v917_v41  ;;  %v5281_v53 = vpack.i.bf16 %v914_v43, %v913_v33  ;;  %1058 = vmatpush.bf16.msra.mxu1 %v5005_v3  ;;  %v906_v54 = vld [vmem:[#allocation2 + $0x30] ss:$2 sm:$0xff] }
 0x1ff   :  { %v5276_v49 = vpack.i.bf16 %v910_v48, %v909_v38  ;;  %v5413_v38 = vld [vmem:[%s7175_s4 + $0x1] ss:$0 sm:$0xff] }
 0x200   :  { %5287 = vrot.lane.b32.xlu0 %v5286_v37, %s5426_s28  ;;  %5282 = vrot.lane.b32.xlu2 %v5281_v53, %s5427_s29 }
 0x201   :  { %5277 = vrot.lane.b32.xlu1 %v5276_v49, %s5428_s30 }
 0x23a   :  { %v5268_v50 = vpop.permute.xlu2 %5267 }
 0x23b   :  { %v5270_v9 = vunpack.i.h.bf16 %v5268_v50  ;;  %v5269_v0 = vunpack.i.l.bf16 %v5268_v50 }
 0x252   :  { %v5263_v19 = vpop.permute.xlu1 %5262 }
 0x253   :  { %v5265_v6 = vunpack.i.h.bf16 %v5263_v19  ;;  %v5264_v4 = vunpack.i.l.bf16 %v5263_v19 }
 0x255   :  { %v968_v7 = vsel %vm137_vm1, %v904_v18, %v5265_v6  ;;  %v967_v39 = vsel %vm137_vm1, %v5870_v60, %v5264_v4 }
 0x256   :  { %v971_v12 = vsel %vm750_vm6, %v967_v39, %v5269_v0  ;;  %v972_v13 = vsel %vm750_vm6, %v968_v7, %v5270_v9  ;;  %v4250_v39 = vld [vmem:[%s7172_s0 + $0x90] sm:$0xff]  ;;  %v4249_v9 = vld [vmem:[%s7172_s0 + $0x88] sm:$0xff]  ;;  %v4248_v0 = vld [vmem:[%s7172_s0 + $0x80] sm:$0xff] }
 0x25a   :  { %v5273_v8 = vpop.permute.xlu0 %5272  ;;  %v5283_v16 = vpop.permute.xlu2 %5282 }
 0x25b   :  { %v5275_v51 = vunpack.i.h.bf16 %v5273_v8  ;;  %v5274_v56 = vunpack.i.l.bf16 %v5273_v8  ;;  %v5285_v1 = vunpack.i.h.bf16 %v5283_v16  ;;  %v5284_v25 = vunpack.i.l.bf16 %v5283_v16  ;;  %v4253_v8 = vld [vmem:[%s7172_s0 + $0xa8] sm:$0xff] }
 0x25c   :  { %v4257_v16 = vld [vmem:[%s7172_s0 + $0xc8] sm:$0xff] }
 0x25d   :  { %v975_v14 = vsel %vm759_vm7, %v971_v12, %v5274_v56  ;;  %v976_v15 = vsel %vm759_vm7, %v972_v13, %v5275_v51  ;;  %v4252_v51 = vld [vmem:[%s7172_s0 + $0xa0] sm:$0xff]  ;;  %v4251_v56 = vld [vmem:[%s7172_s0 + $0x98] sm:$0xff] }
 0x25e   :  { %v979_v34 = vpack.c.bf16 %v976_v15, %v975_v14  ;;  %v4256_v12 = vld [vmem:[%s7172_s0 + $0xc0] sm:$0xff]  ;;  %v4255_v13 = vld [vmem:[%s7172_s0 + $0xb8] sm:$0xff]  ;;  %v4254_v14 = vld [vmem:[%s7172_s0 + $0xb0] sm:$0xff] }
 0x25f   :  { %v4259_v15 = vld [vmem:[%s7172_s0 + $0xd8] sm:$0xff] }
 0x260   :  { %1059 = vmatmul.bf16.vlgmr.msra.gmra.mxu1 %v979_v34  ;;  %v4258_v34 = vld [vmem:[%s7172_s0 + $0xd0] sm:$0xff] }
 0x272   :  { %v5288_v20 = vpop.permute.xlu0 %5287 }
 0x273   :  { %v5278_v21 = vpop.permute.xlu1 %5277  ;;  %v5290_v22 = vunpack.i.h.bf16 %v5288_v20  ;;  %v5289_v29 = vunpack.i.l.bf16 %v5288_v20  ;;  %v4262_v20 = vld [vmem:[%s7172_s0 + $0xf0] sm:$0xff] }
 0x274   :  { %v5280_v44 = vunpack.i.h.bf16 %v5278_v21  ;;  %v5279_v60 = vunpack.i.l.bf16 %v5278_v21  ;;  %v4261_v21 = vld [vmem:[%s7172_s0 + $0xe8] sm:$0xff] }
 0x276   :  { %v970_v2 = vsel %vm137_vm1, %v906_v54, %v5280_v44  ;;  %v969_v30 = vsel %vm137_vm1, %v905_v26, %v5279_v60  ;;  %v4260_v44 = vld [vmem:[%s7172_s0 + $0xe0] sm:$0xff]  ;;  %v4263_v60 = vld [vmem:[%s7172_s0 + $0xf8] sm:$0xff]  ;;  %v5018_v26 = vld [vmem:[%s7176_s3 + $0xa8] sm:$0xff] }
 0x277   :  { %v973_v59 = vsel %vm750_vm6, %v969_v30, %v5284_v25  ;;  %v974_v31 = vsel %vm750_vm6, %v970_v2, %v5285_v1  ;;  %v5020_v1 = vld [vmem:[%s7176_s3 + $0xb8] sm:$0xff]  ;;  %v5019_v25 = vld [vmem:[%s7176_s3 + $0xb0] sm:$0xff]  ;;  %v5017_v54 = vld [vmem:[%s7176_s3 + $0xa0] sm:$0xff] }
 0x278   :  { %v977_v35 = vsel %vm759_vm7, %v973_v59, %v5289_v29  ;;  %v978_v5 = vsel %vm759_vm7, %v974_v31, %v5290_v22  ;;  %1197 = vmatpush.bf16.msra.mxu2 %v5020_v1  ;;  %v5016_v22 = vld [vmem:[%s7176_s3 + $0x98] sm:$0xff]  ;;  %v5015_v29 = vld [vmem:[%s7176_s3 + $0x90] sm:$0xff]  ;;  %v5014_v2 = vld [vmem:[%s7176_s3 + $0x88] sm:$0xff] }
 0x279   :  { %v980_v36 = vpack.c.bf16 %v978_v5, %v977_v35  ;;  %v5013_v30 = vld [vmem:[%s7176_s3 + $0x80] sm:$0xff] }
 0x27b   :  { %1064 = vmatmul.bf16.gmra.mxu1 %v980_v36 }
 0x27c   :  { %1198 = vmatpush.bf16.msra.mxu2 %v5019_v25 }
 0x280   :  { %1199 = vmatpush.bf16.msra.mxu2 %v5018_v26 }
 0x284   :  { %1200 = vmatpush.bf16.msra.mxu2 %v5017_v54 }
 0x288   :  { %1201 = vmatpush.bf16.msra.mxu2 %v5016_v22 }
 0x28c   :  { %1202 = vmatpush.bf16.msra.mxu2 %v5015_v29 }
 0x290   :  { %1203 = vmatpush.bf16.msra.mxu2 %v5014_v2 }
 0x294   :  { %1204 = vmatpush.bf16.msra.mxu2 %v5013_v30 }
 0x2dd   :  { %v1060_v55 = vpop.f32.mrf.mxu1 }
 0x2de   :  { %v1061_v63 = vadd.f32 %v5413_v38, %v1060_v55 }
 0x2e0   :  { %vm1070_vm3 = vcmp.gt.f32.partialorder %v1061_v63, 0.0  ;;  %v1074_v40 = vmul.f32 0.2, %v1061_v63 }
 0x2e2   :  { %v1078_v62 = vsel %vm1070_vm3, %v1061_v63, %v1074_v40 }
 0x2e3   :  { %1084 = vst.msk [vmem:[#allocation2 + $0x1] sm:$0xff] %vm137_vm1, %v1078_v62 }
 0x2e5   :  { %v1062_v41 = vpop.f32.mrf.mxu1 }
 0x2e6   :  { %v1063_v33 = vadd.f32 %v5413_v38, %v1062_v41 }
 0x2e8   :  { %vm1071_vm4 = vcmp.gt.f32.partialorder %v1063_v33, 0.0  ;;  %v1075_v11 = vmul.f32 0.2, %v1063_v33 }
 0x2ea   :  { %v1079_v43 = vsel %vm1071_vm4, %v1063_v33, %v1075_v11 }
 0x2eb   :  { %1085 = vst.msk [vmem:[#allocation2 + $0x9] sm:$0xff] %vm137_vm1, %v1079_v43 }
 0x2f2   :  { %v5929_v48 = vld [vmem:[#allocation2] ss:$2 sm:$0xff]  ;;  %v1090_v3 = vld [vmem:[#allocation2 + $0x1] ss:$2 sm:$0xff] }
 0x2f3   :  { %1217 = vst.msk [vmem:[#allocation2] sm:$0x1] %vm564_vm2, %v5425_v17  ;;  %v1092_v61 = vld [vmem:[#allocation2 + $0x2] ss:$2 sm:$0xff] }
 0x2f8   :  { %v1065_v37 = vpop.f32.mrf.mxu1 }
 0x2f9   :  { %v1066_v53 = vadd.f32 %v5413_v38, %v1065_v37 }
 0x2fb   :  { %vm1072_vm5 = vcmp.gt.f32.partialorder %v1066_v53, 0.0  ;;  %v1076_v49 = vmul.f32 0.2, %v1066_v53 }
 0x2fd   :  { %v1080_v23 = vsel %vm1072_vm5, %v1066_v53, %v1076_v49 }
 0x2fe   :  { %1086 = vst.msk [vmem:[#allocation2 + $0x11] sm:$0xff] %vm137_vm1, %v1080_v23 }
 0x300   :  { %v1067_v58 = vpop.f32.mrf.mxu1 }
 0x301   :  { %v1068_v24 = vadd.f32 %v5413_v38, %v1067_v58 }
 0x303   :  { %vm1073_vm8 = vcmp.gt.f32.partialorder %v1068_v24, 0.0  ;;  %v1077_v10 = vmul.f32 0.2, %v1068_v24 }
 0x305   :  { %v1081_v57 = vsel %vm1073_vm8, %v1068_v24, %v1077_v10  ;;  %v1094_v52 = vld [vmem:[#allocation2 + $0x3] ss:$2 sm:$0xff] }
 0x306   :  { %1087 = vst.msk [vmem:[#allocation2 + $0x19] sm:$0xff] %vm137_vm1, %v1081_v57 }
 0x30d   :  { %v1095_v19 = vld [vmem:[#allocation2 + $0x13] ss:$2 sm:$0xff]  ;;  %v1093_v6 = vld [vmem:[#allocation2 + $0x12] ss:$2 sm:$0xff] }
 0x30e   :  { %v1091_v4 = vld [vmem:[#allocation2 + $0x11] ss:$2 sm:$0xff]  ;;  %v5301_v50 = vpack.i.bf16 %v1095_v19, %v1094_v52  ;;  %v5296_v18 = vpack.i.bf16 %v1093_v6, %v1092_v61  ;;  %v1089_v41 = vld [vmem:[#allocation2 + $0x10] ss:$2 sm:$0xff] }
 0x30f   :  { %1218 = vst.msk [vmem:[#allocation2 + $0x11] sm:$0x1] %vm564_vm2, %v5425_v17  ;;  %v5291_v7 = vpack.i.bf16 %v1091_v4, %v1090_v3 }
 0x310   :  { %5302 = vrot.lane.b32.xlu0 %v5301_v50, %s5426_s28  ;;  %5297 = vrot.lane.b32.xlu2 %v5296_v18, %s5427_s29 }
 0x311   :  { %5292 = vrot.lane.b32.xlu1 %v5291_v7, %s5428_s30 }
 0x318   :  { %1359 = vperm.xlu0 %5198, %v4250_v39   ;;  %1354 = vperm.xlu2 %5200, %v4249_v9  }
 0x319   :  { %1349 = vperm.xlu1 %5199, %v4248_v0  }
 0x320   :  { %1374 = vperm.xlu0 %5198, %v4253_v8   ;;  %1369 = vperm.xlu2 %5200, %v4252_v51  }
 0x321   :  { %1364 = vperm.xlu1 %5199, %v4251_v56  }
 0x328   :  { %1389 = vperm.xlu0 %5198, %v4256_v12   ;;  %1384 = vperm.xlu2 %5200, %v4255_v13  }
 0x329   :  { %1379 = vperm.xlu1 %5199, %v4254_v14  }
 0x330   :  { %1404 = vperm.xlu0 %5198, %v4259_v15   ;;  %1399 = vperm.xlu2 %5200, %v4258_v34  }
 0x331   :  { %1394 = vperm.xlu1 %5199, %v4257_v16  }
 0x338   :  { %1419 = vperm.xlu0 %5198, %v4262_v20   ;;  %1414 = vperm.xlu2 %5200, %v4261_v21  }
 0x339   :  { %1409 = vperm.xlu1 %5199, %v4260_v44  }
 0x341   :  { %1424 = vperm.xlu1 %5199, %v4263_v60  }
 0x36a   :  { %v5298_v59 = vpop.permute.xlu2 %5297 }
 0x36b   :  { %v5300_v40 = vunpack.i.h.bf16 %v5298_v59  ;;  %v5299_v62 = vunpack.i.l.bf16 %v5298_v59 }
 0x372   :  { %v6012_v31 = vpop.permute.xlu2 %1354 }
 0x37a   :  { %v1370_v35 = vpop.permute.xlu2 %1369 }
 0x37b   :  { %1431 = vst.msk [vmem:[#allocation2 + $0x23] sm:$0xff] %vm137_vm1, %v1370_v35 }
 0x382   :  { %v5303_v5 = vpop.permute.xlu0 %5302  ;;  %v1385_v36 = vpop.permute.xlu2 %1384  ;;  %v1591_v56 = vld [vmem:[#allocation2 + $0x23] sm:$0xff] }
 0x383   :  { %1434 = vst.msk [vmem:[#allocation2 + $0x3b] sm:$0xff] %vm137_vm1, %v1385_v36  ;;  %v5293_v38 = vpop.permute.xlu1 %5292  ;;  %v5305_v33 = vunpack.i.h.bf16 %v5303_v5  ;;  %v5304_v11 = vunpack.i.l.bf16 %v5303_v5  ;;  %v1607_v21 = vmul.f32 %v1591_v56, %v5556_v42 }
 0x384   :  { %v5295_v55 = vunpack.i.h.bf16 %v5293_v38  ;;  %v5294_v63 = vunpack.i.l.bf16 %v5293_v38 }
 0x386   :  { %v1121_v43 = vsel %vm137_vm1, %v1089_v41, %v5295_v55  ;;  %v1120_v37 = vsel %vm137_vm1, %v5929_v48, %v5294_v63 }
 0x387   :  { %v1122_v53 = vsel %vm750_vm6, %v1120_v37, %v5299_v62  ;;  %v1123_v49 = vsel %vm750_vm6, %v1121_v43, %v5300_v40 }
 0x388   :  { %v1124_v23 = vsel %vm759_vm7, %v1122_v53, %v5304_v11  ;;  %v1125_v58 = vsel %vm759_vm7, %v1123_v49, %v5305_v33 }
 0x389   :  { %v1126_v24 = vpack.c.bf16 %v1125_v58, %v1124_v23 }
 0x38a   :  { %v1360_v10 = vpop.permute.xlu0 %1359  ;;  %v1400_v57 = vpop.permute.xlu2 %1399  ;;  %v1594_v20 = vld [vmem:[#allocation2 + $0x3b] sm:$0xff] }
 0x38b   :  { %1429 = vst.msk [vmem:[#allocation2 + $0x13] sm:$0xff] %vm137_vm1, %v1360_v10  ;;  %v6024_v52 = vpop.permute.xlu1 %1349  ;;  %1205 = vmatmul.bf16.vlgmr.msra.gmra.mxu2 %v1126_v24  ;;  %v1610_v41 = vmul.f32 %v1594_v20, %v5556_v42 }
 0x38c   :  { %1437 = vst.msk [vmem:[#allocation2 + $0x53] sm:$0xff] %vm137_vm1, %v1400_v57 }
 0x392   :  { %v1375_v61 = vpop.permute.xlu0 %1374  ;;  %v1415_v48 = vpop.permute.xlu2 %1414 }
 0x393   :  { %1432 = vst.msk [vmem:[#allocation2 + $0x2b] sm:$0xff] %vm137_vm1, %v1375_v61  ;;  %v1365_v3 = vpop.permute.xlu1 %1364  ;;  %v1597_v15 = vld [vmem:[#allocation2 + $0x53] sm:$0xff] }
 0x394   :  { %1440 = vst.msk [vmem:[#allocation2 + $0x6b] sm:$0xff] %vm137_vm1, %v1415_v48  ;;  %v6045_v63 = vmul.f32 %v1597_v15, %v5556_v42 }
 0x395   :  { %1430 = vst.msk [vmem:[#allocation2 + $0x1b] sm:$0xff] %vm137_vm1, %v1365_v3 }
 0x39a   :  { %v1390_v19 = vpop.permute.xlu0 %1389  ;;  %v1448_v6 = vld [vmem:[#allocation2 + $0x28] sm:$0xff] }
 0x39b   :  { %1435 = vst.msk [vmem:[#allocation2 + $0x43] sm:$0xff] %vm137_vm1, %v1390_v19  ;;  %v1496_v4 = vld [vmem:[#allocation2 + $0x29] sm:$0xff]  ;;  %v1380_v50 = vpop.permute.xlu1 %1379  ;;  %v1464_v0 = vmul.f32 %v1448_v6, %v5544_v27 }
 0x39c   :  { %v1447_v18 = vld [vmem:[#allocation2 + $0x20] sm:$0xff]  ;;  %1433 = vst.msk [vmem:[#allocation2 + $0x33] sm:$0xff] %vm137_vm1, %v1380_v50  ;;  %v1512_v8 = vmul.f32 %v1496_v4, %v5546_v28  ;;  %v1544_v14 = vld [vmem:[#allocation2 + $0x2a] sm:$0xff] }
 0x39d   :  { %v1463_v7 = vmul.f32 %v1447_v18, %v5544_v27  ;;  %v1495_v39 = vld [vmem:[#allocation2 + $0x21] sm:$0xff]  ;;  %v1560_v2 = vmul.f32 %v1544_v14, %v5551_v32  ;;  %v1592_v30 = vld [vmem:[#allocation2 + $0x2b] sm:$0xff] }
 0x39e   :  { %v1543_v9 = vld [vmem:[#allocation2 + $0x22] sm:$0xff]  ;;  %v1511_v51 = vmul.f32 %v1495_v39, %v5546_v28  ;;  %v1528_v16 = vadd.f32 %v1512_v8, %v1464_v0  ;;  %v1608_v48 = vmul.f32 %v1592_v30, %v5556_v42 }
 0x39f   :  { %v1559_v13 = vmul.f32 %v1543_v9, %v5551_v32  ;;  %v1639_v34 = vld [vmem:[#allocation2 + $0x24] sm:$0xff] }
 0x3a0   :  { %v1527_v12 = vadd.f32 %v1511_v51, %v1463_v7  ;;  %v1687_v44 = vld [vmem:[#allocation2 + $0x25] sm:$0xff]  ;;  %v1655_v35 = vmul.f32 %v1639_v34, %v5562_v45  ;;  %v1576_v62 = vadd.f32 %v1560_v2, %v1528_v16 }
 0x3a1   :  { %v1735_v54 = vld [vmem:[#allocation2 + $0x26] sm:$0xff]  ;;  %v1703_v40 = vmul.f32 %v1687_v44, %v5564_v46 }
 0x3a2   :  { %v1575_v60 = vadd.f32 %v1559_v13, %v1527_v12  ;;  %v1451_v1 = vld [vmem:[#allocation2 + $0x40] sm:$0xff]  ;;  %v1405_v26 = vpop.permute.xlu0 %1404  ;;  %v1751_v10 = vmul.f32 %v1735_v54, %v5566_v47  ;;  %v1624_v9 = vadd.f32 %v1608_v48, %v1576_v62 }
 0x3a3   :  { %v1499_v25 = vld [vmem:[#allocation2 + $0x41] sm:$0xff]  ;;  %v1467_v22 = vmul.f32 %v1451_v1, %v5544_v27  ;;  %1438 = vst.msk [vmem:[#allocation2 + $0x5b] sm:$0xff] %vm137_vm1, %v1405_v26  ;;  %v1395_v59 = vpop.permute.xlu1 %1394  ;;  %v1449_v38 = vld [vmem:[#allocation2 + $0x30] sm:$0xff]  ;;  %v1450_v55 = vld [vmem:[#allocation2 + $0x38] sm:$0xff] }
 0x3a4   :  { %v1515_v29 = vmul.f32 %v1499_v25, %v5546_v28  ;;  %v1623_v5 = vadd.f32 %v1607_v21, %v1575_v60  ;;  %v1547_v36 = vld [vmem:[#allocation2 + $0x42] sm:$0xff]  ;;  %1436 = vst.msk [vmem:[#allocation2 + $0x4b] sm:$0xff] %vm137_vm1, %v1395_v59  ;;  %v1497_v33 = vld [vmem:[#allocation2 + $0x31] sm:$0xff]  ;;  %v1498_v11 = vld [vmem:[#allocation2 + $0x39] sm:$0xff]  ;;  %v1465_v53 = vmul.f32 %v1449_v38, %v5544_v27  ;;  %v1466_v49 = vmul.f32 %v1450_v55, %v5544_v27 }
 0x3a5   :  { %v1545_v43 = vld [vmem:[#allocation2 + $0x32] sm:$0xff]  ;;  %v1513_v23 = vmul.f32 %v1497_v33, %v5546_v28  ;;  %v1546_v58 = vld [vmem:[#allocation2 + $0x3a] sm:$0xff]  ;;  %v1595_v61 = vld [vmem:[#allocation2 + $0x43] sm:$0xff]  ;;  %v1514_v3 = vmul.f32 %v1498_v11, %v5546_v28  ;;  %v1563_v4 = vmul.f32 %v1547_v36, %v5551_v32 }
 0x3a6   :  { %v1671_v37 = vadd.f32 %v1655_v35, %v1623_v5  ;;  %v1640_v24 = vld [vmem:[#allocation2 + $0x2c] sm:$0xff]  ;;  %v1531_v57 = vadd.f32 %v1515_v29, %v1467_v22  ;;  %v1561_v18 = vmul.f32 %v1545_v43, %v5551_v32  ;;  %v1642_v39 = vld [vmem:[#allocation2 + $0x3c] sm:$0xff]  ;;  %v1562_v8 = vmul.f32 %v1546_v58, %v5551_v32  ;;  %v1641_v51 = vld [vmem:[#allocation2 + $0x34] sm:$0xff] }
 0x3a7   :  { %v1593_v19 = vld [vmem:[#allocation2 + $0x33] sm:$0xff]  ;;  %v1529_v50 = vadd.f32 %v1513_v23, %v1465_v53  ;;  %v1530_v0 = vadd.f32 %v1514_v3, %v1466_v49  ;;  %v1656_v56 = vmul.f32 %v1640_v24, %v5562_v45  ;;  %v1611_v13 = vmul.f32 %v1595_v61, %v5556_v42  ;;  %v1690_v14 = vld [vmem:[#allocation2 + $0x3d] sm:$0xff] }
 0x3a8   :  { %v1719_v6 = vadd.f32 %v1703_v40, %v1671_v37  ;;  %v1688_v7 = vld [vmem:[#allocation2 + $0x2d] sm:$0xff]  ;;  %v1609_v34 = vmul.f32 %v1593_v19, %v5556_v42  ;;  %v1579_v21 = vadd.f32 %v1563_v4, %v1531_v57  ;;  %v1689_v1 = vld [vmem:[#allocation2 + $0x35] sm:$0xff]  ;;  %v6066_v54 = vld [vmem:[%s7173_s2] ss:$0 sm:$0xff]  ;;  %v1658_v29 = vmul.f32 %v1642_v39, %v5562_v45 }
 0x3a9   :  { %v1577_v15 = vadd.f32 %v1561_v18, %v1529_v50  ;;  %v1736_v16 = vld [vmem:[#allocation2 + $0x2e] sm:$0xff]  ;;  %v1578_v44 = vadd.f32 %v1562_v8, %v1530_v0  ;;  %v1672_v60 = vadd.f32 %v1656_v56, %v1624_v9  ;;  %v1704_v25 = vmul.f32 %v1688_v7, %v5564_v46  ;;  %v1738_v2 = vld [vmem:[#allocation2 + $0x3e] sm:$0xff]  ;;  %v1737_v38 = vld [vmem:[#allocation2 + $0x36] sm:$0xff] }
 0x3aa   :  { %v1767_v12 = vadd.f32 %v1751_v10, %v1719_v6  ;;  %v1420_v20 = vpop.permute.xlu0 %1419  ;;  %v1657_v59 = vmul.f32 %v1641_v51, %v5562_v45  ;;  %v1706_v35 = vmul.f32 %v1690_v14, %v5564_v46  ;;  %v1752_v55 = vmul.f32 %v1736_v16, %v5566_v47  ;;  %v6074_v62 = vld [vmem:[#allocation2 + $0x1a] sm:$0xff] }
 0x3ab   :  { %1441 = vst.msk [vmem:[#allocation2 + $0x73] sm:$0xff] %vm137_vm1, %v1420_v20  ;;  %v1410_v26 = vpop.permute.xlu1 %1409  ;;  %v1625_v30 = vadd.f32 %v1609_v34, %v1577_v15  ;;  %v1626_v5 = vadd.f32 %v1610_v41, %v1578_v44  ;;  %v1720_v36 = vadd.f32 %v1704_v25, %v1672_v60  ;;  %v1452_v40 = vld [vmem:[#allocation2 + $0x48] sm:$0xff]  ;;  %v6076_v33 = vld [vmem:[#allocation2 + $0x1b] sm:$0xff]  ;;  %v1705_v37 = vmul.f32 %v1689_v1, %v5564_v46  ;;  %v1453_v53 = vld [vmem:[#allocation2 + $0x50] sm:$0xff] }
 0x3ac   :  { %v1783_v22 = vadd.f32 %v6066_v54, %v1767_v12  ;;  %1439 = vst.msk [vmem:[#allocation2 + $0x63] sm:$0xff] %vm137_vm1, %v1410_v26  ;;  %v1500_v49 = vld [vmem:[#allocation2 + $0x49] sm:$0xff]  ;;  %v1627_v23 = vadd.f32 %v1611_v13, %v1579_v21  ;;  %v1754_v58 = vmul.f32 %v1738_v2, %v5566_v47  ;;  %v1501_v10 = vld [vmem:[#allocation2 + $0x51] sm:$0xff]  ;;  %v6080_v48 = vld [vmem:[#allocation2 + $0x1c] sm:$0xff]  ;;  %v1753_v50 = vmul.f32 %v1737_v38, %v5566_v47 }
 0x3ad   :  { %v1673_v43 = vadd.f32 %v1657_v59, %v1625_v30  ;;  %v1674_v41 = vadd.f32 %v1658_v29, %v1626_v5  ;;  %v1768_v24 = vadd.f32 %v1752_v55, %v1720_v36  ;;  %v1548_v57 = vld [vmem:[#allocation2 + $0x4a] sm:$0xff]  ;;  %v1549_v61 = vld [vmem:[#allocation2 + $0x52] sm:$0xff]  ;;  %v6082_v3 = vld [vmem:[#allocation2 + $0x1d] sm:$0xff]  ;;  %v1468_v18 = vmul.f32 %v1452_v40, %v5544_v27 }
 0x3ae   :  { %vm1799_vm9 = vcmp.gt.f32.partialorder %v1783_v22, 0.0  ;;  %v1815_v11 = vmul.f32 0.2, %v1783_v22  ;;  %v6084_v19 = vld [vmem:[#allocation2 + $0x1e] sm:$0xff]  ;;  %v1469_v9 = vmul.f32 %v1453_v53, %v5544_v27  ;;  %v1516_v0 = vmul.f32 %v1500_v49, %v5546_v28  ;;  %v1596_v8 = vld [vmem:[#allocation2 + $0x4b] sm:$0xff]  ;;  %v1645_v2 = vld [vmem:[#allocation2 + $0x54] sm:$0xff] }
 0x3af   :  { %v1721_v4 = vadd.f32 %v1705_v37, %v1673_v43  ;;  %v1722_v7 = vadd.f32 %v1706_v35, %v1674_v41  ;;  %v1784_v39 = vadd.f32 %v6066_v54, %v1768_v24  ;;  %v1643_v51 = vld [vmem:[#allocation2 + $0x44] sm:$0xff]  ;;  %v1517_v12 = vmul.f32 %v1501_v10, %v5546_v28  ;;  %v1644_v15 = vld [vmem:[#allocation2 + $0x4c] sm:$0xff]  ;;  %v1741_v43 = vld [vmem:[#allocation2 + $0x56] sm:$0xff] }
 0x3b0   :  { %v1831_v6 = vsel %vm1799_vm9, %v1783_v22, %v1815_v11  ;;  %v1564_v13 = vmul.f32 %v1548_v57, %v5551_v32  ;;  %v1565_v14 = vmul.f32 %v1549_v61, %v5551_v32  ;;  %v1532_v20 = vadd.f32 %v1516_v0, %v1468_v18  ;;  %v1691_v26 = vld [vmem:[#allocation2 + $0x45] sm:$0xff]  ;;  %v1692_v35 = vld [vmem:[#allocation2 + $0x4d] sm:$0xff]  ;;  %v1693_v11 = vld [vmem:[#allocation2 + $0x55] sm:$0xff] }
 0x3b1   :  { %1849 = vst.msk [vmem:[#allocation2 + $0x21] sm:$0xff] %vm137_vm1, %v1831_v6  ;;  %v1769_v56 = vadd.f32 %v1753_v50, %v1721_v4  ;;  %v1770_v34 = vadd.f32 %v1754_v58, %v1722_v7  ;;  %vm1800_vm10 = vcmp.gt.f32.partialorder %v1784_v39, 0.0  ;;  %v1816_v16 = vmul.f32 0.2, %v1784_v39  ;;  %v1739_v55 = vld [vmem:[#allocation2 + $0x46] sm:$0xff]  ;;  %v1740_v49 = vld [vmem:[#allocation2 + $0x4e] sm:$0xff] }
 0x3b2   :  { %v1533_v60 = vadd.f32 %v1517_v12, %v1469_v9  ;;  %v1612_v1 = vmul.f32 %v1596_v8, %v5556_v42  ;;  %v1659_v25 = vmul.f32 %v1643_v51, %v5562_v45  ;;  %v1580_v30 = vadd.f32 %v1564_v13, %v1532_v20  ;;  %v1457_v57 = vld [vmem:[#allocation2 + $0x70] sm:$0xff]  ;;  %v1454_v18 = vld [vmem:[#allocation2 + $0x58] sm:$0xff] }
 0x3b3   :  { %v1425_v21 = vpop.permute.xlu1 %1424  ;;  %v1785_v44 = vadd.f32 %v6066_v54, %v1769_v56  ;;  %v1786_v22 = vadd.f32 %v6066_v54, %v1770_v34  ;;  %v1832_v29 = vsel %vm1800_vm10, %v1784_v39, %v1816_v16  ;;  %v1660_v59 = vmul.f32 %v1644_v15, %v5562_v45  ;;  %v1505_v61 = vld [vmem:[#allocation2 + $0x71] sm:$0xff]  ;;  %v1502_v7 = vld [vmem:[#allocation2 + $0x59] sm:$0xff]  ;;  %v1456_v34 = vld [vmem:[#allocation2 + $0x68] sm:$0xff] }
 0x3b4   :  { %1442 = vst.msk [vmem:[#allocation2 + $0x7b] sm:$0xff] %vm137_vm1, %v1425_v21  ;;  %v1581_v36 = vadd.f32 %v1565_v14, %v1533_v60  ;;  %v1675_v38 = vadd.f32 %v1659_v25, %v1627_v23  ;;  %v1628_v37 = vadd.f32 %v1612_v1, %v1580_v30  ;;  %v1707_v53 = vmul.f32 %v1691_v26, %v5564_v46  ;;  %v1550_v39 = vld [vmem:[#allocation2 + $0x5a] sm:$0xff]  ;;  %v1504_v1 = vld [vmem:[#allocation2 + $0x69] sm:$0xff] }
 0x3b5   :  { %vm1801_vm11 = vcmp.gt.f32.partialorder %v1785_v44, 0.0  ;;  %v1817_v5 = vmul.f32 0.2, %v1785_v44  ;;  %1850 = vst.msk [vmem:[#allocation2 + $0x29] sm:$0xff] %vm137_vm1, %v1832_v29  ;;  %vm1802_vm12 = vcmp.gt.f32.partialorder %v1786_v22, 0.0  ;;  %v1661_v41 = vmul.f32 %v1645_v2, %v5562_v45  ;;  %v1598_v51 = vld [vmem:[#allocation2 + $0x5b] sm:$0xff] }
 0x3b6   :  { %v1818_v40 = vmul.f32 0.2, %v1786_v22  ;;  %v1629_v24 = vadd.f32 %v6045_v63, %v1581_v36  ;;  %v1708_v10 = vmul.f32 %v1692_v35, %v5564_v46  ;;  %v1676_v23 = vadd.f32 %v1660_v59, %v1628_v37  ;;  %v1455_v56 = vld [vmem:[#allocation2 + $0x60] sm:$0xff] }
 0x3b7   :  { %v1833_v58 = vsel %vm1801_vm11, %v1785_v44, %v1817_v5  ;;  %v1723_v4 = vadd.f32 %v1707_v53, %v1675_v38  ;;  %v1755_v50 = vmul.f32 %v1739_v55, %v5566_v47  ;;  %v1709_v9 = vmul.f32 %v1693_v11, %v5564_v46  ;;  %v1503_v16 = vld [vmem:[#allocation2 + $0x61] sm:$0xff] }
 0x3b8   :  { %v1834_v6 = vsel %vm1802_vm12, %v1786_v22, %v1818_v40  ;;  %1851 = vst.msk [vmem:[#allocation2 + $0x31] sm:$0xff] %vm137_vm1, %v1833_v58  ;;  %v1757_v63 = vmul.f32 %v1741_v43, %v5566_v47  ;;  %v1677_v0 = vadd.f32 %v1661_v41, %v1629_v24  ;;  %v1756_v8 = vmul.f32 %v1740_v49, %v5566_v47  ;;  %v1551_v2 = vld [vmem:[#allocation2 + $0x62] sm:$0xff]  ;;  %v1552_v49 = vld [vmem:[#allocation2 + $0x6a] sm:$0xff] }
 0x3b9   :  { %1852 = vst.msk [vmem:[#allocation2 + $0x39] sm:$0xff] %vm137_vm1, %v1834_v6  ;;  %v1724_v12 = vadd.f32 %v1708_v10, %v1676_v23  ;;  %v1771_v13 = vadd.f32 %v1755_v50, %v1723_v4  ;;  %v6114_v14 = vmul.f32 %v1457_v57, %v5544_v27  ;;  %v6117_v15 = vmul.f32 %v1505_v61, %v5546_v28  ;;  %v1599_v57 = vld [vmem:[#allocation2 + $0x63] sm:$0xff]  ;;  %v1648_v4 = vld [vmem:[#allocation2 + $0x6c] sm:$0xff] }
 0x3ba   :  { %v1725_v20 = vadd.f32 %v1709_v9, %v1677_v0  ;;  %v1470_v21 = vmul.f32 %v1454_v18, %v5544_v27  ;;  %v1518_v44 = vmul.f32 %v1502_v7, %v5546_v28  ;;  %v1566_v60 = vmul.f32 %v1550_v39, %v5551_v32  ;;  %v1646_v61 = vld [vmem:[#allocation2 + $0x5c] sm:$0xff]  ;;  %v1600_v50 = vld [vmem:[#allocation2 + $0x6b] sm:$0xff] }
 0x3bb   :  { %v1772_v25 = vadd.f32 %v1756_v8, %v1724_v12  ;;  %v1787_v26 = vadd.f32 %v6066_v54, %v1771_v13  ;;  %v1614_v22 = vmul.f32 %v1598_v51, %v5556_v42  ;;  %v1471_v29 = vmul.f32 %v1455_v56, %v5544_v27  ;;  %v6125_v30 = vld [vmem:[#allocation2 + $0x7a] sm:$0xff]  ;;  %v1553_v51 = vld [vmem:[#allocation2 + $0x72] sm:$0xff] }
 0x3bc   :  { %v6127_v59 = vld [vmem:[#allocation2 + $0x7b] sm:$0xff]  ;;  %v1773_v35 = vadd.f32 %v1757_v63, %v1725_v20  ;;  %v1534_v5 = vadd.f32 %v1518_v44, %v1470_v21  ;;  %v1472_v36 = vmul.f32 %v1456_v34, %v5544_v27  ;;  %v1519_v38 = vmul.f32 %v1503_v16, %v5546_v28  ;;  %v1647_v63 = vld [vmem:[#allocation2 + $0x64] sm:$0xff]  ;;  %v1696_v56 = vld [vmem:[#allocation2 + $0x6d] sm:$0xff] }
 0x3bd   :  { %v6131_v55 = vld [vmem:[#allocation2 + $0x7c] sm:$0xff]  ;;  %v1788_v43 = vadd.f32 %v6066_v54, %v1772_v25  ;;  %vm1803_vm13 = vcmp.gt.f32.partialorder %v1787_v26, 0.0  ;;  %v1819_v37 = vmul.f32 0.2, %v1787_v26  ;;  %v1520_v53 = vmul.f32 %v1504_v1, %v5546_v28  ;;  %v1601_v25 = vld [vmem:[#allocation2 + $0x73] sm:$0xff] }
 0x3be   :  { %v6133_v40 = vld [vmem:[#allocation2 + $0x7d] sm:$0xff]  ;;  %v1789_v58 = vadd.f32 %v6066_v54, %v1773_v35  ;;  %v1582_v41 = vadd.f32 %v1566_v60, %v1534_v5  ;;  %v1535_v24 = vadd.f32 %v1519_v38, %v1471_v29  ;;  %v1567_v10 = vmul.f32 %v1551_v2, %v5551_v32  ;;  %v1695_v60 = vld [vmem:[#allocation2 + $0x65] sm:$0xff]  ;;  %v1649_v35 = vld [vmem:[#allocation2 + $0x74] sm:$0xff] }
 0x3bf   :  { %v6135_v11 = vld [vmem:[#allocation2 + $0x7e] sm:$0xff]  ;;  %vm1804_vm14 = vcmp.gt.f32.partialorder %v1788_v43, 0.0  ;;  %v1820_v6 = vmul.f32 0.2, %v1788_v43  ;;  %v1835_v23 = vsel %vm1803_vm13, %v1787_v26, %v1819_v37  ;;  %v1536_v18 = vadd.f32 %v1520_v53, %v1472_v36  ;;  %v1743_v38 = vld [vmem:[#allocation2 + $0x66] sm:$0xff]  ;;  %v1744_v53 = vld [vmem:[#allocation2 + $0x6e] sm:$0xff] }
 0x3c0   :  { %1844 = vst.msk [vmem:[#allocation2 + $0x81] sm:$0x1] %vm564_vm2, %v5425_v17  ;;  %vm1805_vm15 = vcmp.gt.f32.partialorder %v1789_v58, 0.0  ;;  %v1821_v7 = vmul.f32 0.2, %v1789_v58  ;;  %v1630_v39 = vadd.f32 %v1614_v22, %v1582_v41  ;;  %v1568_v9 = vmul.f32 %v1552_v49, %v5551_v32  ;;  %v1694_v0 = vld [vmem:[#allocation2 + $0x5d] sm:$0xff] }
 0x3c1   :  { %1853 = vst.msk [vmem:[#allocation2 + $0x41] sm:$0xff] %vm137_vm1, %v1835_v23  ;;  %v1836_v8 = vsel %vm1804_vm14, %v1788_v43, %v1820_v6  ;;  %v1583_v12 = vadd.f32 %v1567_v10, %v1535_v24  ;;  %v1615_v13 = vmul.f32 %v1599_v57, %v5556_v42  ;;  %v1662_v34 = vmul.f32 %v1646_v61, %v5562_v45  ;;  %v1742_v1 = vld [vmem:[#allocation2 + $0x5e] sm:$0xff] }
 0x3c2   :  { %v1837_v16 = vsel %vm1805_vm15, %v1789_v58, %v1821_v7  ;;  %1854 = vst.msk [vmem:[#allocation2 + $0x49] sm:$0xff] %vm137_vm1, %v1836_v8  ;;  %v1664_v20 = vmul.f32 %v1648_v4, %v5562_v45  ;;  %v1616_v21 = vmul.f32 %v1600_v50, %v5556_v42  ;;  %v1584_v44 = vadd.f32 %v1568_v9, %v1536_v18  ;;  %v1458_v10 = vld [vmem:[#allocation2 + $0x78] sm:$0xff] }
 0x3c3   :  { %v1631_v26 = vadd.f32 %v1615_v13, %v1583_v12  ;;  %v1663_v22 = vmul.f32 %v1647_v63, %v5562_v45  ;;  %v1678_v29 = vadd.f32 %v1662_v34, %v1630_v39  ;;  %v1710_v2 = vmul.f32 %v1694_v0, %v5564_v46  ;;  %1855 = vst.msk [vmem:[#allocation2 + $0x51] sm:$0xff] %vm137_vm1, %v1837_v16  ;;  %v1506_v4 = vld [vmem:[#allocation2 + $0x79] sm:$0xff] }
 0x3c4   :  { %v1712_v5 = vmul.f32 %v1696_v56, %v5564_v46  ;;  %v1632_v36 = vadd.f32 %v1616_v21, %v1584_v44  ;;  %v1537_v43 = vadd.f32 %v6117_v15, %v6114_v14  ;;  %v1569_v37 = vmul.f32 %v1553_v51, %v5551_v32  ;;  %v1697_v18 = vld [vmem:[#allocation2 + $0x75] sm:$0xff] }
 0x3c5   :  { %v1679_v49 = vadd.f32 %v1663_v22, %v1631_v26  ;;  %v1711_v58 = vmul.f32 %v1695_v60, %v5564_v46  ;;  %v1726_v41 = vadd.f32 %v1710_v2, %v1678_v29  ;;  %v1758_v24 = vmul.f32 %v1742_v1, %v5566_v47  ;;  %v1745_v51 = vld [vmem:[#allocation2 + $0x76] sm:$0xff] }
 0x3c6   :  { %v1680_v57 = vadd.f32 %v1664_v20, %v1632_v36  ;;  %v1585_v61 = vadd.f32 %v1569_v37, %v1537_v43  ;;  %v1617_v6 = vmul.f32 %v1601_v25, %v5556_v42  ;;  %v1665_v23 = vmul.f32 %v1649_v35, %v5562_v45 }
 0x3c7   :  { %v1727_v50 = vadd.f32 %v1711_v58, %v1679_v49  ;;  %v1759_v14 = vmul.f32 %v1743_v38, %v5566_v47  ;;  %v1774_v15 = vadd.f32 %v1758_v24, %v1726_v41  ;;  %v1760_v7 = vmul.f32 %v1744_v53, %v5566_v47 }
 0x3c8   :  { %v1728_v39 = vadd.f32 %v1712_v5, %v1680_v57  ;;  %v1633_v9 = vadd.f32 %v1617_v6, %v1585_v61  ;;  %v1474_v63 = vmul.f32 %v1458_v10, %v5544_v27  ;;  %v6165_v56 = vld [vmem:[#allocation2 + $0x33] ss:$2 sm:$0xff]  ;;  %v1522_v13 = vmul.f32 %v1506_v4, %v5546_v28 }
 0x3c9   :  { %v1775_v0 = vadd.f32 %v1759_v14, %v1727_v50  ;;  %v1790_v8 = vadd.f32 %v6066_v54, %v1774_v15  ;;  %v6167_v12 = vld [vmem:[#allocation2 + $0x41] ss:$2 sm:$0xff]  ;;  %v1713_v20 = vmul.f32 %v1697_v18, %v5564_v46  ;;  %v1570_v21 = vmul.f32 %v6125_v30, %v5551_v32  ;;  %v1446_v4 = vld [vmem:[#allocation2 + $0x18] sm:$0xff] }
 0x3ca   :  { %v1776_v34 = vadd.f32 %v1760_v7, %v1728_v39  ;;  %v1681_v16 = vadd.f32 %v1665_v23, %v1633_v9  ;;  %2139 = vst.msk [vmem:[#allocation2 + $0x41] sm:$0x1] %vm564_vm2, %v5425_v17  ;;  %v1538_v1 = vadd.f32 %v1522_v13, %v1474_v63  ;;  %v1761_v22 = vmul.f32 %v1745_v51, %v5566_v47  ;;  %v1494_v50 = vld [vmem:[#allocation2 + $0x19] sm:$0xff] }
 0x3cb   :  { %v1791_v44 = vadd.f32 %v6066_v54, %v1775_v0  ;;  %vm1806_vm3 = vcmp.gt.f32.partialorder %v1790_v8, 0.0  ;;  %v1822_v60 = vmul.f32 0.2, %v1790_v8  ;;  %v1618_v29 = vmul.f32 %v6127_v59, %v5556_v42 }
 0x3cc   :  { %v1792_v25 = vadd.f32 %v6066_v54, %v1776_v34  ;;  %v1729_v26 = vadd.f32 %v1713_v20, %v1681_v16  ;;  %v1586_v5 = vadd.f32 %v1570_v21, %v1538_v1  ;;  %v1666_v37 = vmul.f32 %v6131_v55, %v5562_v45 }
 0x3cd   :  { %vm1807_vm4 = vcmp.gt.f32.partialorder %v1791_v44, 0.0  ;;  %v1823_v2 = vmul.f32 0.2, %v1791_v44  ;;  %v1838_v35 = vsel %vm1806_vm3, %v1790_v8, %v1822_v60  ;;  %v1714_v58 = vmul.f32 %v6133_v40, %v5564_v46 }
 0x3ce   :  { %vm1808_vm5 = vcmp.gt.f32.partialorder %v1792_v25, 0.0  ;;  %v1824_v36 = vmul.f32 0.2, %v1792_v25  ;;  %1856 = vst.msk [vmem:[#allocation2 + $0x59] sm:$0xff] %vm137_vm1, %v1838_v35  ;;  %v1777_v30 = vadd.f32 %v1761_v22, %v1729_v26  ;;  %v1634_v43 = vadd.f32 %v1618_v29, %v1586_v5  ;;  %v1589_v29 = vld [vmem:[#allocation2 + $0x13] sm:$0xff] }
 0x3cf   :  { %v1839_v38 = vsel %vm1807_vm4, %v1791_v44, %v1823_v2  ;;  %v1762_v10 = vmul.f32 %v6135_v11, %v5566_v47  ;;  %v1462_v40 = vmul.f32 %v1446_v4, %v5544_v27  ;;  %v1510_v14 = vmul.f32 %v1494_v50, %v5546_v28  ;;  %v5414_v11 = vld [vmem:[%s7175_s4 + $0x2] ss:$0 sm:$0xff]  ;;  %v1637_v2 = vld [vmem:[#allocation2 + $0x14] sm:$0xff] }
 0x3d0   :  { %v1840_v53 = vsel %vm1808_vm5, %v1792_v25, %v1824_v36  ;;  %1857 = vst.msk [vmem:[#allocation2 + $0x61] sm:$0xff] %vm137_vm1, %v1839_v38  ;;  %v1793_v49 = vadd.f32 %v6066_v54, %v1777_v30  ;;  %v1682_v59 = vadd.f32 %v1666_v37, %v1634_v43  ;;  %v1558_v39 = vmul.f32 %v6074_v62, %v5551_v32  ;;  %v1685_v35 = vld [vmem:[#allocation2 + $0x15] sm:$0xff] }
 0x3d1   :  { %1858 = vst.msk [vmem:[#allocation2 + $0x69] sm:$0xff] %vm137_vm1, %v1840_v53  ;;  %v1526_v15 = vadd.f32 %v1510_v14, %v1462_v40  ;;  %v1606_v8 = vmul.f32 %v6076_v33, %v5556_v42  ;;  %v1654_v16 = vmul.f32 %v6080_v48, %v5562_v45  ;;  %v1702_v62 = vmul.f32 %v6082_v3, %v5564_v46  ;;  %v1733_v5 = vld [vmem:[#allocation2 + $0x16] sm:$0xff] }
 0x3d2   :  { %vm1809_vm8 = vcmp.gt.f32.partialorder %v1793_v49, 0.0  ;;  %v1825_v41 = vmul.f32 0.2, %v1793_v49  ;;  %v1730_v24 = vadd.f32 %v1714_v58, %v1682_v59  ;;  %v1750_v33 = vmul.f32 %v6084_v19, %v5566_v47 }
 0x3d3   :  { %v1574_v63 = vadd.f32 %v1558_v39, %v1526_v15 }
 0x3d4   :  { %v1841_v57 = vsel %vm1809_vm8, %v1793_v49, %v1825_v41  ;;  %v1778_v61 = vadd.f32 %v1762_v10, %v1730_v24 }
 0x3d5   :  { %1859 = vst.msk [vmem:[#allocation2 + $0x71] sm:$0xff] %vm137_vm1, %v1841_v57  ;;  %v1622_v51 = vadd.f32 %v1606_v8, %v1574_v63  ;;  %v1605_v63 = vmul.f32 %v1589_v29, %v5556_v42 }
 0x3d6   :  { %v1794_v55 = vadd.f32 %v6066_v54, %v1778_v61 }
 0x3d7   :  { %v1670_v21 = vadd.f32 %v1654_v16, %v1622_v51 }
 0x3d8   :  { %vm1810_vm9 = vcmp.gt.f32.partialorder %v1794_v55, 0.0  ;;  %v1826_v6 = vmul.f32 0.2, %v1794_v55 }
 0x3d9   :  { %v1718_v60 = vadd.f32 %v1702_v62, %v1670_v21 }
 0x3da   :  { %v1842_v23 = vsel %vm1810_vm9, %v1794_v55, %v1826_v6 }
 0x3db   :  { %1860 = vst.msk [vmem:[#allocation2 + $0x79] sm:$0xff] %vm137_vm1, %v1842_v23  ;;  %v1766_v1 = vadd.f32 %v1750_v33, %v1718_v60 }
 0x3dd   :  { %v1782_v3 = vadd.f32 %v6066_v54, %v1766_v1 }
 0x3df   :  { %v1814_v19 = vmul.f32 0.2, %v1782_v3  ;;  %vm1798_vm12 = vcmp.gt.f32.partialorder %v1782_v3, 0.0 }
 0x40e   :  { %v1206_v18 = vpop.f32.mrf.mxu2 }
 0x40f   :  { %v1207_v7 = vadd.f32 %v5414_v11, %v1206_v18 }
 0x411   :  { %vm1211_vm10 = vcmp.gt.f32.partialorder %v1207_v7, 0.0  ;;  %v1213_v9 = vmul.f32 0.2, %v1207_v7 }
 0x413   :  { %v1215_v0 = vsel %vm1211_vm10, %v1207_v7, %v1213_v9 }
 0x414   :  { %1219 = vst.msk [vmem:[#allocation2 + $0x1] sm:$0xff] %vm137_vm1, %v1215_v0 }
 0x416   :  { %v1208_v13 = vpop.f32.mrf.mxu2 }
 0x417   :  { %v1209_v34 = vadd.f32 %v5414_v11, %v1208_v13 }
 0x419   :  { %vm1212_vm11 = vcmp.gt.f32.partialorder %v1209_v34, 0.0  ;;  %v1214_v20 = vmul.f32 0.2, %v1209_v34 }
 0x41b   :  { %v1216_v44 = vsel %vm1212_vm11, %v1209_v34, %v1214_v20 }
 0x41c   :  { %1220 = vst.msk [vmem:[#allocation2 + $0x9] sm:$0xff] %vm137_vm1, %v1216_v44 }
 0x423   :  { %v6210_v25 = vld [vmem:[#allocation2] ss:$2 sm:$0xff]  ;;  %v6212_v26 = vld [vmem:[#allocation2 + $0x1] ss:$2 sm:$0xff] }
 0x424   :  { %v6214_v22 = vld [vmem:[#allocation2 + $0x2] ss:$2 sm:$0xff]  ;;  %v6216_v48 = vld [vmem:[#allocation2 + $0x3] ss:$2 sm:$0xff] }
 0x425   :  { %1328 = vst.msk [vmem:[#allocation2] sm:$0x7] %vm38_vm0, %v5425_v17 }
 0x426   :  { %1427 = vst.msk [vmem:[#allocation2 + $0x3] sm:$0xff] %vm137_vm1, %v6024_v52 }
 0x427   :  { %1428 = vst.msk [vmem:[#allocation2 + $0xb] sm:$0xff] %vm137_vm1, %v6012_v31  ;;  %v1830_v31 = vsel %vm1798_vm12, %v1782_v3, %v1814_v19 }
 0x42d   :  { %v1443_v36 = vld [vmem:[#allocation2] sm:$0xff] }
 0x42e   :  { %v1491_v30 = vld [vmem:[#allocation2 + $0x1] sm:$0xff]  ;;  %v1445_v37 = vld [vmem:[#allocation2 + $0x10] sm:$0xff]  ;;  %v1459_v53 = vmul.f32 %v1443_v36, %v5544_v27  ;;  %1843 = vst.msk [vmem:[#allocation2] sm:$0x1] %vm564_vm2, %v5425_v17 }
 0x42f   :  { %v1539_v38 = vld [vmem:[#allocation2 + $0x2] sm:$0xff]  ;;  %v1507_v52 = vmul.f32 %v1491_v30, %v5546_v28  ;;  %v1461_v58 = vmul.f32 %v1445_v37, %v5544_v27  ;;  %v1493_v41 = vld [vmem:[#allocation2 + $0x11] sm:$0xff] }
 0x430   :  { %v1444_v43 = vld [vmem:[#allocation2 + $0x8] sm:$0xff]  ;;  %v1541_v57 = vld [vmem:[#allocation2 + $0x12] sm:$0xff]  ;;  %v1509_v61 = vmul.f32 %v1493_v41, %v5546_v28  ;;  %v1555_v6 = vmul.f32 %v1539_v38, %v5551_v32  ;;  %v1749_v38 = vmul.f32 %v1733_v5, %v5566_v47 }
 0x431   :  { %v1492_v49 = vld [vmem:[#allocation2 + $0x9] sm:$0xff]  ;;  %v1460_v59 = vmul.f32 %v1444_v43, %v5544_v27  ;;  %v1523_v55 = vadd.f32 %v1507_v52, %v1459_v53  ;;  %1848 = vst.msk [vmem:[#allocation2 + $0x19] sm:$0xff] %vm137_vm1, %v1830_v31  ;;  %v1557_v27 = vmul.f32 %v1541_v57, %v5551_v32  ;;  %v5036_v5 = vld [vmem:[%s7176_s3 + $0x38] sm:$0xff] }
 0x432   :  { %v1508_v24 = vmul.f32 %v1492_v49, %v5546_v28  ;;  %v1540_v10 = vld [vmem:[#allocation2 + $0xa] sm:$0xff]  ;;  %v1525_v11 = vadd.f32 %v1509_v61, %v1461_v58  ;;  %2085 = vmatpush.bf16.msrb.mxu1 %v5036_v5 }
 0x433   :  { %v1587_v23 = vld [vmem:[#allocation2 + $0x3] sm:$0xff]  ;;  %v1588_v4 = vld [vmem:[#allocation2 + $0xb] sm:$0xff]  ;;  %v1556_v40 = vmul.f32 %v1540_v10, %v5551_v32  ;;  %v1571_v15 = vadd.f32 %v1555_v6, %v1523_v55  ;;  %v1653_v32 = vmul.f32 %v1637_v2, %v5562_v45 }
 0x434   :  { %v1524_v50 = vadd.f32 %v1508_v24, %v1460_v59  ;;  %v1635_v14 = vld [vmem:[#allocation2 + $0x4] sm:$0xff]  ;;  %v1603_v18 = vmul.f32 %v1587_v23, %v5556_v42  ;;  %v1636_v7 = vld [vmem:[#allocation2 + $0xc] sm:$0xff]  ;;  %v1604_v28 = vmul.f32 %v1588_v4, %v5556_v42  ;;  %v1573_v0 = vadd.f32 %v1557_v27, %v1525_v11 }
 0x435   :  { %v1683_v9 = vld [vmem:[#allocation2 + $0x5] sm:$0xff]  ;;  %v1651_v51 = vmul.f32 %v1635_v14, %v5562_v45  ;;  %v1684_v13 = vld [vmem:[#allocation2 + $0xd] sm:$0xff]  ;;  %v1652_v16 = vmul.f32 %v1636_v7, %v5562_v45  ;;  %v1701_v42 = vmul.f32 %v1685_v35, %v5564_v46 }
 0x436   :  { %v1572_v39 = vadd.f32 %v1556_v40, %v1524_v50  ;;  %v1619_v8 = vadd.f32 %v1603_v18, %v1571_v15  ;;  %v1731_v20 = vld [vmem:[#allocation2 + $0x6] sm:$0xff]  ;;  %v1621_v21 = vadd.f32 %v1605_v63, %v1573_v0  ;;  %v1699_v62 = vmul.f32 %v1683_v9, %v5564_v46  ;;  %v1732_v60 = vld [vmem:[#allocation2 + $0xe] sm:$0xff] }
 0x437   :  { %v1700_v1 = vmul.f32 %v1684_v13, %v5564_v46  ;;  %v1747_v29 = vmul.f32 %v1731_v20, %v5566_v47  ;;  %v1748_v30 = vmul.f32 %v1732_v60, %v5566_v47  ;;  %v1880_v50 = vld [vmem:[#allocation2 + $0x32] ss:$2 sm:$0xff]  ;;  %v1872_v40 = vld [vmem:[#allocation2 + $0x31] ss:$2 sm:$0xff]  ;;  %v1879_v11 = vld [vmem:[#allocation2 + $0x22] ss:$2 sm:$0xff] }
 0x438   :  { %v1620_v34 = vadd.f32 %v1604_v28, %v1572_v39  ;;  %v1667_v44 = vadd.f32 %v1651_v51, %v1619_v8  ;;  %v1669_v3 = vadd.f32 %v1653_v32, %v1621_v21  ;;  %v1887_v14 = vld [vmem:[#allocation2 + $0x23] ss:$2 sm:$0xff]  ;;  %v5326_v15 = vpack.i.bf16 %v1880_v50, %v1879_v11  ;;  %v1890_v39 = vld [vmem:[#allocation2 + $0x53] ss:$2 sm:$0xff]  ;;  %v1882_v28 = vld [vmem:[#allocation2 + $0x52] ss:$2 sm:$0xff] }
 0x439   :  { %v5331_v27 = vpack.i.bf16 %v6165_v56, %v1887_v14  ;;  %v1871_v18 = vld [vmem:[#allocation2 + $0x21] ss:$2 sm:$0xff]  ;;  %v1874_v9 = vld [vmem:[#allocation2 + $0x51] ss:$2 sm:$0xff]  ;;  %v1881_v0 = vld [vmem:[#allocation2 + $0x42] ss:$2 sm:$0xff] }
 0x43a   :  { %v1668_v33 = vadd.f32 %v1652_v16, %v1620_v34  ;;  %v1715_v19 = vadd.f32 %v1699_v62, %v1667_v44  ;;  %v1717_v45 = vadd.f32 %v1701_v42, %v1669_v3  ;;  %v5321_v7 = vpack.i.bf16 %v1872_v40, %v1871_v18  ;;  %v1889_v63 = vld [vmem:[#allocation2 + $0x43] ss:$2 sm:$0xff]  ;;  %v1892_v56 = vld [vmem:[#allocation2 + $0x73] ss:$2 sm:$0xff]  ;;  %v1884_v34 = vld [vmem:[#allocation2 + $0x72] ss:$2 sm:$0xff] }
 0x43b   :  { %v5346_v8 = vpack.i.bf16 %v1890_v39, %v1889_v63  ;;  %v5341_v51 = vpack.i.bf16 %v1882_v28, %v1881_v0  ;;  %v5336_v13 = vpack.i.bf16 %v1874_v9, %v6167_v12  ;;  %v1876_v16 = vld [vmem:[#allocation2 + $0x71] ss:$2 sm:$0xff]  ;;  %v1883_v32 = vld [vmem:[#allocation2 + $0x62] ss:$2 sm:$0xff]  ;;  %v1875_v62 = vld [vmem:[#allocation2 + $0x61] ss:$2 sm:$0xff] }
 0x43c   :  { %v1716_v36 = vadd.f32 %v1700_v1, %v1668_v33  ;;  %v1763_v2 = vadd.f32 %v1747_v29, %v1715_v19  ;;  %v1765_v37 = vadd.f32 %v1749_v38, %v1717_v45  ;;  %v1891_v20 = vld [vmem:[#allocation2 + $0x63] ss:$2 sm:$0xff]  ;;  %v5356_v44 = vpack.i.bf16 %v1884_v34, %v1883_v32  ;;  %v5032_v42 = vld [vmem:[%s7176_s3 + $0x18] sm:$0xff] }
 0x43d   :  { %v5361_v21 = vpack.i.bf16 %v1892_v56, %v1891_v20  ;;  %v5351_v60 = vpack.i.bf16 %v1876_v16, %v1875_v62  ;;  %v5035_v12 = vld [vmem:[%s7176_s3 + $0x30] sm:$0xff]  ;;  %v5034_v33 = vld [vmem:[%s7176_s3 + $0x28] sm:$0xff]  ;;  %v5033_v1 = vld [vmem:[%s7176_s3 + $0x20] sm:$0xff] }
 0x43e   :  { %v1764_v43 = vadd.f32 %v1748_v30, %v1716_v36  ;;  %v1779_v53 = vadd.f32 %v6066_v54, %v1763_v2  ;;  %v1781_v52 = vadd.f32 %v6066_v54, %v1765_v37  ;;  %2086 = vmatpush.bf16.msrb.mxu1 %v5035_v12  ;;  %v5031_v3 = vld [vmem:[%s7176_s3 + $0x10] sm:$0xff]  ;;  %v5030_v19 = vld [vmem:[%s7176_s3 + $0x8] sm:$0xff]  ;;  %v5029_v29 = vld [vmem:[%s7176_s3] sm:$0xff] }
 0x43f   :  { %v1866_v56 = vld [vmem:[#allocation2 + $0x50] ss:$2 sm:$0xff] }
 0x440   :  { %v1780_v49 = vadd.f32 %v6066_v54, %v1764_v43  ;;  %vm1795_vm0 = vcmp.gt.f32.partialorder %v1779_v53, 0.0  ;;  %v1811_v46 = vmul.f32 0.2, %v1779_v53  ;;  %vm1797_vm14 = vcmp.gt.f32.partialorder %v1781_v52, 0.0 }
 0x441   :  { %v1813_v31 = vmul.f32 0.2, %v1781_v52 }
 0x442   :  { %vm1796_vm13 = vcmp.gt.f32.partialorder %v1780_v49, 0.0  ;;  %v1812_v35 = vmul.f32 0.2, %v1780_v49  ;;  %v1827_v59 = vsel %vm1795_vm0, %v1779_v53, %v1811_v46  ;;  %2087 = vmatpush.bf16.msrb.mxu1 %v5034_v33 }
 0x443   :  { %1845 = vst.msk [vmem:[#allocation2 + $0x1] sm:$0xff] %vm137_vm1, %v1827_v59  ;;  %v1829_v47 = vsel %vm1797_vm14, %v1781_v52, %v1813_v31 }
 0x444   :  { %v1828_v58 = vsel %vm1796_vm13, %v1780_v49, %v1812_v35  ;;  %1847 = vst.msk [vmem:[#allocation2 + $0x11] sm:$0xff] %vm137_vm1, %v1829_v47 }
 0x445   :  { %1846 = vst.msk [vmem:[#allocation2 + $0x9] sm:$0xff] %vm137_vm1, %v1828_v58 }
 0x446   :  { %2088 = vmatpush.bf16.msrb.mxu1 %v5033_v1 }
 0x44a   :  { %2089 = vmatpush.bf16.msrb.mxu1 %v5032_v42 }
 0x44b   :  { %v1886_v57 = vld [vmem:[#allocation2 + $0x13] ss:$2 sm:$0xff]  ;;  %v1878_v61 = vld [vmem:[#allocation2 + $0x12] ss:$2 sm:$0xff] }
 0x44c   :  { %v1877_v54 = vld [vmem:[#allocation2 + $0x2] ss:$2 sm:$0xff]  ;;  %v1869_v41 = vld [vmem:[#allocation2 + $0x1] ss:$2 sm:$0xff]  ;;  %v1870_v23 = vld [vmem:[#allocation2 + $0x11] ss:$2 sm:$0xff] }
 0x44d   :  { %v6258_v24 = vld [vmem:[#allocation2] ss:$2 sm:$0xff]  ;;  %v1885_v10 = vld [vmem:[#allocation2 + $0x3] ss:$2 sm:$0xff]  ;;  %v5311_v6 = vpack.i.bf16 %v1878_v61, %v1877_v54  ;;  %v5306_v4 = vpack.i.bf16 %v1870_v23, %v1869_v41  ;;  %v1862_v43 = vld [vmem:[#allocation2 + $0x10] ss:$2 sm:$0xff] }
 0x44e   :  { %v5316_v55 = vpack.i.bf16 %v1886_v57, %v1885_v10  ;;  %2138 = vst.msk [vmem:[#allocation2] sm:$0x1] %vm564_vm2, %v5425_v17  ;;  %2090 = vmatpush.bf16.msrb.mxu1 %v5031_v3  ;;  %v1863_v23 = vld [vmem:[#allocation2 + $0x20] ss:$2 sm:$0xff] }
 0x44f   :  { %5312 = vrot.lane.b32.xlu0 %v5311_v6, %s5427_s29  ;;  %5307 = vrot.lane.b32.xlu2 %v5306_v4, %s5428_s30  ;;  %v1864_v4 = vld [vmem:[#allocation2 + $0x30] ss:$2 sm:$0xff] }
 0x450   :  { %5317 = vrot.lane.b32.xlu1 %v5316_v55, %s5426_s28 }
 0x452   :  { %2091 = vmatpush.bf16.msrb.mxu1 %v5030_v19 }
 0x456   :  { %2092 = vmatpush.bf16.msrb.mxu1 %v5029_v29 }
 0x457   :  { %5327 = vrot.lane.b32.xlu0 %v5326_v15, %s5427_s29  ;;  %5322 = vrot.lane.b32.xlu2 %v5321_v7, %s5428_s30 }
 0x458   :  { %5332 = vrot.lane.b32.xlu1 %v5331_v27, %s5426_s28 }
 0x45f   :  { %5342 = vrot.lane.b32.xlu0 %v5341_v51, %s5427_s29  ;;  %5337 = vrot.lane.b32.xlu2 %v5336_v13, %s5428_s30  ;;  %v1865_v13 = vld [vmem:[#allocation2 + $0x40] ss:$2 sm:$0xff] }
 0x460   :  { %5347 = vrot.lane.b32.xlu1 %v5346_v8, %s5426_s28 }
 0x467   :  { %5357 = vrot.lane.b32.xlu0 %v5356_v44, %s5427_s29  ;;  %5352 = vrot.lane.b32.xlu2 %v5351_v60, %s5428_s30 }
 0x468   :  { %5362 = vrot.lane.b32.xlu1 %v5361_v21, %s5426_s28 }
 0x4a9   :  { %v5308_v36 = vpop.permute.xlu2 %5307 }
 0x4aa   :  { %v5310_v30 = vunpack.i.h.bf16 %v5308_v36  ;;  %v5309_v38 = vunpack.i.l.bf16 %v5308_v36 }
 0x4ac   :  { %v1990_v46 = vsel %vm137_vm1, %v1862_v43, %v5310_v30  ;;  %v1989_v35 = vsel %vm137_vm1, %v6258_v24, %v5309_v38  ;;  %v1867_v30 = vld [vmem:[#allocation2 + $0x60] ss:$2 sm:$0xff]  ;;  %v1868_v38 = vld [vmem:[#allocation2 + $0x70] ss:$2 sm:$0xff] }
 0x4b1   :  { %v5323_v54 = vpop.permute.xlu2 %5322 }
 0x4b2   :  { %v5325_v10 = vunpack.i.h.bf16 %v5323_v54  ;;  %v5324_v57 = vunpack.i.l.bf16 %v5323_v54 }
 0x4b4   :  { %v1992_v24 = vsel %vm137_vm1, %v1864_v4, %v5325_v10  ;;  %v1991_v50 = vsel %vm137_vm1, %v1863_v23, %v5324_v57 }
 0x4b9   :  { %v5338_v39 = vpop.permute.xlu2 %5337 }
 0x4ba   :  { %v5340_v9 = vunpack.i.h.bf16 %v5338_v39  ;;  %v5339_v63 = vunpack.i.l.bf16 %v5338_v39 }
 0x4bc   :  { %v1994_v34 = vsel %vm137_vm1, %v1866_v56, %v5340_v9  ;;  %v1993_v16 = vsel %vm137_vm1, %v1865_v13, %v5339_v63 }
 0x4c1   :  { %v5313_v2 = vpop.permute.xlu0 %5312  ;;  %v5353_v33 = vpop.permute.xlu2 %5352 }
 0x4c2   :  { %v5318_v45 = vpop.permute.xlu1 %5317  ;;  %v5315_v49 = vunpack.i.h.bf16 %v5313_v2  ;;  %v5314_v52 = vunpack.i.l.bf16 %v5313_v2  ;;  %v5355_v42 = vunpack.i.h.bf16 %v5353_v33  ;;  %v5354_v3 = vunpack.i.l.bf16 %v5353_v33 }
 0x4c3   :  { %v5320_v37 = vunpack.i.h.bf16 %v5318_v45  ;;  %v5319_v53 = vunpack.i.l.bf16 %v5318_v45 }
 0x4c4   :  { %v1997_v31 = vsel %vm750_vm6, %v1989_v35, %v5314_v52  ;;  %v1998_v59 = vsel %vm750_vm6, %v1990_v46, %v5315_v49  ;;  %v1996_v45 = vsel %vm137_vm1, %v1868_v38, %v5355_v42  ;;  %v1995_v2 = vsel %vm137_vm1, %v1867_v30, %v5354_v3 }
 0x4c5   :  { %v2005_v58 = vsel %vm759_vm7, %v1997_v31, %v5319_v53  ;;  %v2006_v47 = vsel %vm759_vm7, %v1998_v59, %v5320_v37  ;;  %v5415_v31 = vld [vmem:[%s7175_s4] ss:$0 sm:$0xff] }
 0x4c6   :  { %v2013_v5 = vpack.c.bf16 %v2006_v47, %v2005_v58 }
 0x4c8   :  { %2093 = vmatmul.bf16.vlgmr.msrb.gmra.mxu1 %v2013_v5 }
 0x4c9   :  { %v5328_v41 = vpop.permute.xlu0 %5327 }
 0x4ca   :  { %v5333_v61 = vpop.permute.xlu1 %5332  ;;  %v5330_v55 = vunpack.i.h.bf16 %v5328_v41  ;;  %v5329_v6 = vunpack.i.l.bf16 %v5328_v41 }
 0x4cb   :  { %v5335_v40 = vunpack.i.h.bf16 %v5333_v61  ;;  %v5334_v14 = vunpack.i.l.bf16 %v5333_v61 }
 0x4cc   :  { %v1999_v11 = vsel %vm750_vm6, %v1991_v50, %v5329_v6  ;;  %v2000_v27 = vsel %vm750_vm6, %v1992_v24, %v5330_v55 }
 0x4cd   :  { %v2007_v15 = vsel %vm759_vm7, %v1999_v11, %v5334_v14  ;;  %v2008_v18 = vsel %vm759_vm7, %v2000_v27, %v5335_v40 }
 0x4ce   :  { %v2014_v7 = vpack.c.bf16 %v2008_v18, %v2007_v15 }
 0x4d1   :  { %v5343_v28 = vpop.permute.xlu0 %5342 }
 0x4d2   :  { %v5348_v0 = vpop.permute.xlu1 %5347  ;;  %v5345_v8 = vunpack.i.h.bf16 %v5343_v28  ;;  %v5344_v51 = vunpack.i.l.bf16 %v5343_v28 }
 0x4d3   :  { %v5350_v20 = vunpack.i.h.bf16 %v5348_v0  ;;  %v5349_v32 = vunpack.i.l.bf16 %v5348_v0 }
 0x4d4   :  { %v2001_v21 = vsel %vm750_vm6, %v1993_v16, %v5344_v51  ;;  %v2002_v44 = vsel %vm750_vm6, %v1994_v34, %v5345_v8 }
 0x4d5   :  { %v2009_v62 = vsel %vm759_vm7, %v2001_v21, %v5349_v32  ;;  %v2010_v60 = vsel %vm759_vm7, %v2002_v44, %v5350_v20 }
 0x4d6   :  { %v2015_v12 = vpack.c.bf16 %v2010_v60, %v2009_v62 }
 0x4d8   :  { %2098 = vmatmul.bf16.gmra.mxu1 %v2014_v7 }
 0x4d9   :  { %v5358_v1 = vpop.permute.xlu0 %5357 }
 0x4da   :  { %v5363_v19 = vpop.permute.xlu1 %5362  ;;  %v5360_v29 = vunpack.i.h.bf16 %v5358_v1  ;;  %v5359_v36 = vunpack.i.l.bf16 %v5358_v1 }
 0x4db   :  { %v5365_v43 = vunpack.i.h.bf16 %v5363_v19  ;;  %v5364_v37 = vunpack.i.l.bf16 %v5363_v19 }
 0x4dc   :  { %v2003_v53 = vsel %vm750_vm6, %v1995_v2, %v5359_v36  ;;  %v2004_v49 = vsel %vm750_vm6, %v1996_v45, %v5360_v29 }
 0x4dd   :  { %v2011_v52 = vsel %vm759_vm7, %v2003_v53, %v5364_v37  ;;  %v2012_v46 = vsel %vm759_vm7, %v2004_v49, %v5365_v43  ;;  %v5044_v43 = vld [vmem:[%s7176_s3 + $0x78] sm:$0xff]  ;;  %v5043_v37 = vld [vmem:[%s7176_s3 + $0x70] sm:$0xff]  ;;  %v5038_v49 = vld [vmem:[%s7176_s3 + $0x48] sm:$0xff] }
 0x4de   :  { %v2016_v35 = vpack.c.bf16 %v2012_v46, %v2011_v52  ;;  %2294 = vmatpush.bf16.msrb.mxu2 %v5044_v43  ;;  %v5039_v53 = vld [vmem:[%s7176_s3 + $0x50] sm:$0xff]  ;;  %v5037_v52 = vld [vmem:[%s7176_s3 + $0x40] sm:$0xff]  ;;  %v5028_v46 = vld [vmem:[%s7176_s3 + $0xf8] sm:$0xff] }
 0x4df   :  { %1311 = vmatpush.bf16.msra.mxu3 %v5028_v46 }
 0x4e2   :  { %2295 = vmatpush.bf16.msrb.mxu2 %v5043_v37 }
 0x4e8   :  { %2103 = vmatmul.bf16.gmra.mxu1 %v2015_v12 }
 0x4f8   :  { %2108 = vmatmul.bf16.gmra.mxu1 %v2016_v35  ;;  %v5027_v35 = vld [vmem:[%s7176_s3 + $0xf0] sm:$0xff] }
 0x4f9   :  { %1312 = vmatpush.bf16.msra.mxu3 %v5027_v35  ;;  %v5417_v35 = vld [vmem:[%s7175_s4 + $0x3] ss:$0 sm:$0xff] }
 0x545   :  { %v2094_v59 = vpop.f32.mrf.mxu1 }
 0x546   :  { %v2095_v58 = vadd.f32 %v5415_v31, %v2094_v59  ;;  %v5025_v59 = vld [vmem:[%s7176_s3 + $0xe0] sm:$0xff] }
 0x548   :  { %vm2114_vm15 = vcmp.gt.f32.partialorder %v2095_v58, 0.0  ;;  %v2122_v47 = vmul.f32 0.2, %v2095_v58 }
 0x54a   :  { %v2130_v5 = vsel %vm2114_vm15, %v2095_v58, %v2122_v47  ;;  %v5024_v58 = vld [vmem:[%s7176_s3 + $0xd8] sm:$0xff]  ;;  %v5023_v47 = vld [vmem:[%s7176_s3 + $0xd0] sm:$0xff] }
 0x54b   :  { %2140 = vst.msk [vmem:[#allocation2 + $0x1] sm:$0xff] %vm137_vm1, %v2130_v5 }
 0x54d   :  { %v2096_v54 = vpop.f32.mrf.mxu1 }
 0x54e   :  { %v2097_v41 = vadd.f32 %v5415_v31, %v2096_v54 }
 0x550   :  { %vm2115_vm3 = vcmp.gt.f32.partialorder %v2097_v41, 0.0  ;;  %v2123_v10 = vmul.f32 0.2, %v2097_v41 }
 0x552   :  { %v2131_v57 = vsel %vm2115_vm3, %v2097_v41, %v2123_v10  ;;  %v5022_v41 = vld [vmem:[%s7176_s3 + $0xc8] sm:$0xff] }
 0x553   :  { %2141 = vst.msk [vmem:[#allocation2 + $0x9] sm:$0xff] %vm137_vm1, %v2131_v57 }
 0x555   :  { %v2099_v61 = vpop.f32.mrf.mxu1 }
 0x556   :  { %v2100_v55 = vadd.f32 %v5415_v31, %v2099_v61 }
 0x558   :  { %vm2116_vm4 = vcmp.gt.f32.partialorder %v2100_v55, 0.0  ;;  %v2124_v6 = vmul.f32 0.2, %v2100_v55 }
 0x55a   :  { %v2132_v23 = vsel %vm2116_vm4, %v2100_v55, %v2124_v6  ;;  %v6328_v4 = vld [vmem:[#allocation2] ss:$2 sm:$0xff]  ;;  %v2152_v28 = vld [vmem:[#allocation2 + $0x1] ss:$2 sm:$0xff] }
 0x55b   :  { %2142 = vst.msk [vmem:[#allocation2 + $0x11] sm:$0xff] %vm137_vm1, %v2132_v23  ;;  %v2156_v18 = vld [vmem:[#allocation2 + $0x2] ss:$2 sm:$0xff] }
 0x55c   :  { %2325 = vst.msk [vmem:[#allocation2] sm:$0x1] %vm564_vm2, %v5425_v17 }
 0x55d   :  { %v2101_v24 = vpop.f32.mrf.mxu1 }
 0x55e   :  { %v2102_v50 = vadd.f32 %v5415_v31, %v2101_v24 }
 0x560   :  { %vm2117_vm5 = vcmp.gt.f32.partialorder %v2102_v50, 0.0  ;;  %v2125_v40 = vmul.f32 0.2, %v2102_v50 }
 0x562   :  { %v2133_v14 = vsel %vm2117_vm5, %v2102_v50, %v2125_v40  ;;  %v2160_v34 = vld [vmem:[#allocation2 + $0x3] ss:$2 sm:$0xff] }
 0x563   :  { %2143 = vst.msk [vmem:[#allocation2 + $0x19] sm:$0xff] %vm137_vm1, %v2133_v14 }
 0x565   :  { %v2104_v11 = vpop.f32.mrf.mxu1 }
 0x566   :  { %v2105_v27 = vadd.f32 %v5415_v31, %v2104_v11  ;;  %v5021_v11 = vld [vmem:[%s7176_s3 + $0xc0] sm:$0xff] }
 0x568   :  { %vm2118_vm8 = vcmp.gt.f32.partialorder %v2105_v27, 0.0  ;;  %v2126_v15 = vmul.f32 0.2, %v2105_v27 }
 0x56a   :  { %v2134_v7 = vsel %vm2118_vm8, %v2105_v27, %v2126_v15  ;;  %v2157_v39 = vld [vmem:[#allocation2 + $0x12] ss:$2 sm:$0xff]  ;;  %v2153_v9 = vld [vmem:[#allocation2 + $0x11] ss:$2 sm:$0xff] }
 0x56b   :  { %2144 = vst.msk [vmem:[#allocation2 + $0x21] sm:$0xff] %vm137_vm1, %v2134_v7  ;;  %v5371_v63 = vpack.i.bf16 %v2157_v39, %v2156_v18  ;;  %v5366_v0 = vpack.i.bf16 %v2153_v9, %v2152_v28  ;;  %v2149_v6 = vld [vmem:[#allocation2 + $0x10] ss:$2 sm:$0xff] }
 0x56d   :  { %v2106_v8 = vpop.f32.mrf.mxu1  ;;  %5372 = vrot.lane.b32.xlu0 %v5371_v63, %s5427_s29  ;;  %5367 = vrot.lane.b32.xlu2 %v5366_v0, %s5428_s30 }
 0x56e   :  { %v2107_v51 = vadd.f32 %v5415_v31, %v2106_v8 }
 0x570   :  { %vm2119_vm9 = vcmp.gt.f32.partialorder %v2107_v51, 0.0  ;;  %v2127_v13 = vmul.f32 0.2, %v2107_v51 }
 0x572   :  { %v2135_v56 = vsel %vm2119_vm9, %v2107_v51, %v2127_v13  ;;  %v2161_v16 = vld [vmem:[#allocation2 + $0x13] ss:$2 sm:$0xff] }
 0x573   :  { %2145 = vst.msk [vmem:[#allocation2 + $0x29] sm:$0xff] %vm137_vm1, %v2135_v56  ;;  %v5376_v20 = vpack.i.bf16 %v2161_v16, %v2160_v34 }
 0x575   :  { %v2109_v32 = vpop.f32.mrf.mxu1  ;;  %5377 = vrot.lane.b32.xlu1 %v5376_v20, %s5426_s28 }
 0x576   :  { %v2110_v21 = vadd.f32 %v5415_v31, %v2109_v32 }
 0x578   :  { %vm2120_vm10 = vcmp.gt.f32.partialorder %v2110_v21, 0.0  ;;  %v2128_v44 = vmul.f32 0.2, %v2110_v21 }
 0x57a   :  { %v2136_v62 = vsel %vm2120_vm10, %v2110_v21, %v2128_v44  ;;  %v2154_v60 = vld [vmem:[#allocation2 + $0x21] ss:$2 sm:$0xff]  ;;  %v2158_v19 = vld [vmem:[#allocation2 + $0x22] ss:$2 sm:$0xff] }
 0x57b   :  { %2146 = vst.msk [vmem:[#allocation2 + $0x31] sm:$0xff] %vm137_vm1, %v2136_v62  ;;  %v2150_v8 = vld [vmem:[#allocation2 + $0x20] ss:$2 sm:$0xff] }
 0x57c   :  { %2326 = vst.msk [vmem:[#allocation2 + $0x21] sm:$0x1] %vm564_vm2, %v5425_v17 }
 0x57d   :  { %v2111_v12 = vpop.f32.mrf.mxu1 }
 0x57e   :  { %v2112_v33 = vadd.f32 %v5415_v31, %v2111_v12  ;;  %v5026_v31 = vld [vmem:[%s7176_s3 + $0xe8] sm:$0xff] }
 0x57f   :  { %1313 = vmatpush.bf16.msra.mxu3 %v5026_v31 }
 0x580   :  { %vm2121_vm11 = vcmp.gt.f32.partialorder %v2112_v33, 0.0  ;;  %v2129_v1 = vmul.f32 0.2, %v2112_v33 }
 0x582   :  { %v2137_v42 = vsel %vm2121_vm11, %v2112_v33, %v2129_v1  ;;  %v2162_v3 = vld [vmem:[#allocation2 + $0x23] ss:$2 sm:$0xff] }
 0x583   :  { %2147 = vst.msk [vmem:[#allocation2 + $0x39] sm:$0xff] %vm137_vm1, %v2137_v42  ;;  %1314 = vmatpush.bf16.msra.mxu3 %v5025_v59 }
 0x587   :  { %1315 = vmatpush.bf16.msra.mxu3 %v5024_v58 }
 0x58a   :  { %v2163_v29 = vld [vmem:[#allocation2 + $0x33] ss:$2 sm:$0xff]  ;;  %v2159_v36 = vld [vmem:[#allocation2 + $0x32] ss:$2 sm:$0xff] }
 0x58b   :  { %v2155_v30 = vld [vmem:[#allocation2 + $0x31] ss:$2 sm:$0xff]  ;;  %v5391_v38 = vpack.i.bf16 %v2163_v29, %v2162_v3  ;;  %v5386_v45 = vpack.i.bf16 %v2159_v36, %v2158_v19  ;;  %1316 = vmatpush.bf16.msra.mxu3 %v5023_v47  ;;  %v2151_v51 = vld [vmem:[#allocation2 + $0x30] ss:$2 sm:$0xff] }
 0x58c   :  { %v5381_v2 = vpack.i.bf16 %v2155_v30, %v2154_v60  ;;  %v5416_v30 = vld [vmem:[%s7175_s4 + $0x1] ss:$0 sm:$0xff] }
 0x58d   :  { %5392 = vrot.lane.b32.xlu1 %v5391_v38, %s5426_s28  ;;  %5387 = vrot.lane.b32.xlu0 %v5386_v45, %s5427_s29 }
 0x58e   :  { %5382 = vrot.lane.b32.xlu2 %v5381_v2, %s5428_s30 }
 0x58f   :  { %1317 = vmatpush.bf16.msra.mxu3 %v5022_v41 }
 0x593   :  { %1318 = vmatpush.bf16.msra.mxu3 %v5021_v11 }
 0x595   :  { %1234 = vrot.lane.b32.xlu1 %v6216_v48, %s5426_s28  ;;  %1230 = vrot.lane.b32.xlu0 %v6214_v22, %s5427_s29  ;;  %v5042_v48 = vld [vmem:[%s7176_s3 + $0x68] sm:$0xff]  ;;  %v5041_v22 = vld [vmem:[%s7176_s3 + $0x60] sm:$0xff] }
 0x596   :  { %1226 = vrot.lane.b32.xlu2 %v6212_v26, %s5428_s30  ;;  %2296 = vmatpush.bf16.msrb.mxu2 %v5042_v48  ;;  %v5040_v26 = vld [vmem:[%s7176_s3 + $0x58] sm:$0xff] }
 0x59a   :  { %2297 = vmatpush.bf16.msrb.mxu2 %v5041_v22 }
 0x59e   :  { %2298 = vmatpush.bf16.msrb.mxu2 %v5040_v26  ;;  %v5052_v26 = vld [vmem:[%s7176_s3 + $0xb8] sm:$0xff] }
 0x59f   :  { %2438 = vmatpush.bf16.msrb.mxu3 %v5052_v26 }
 0x5a2   :  { %2299 = vmatpush.bf16.msrb.mxu2 %v5039_v53 }
 0x5a6   :  { %2300 = vmatpush.bf16.msrb.mxu2 %v5038_v49 }
 0x5aa   :  { %2301 = vmatpush.bf16.msrb.mxu2 %v5037_v52 }
 0x5c7   :  { %v5368_v5 = vpop.permute.xlu2 %5367 }
 0x5c8   :  { %v5370_v10 = vunpack.i.h.bf16 %v5368_v5  ;;  %v5369_v57 = vunpack.i.l.bf16 %v5368_v5 }
 0x5ca   :  { %v2213_v24 = vsel %vm137_vm1, %v2149_v6, %v5370_v10  ;;  %v2212_v50 = vsel %vm137_vm1, %v6328_v4, %v5369_v57 }
 0x5df   :  { %v5373_v54 = vpop.permute.xlu0 %5372 }
 0x5e0   :  { %v5375_v61 = vunpack.i.h.bf16 %v5373_v54  ;;  %v5374_v55 = vunpack.i.l.bf16 %v5373_v54 }
 0x5e2   :  { %v2216_v27 = vsel %vm750_vm6, %v2212_v50, %v5374_v55  ;;  %v2217_v15 = vsel %vm750_vm6, %v2213_v24, %v5375_v61 }
 0x5e7   :  { %v5378_v23 = vpop.permute.xlu1 %5377 }
 0x5e8   :  { %v5380_v40 = vunpack.i.h.bf16 %v5378_v23  ;;  %v5379_v14 = vunpack.i.l.bf16 %v5378_v23  ;;  %v5383_v28 = vpop.permute.xlu2 %5382 }
 0x5e9   :  { %v5385_v9 = vunpack.i.h.bf16 %v5383_v28  ;;  %v5384_v4 = vunpack.i.l.bf16 %v5383_v28  ;;  %v5046_v28 = vld [vmem:[%s7176_s3 + $0x88] sm:$0xff] }
 0x5ea   :  { %v2220_v18 = vsel %vm759_vm7, %v2216_v27, %v5379_v14  ;;  %v2221_v7 = vsel %vm759_vm7, %v2217_v15, %v5380_v40  ;;  %v5051_v15 = vld [vmem:[%s7176_s3 + $0xb0] sm:$0xff] }
 0x5eb   :  { %v2224_v39 = vpack.c.bf16 %v2221_v7, %v2220_v18  ;;  %v2215_v20 = vsel %vm137_vm1, %v2151_v51, %v5385_v9  ;;  %v2214_v32 = vsel %vm137_vm1, %v2150_v8, %v5384_v4  ;;  %2439 = vmatpush.bf16.msrb.mxu3 %v5051_v15  ;;  %v5050_v18 = vld [vmem:[%s7176_s3 + $0xa8] sm:$0xff]  ;;  %v5048_v7 = vld [vmem:[%s7176_s3 + $0x98] sm:$0xff]  ;;  %v5045_v9 = vld [vmem:[%s7176_s3 + $0x80] sm:$0xff] }
 0x5ed   :  { %2302 = vmatmul.bf16.vlgmr.msrb.gmra.mxu2 %v2224_v39  ;;  %v5047_v39 = vld [vmem:[%s7176_s3 + $0x90] sm:$0xff] }
 0x5ef   :  { %2440 = vmatpush.bf16.msrb.mxu3 %v5050_v18  ;;  %v5113_v18 = vld [vmem:[%s7177_s5 + $0x19c] sm:$0xf0] }
 0x5f0   :  { %v1227_v12 = vpop.permute.xlu2 %1226 }
 0x5f1   :  { %v1237_v1 = vsel %vm137_vm1, %v6210_v25, %v1227_v12 }
 0x5ff   :  { %v5393_v63 = vpop.permute.xlu1 %5392  ;;  %v5388_v0 = vpop.permute.xlu0 %5387 }
 0x600   :  { %v5395_v13 = vunpack.i.h.bf16 %v5393_v63  ;;  %v5394_v56 = vunpack.i.l.bf16 %v5393_v63  ;;  %v5390_v34 = vunpack.i.h.bf16 %v5388_v0  ;;  %v5389_v16 = vunpack.i.l.bf16 %v5388_v0 }
 0x602   :  { %v2218_v21 = vsel %vm750_vm6, %v2214_v32, %v5389_v16  ;;  %v2219_v44 = vsel %vm750_vm6, %v2215_v20, %v5390_v34 }
 0x603   :  { %v2222_v62 = vsel %vm759_vm7, %v2218_v21, %v5394_v56  ;;  %v2223_v60 = vsel %vm759_vm7, %v2219_v44, %v5395_v13 }
 0x604   :  { %v2225_v33 = vpack.c.bf16 %v2223_v60, %v2222_v62 }
 0x606   :  { %2307 = vmatmul.bf16.gmra.mxu2 %v2225_v33 }
 0x607   :  { %v1235_v42 = vpop.permute.xlu1 %1234  ;;  %v1231_v3 = vpop.permute.xlu0 %1230 }
 0x608   :  { %v1238_v19 = vsel %vm750_vm6, %v1237_v1, %v1231_v3  ;;  %v5060_v1 = vld [vmem:[%s7176_s3 + $0xf8] sm:$0xff]  ;;  %v5418_v3 = vld [vmem:[%s7175_s4 + $0x2] ss:$0 sm:$0xff] }
 0x609   :  { %v1239_v29 = vsel %vm759_vm7, %v1238_v19, %v1235_v42  ;;  %2550 = vmatpush.bf16.msrb.mxu0 %v5060_v1  ;;  %v5059_v42 = vld [vmem:[%s7176_s3 + $0xf0] sm:$0xff]  ;;  %v5058_v19 = vld [vmem:[%s7176_s3 + $0xe8] sm:$0xff] }
 0x60a   :  { %v1240_v36 = vpack.c.bf16 %v1239_v29, %v1239_v29 }
 0x60c   :  { %1319 = vmatmul.bf16.vlgmr.msra.gmra.mxu3 %v1240_v36 }
 0x60d   :  { %2551 = vmatpush.bf16.msrb.mxu0 %v5059_v42 }
 0x611   :  { %2552 = vmatpush.bf16.msrb.mxu0 %v5058_v19  ;;  %v4575_v19 = vld [vmem:[%s7177_s5 + $0x120] sm:$0xf0] }
 0x670   :  { %v2303_v38 = vpop.f32.mrf.mxu2 }
 0x671   :  { %v2304_v45 = vadd.f32 %v5416_v30, %v2303_v38 }
 0x673   :  { %vm2313_vm12 = vcmp.gt.f32.partialorder %v2304_v45, 0.0  ;;  %v2317_v2 = vmul.f32 0.2, %v2304_v45 }
 0x675   :  { %v2321_v43 = vsel %vm2313_vm12, %v2304_v45, %v2317_v2  ;;  %v5056_v2 = vld [vmem:[%s7176_s3 + $0xd8] sm:$0xff] }
 0x676   :  { %2327 = vst.msk [vmem:[#allocation2 + $0x1] sm:$0xff] %vm137_vm1, %v2321_v43 }
 0x678   :  { %v2305_v25 = vpop.f32.mrf.mxu2 }
 0x679   :  { %v2306_v37 = vadd.f32 %v5416_v30, %v2305_v25 }
 0x67b   :  { %vm2314_vm0 = vcmp.gt.f32.partialorder %v2306_v37, 0.0  ;;  %v2318_v48 = vmul.f32 0.2, %v2306_v37 }
 0x67d   :  { %v2322_v22 = vsel %vm2314_vm0, %v2306_v37, %v2318_v48  ;;  %vm3749_vm0 = vcmask 519168  }
 0x67e   :  { %2328 = vst.msk [vmem:[#allocation2 + $0x9] sm:$0xff] %vm137_vm1, %v2322_v22 }
 0x685   :  { %v2331_v53 = vld [vmem:[#allocation2] ss:$2 sm:$0xff]  ;;  %v2333_v23 = vld [vmem:[#allocation2 + $0x1] ss:$2 sm:$0xff] }
 0x686   :  { %2458 = vst.msk [vmem:[#allocation2] sm:$0x1] %vm564_vm2, %v5425_v17  ;;  %v2335_v6 = vld [vmem:[#allocation2 + $0x2] ss:$2 sm:$0xff] }
 0x689   :  { %v2308_v49 = vpop.f32.mrf.mxu2 }
 0x68a   :  { %v2309_v52 = vadd.f32 %v5416_v30, %v2308_v49  ;;  %v5055_v49 = vld [vmem:[%s7176_s3 + $0xd0] sm:$0xff] }
 0x68c   :  { %vm2315_vm13 = vcmp.gt.f32.partialorder %v2309_v52, 0.0  ;;  %v2319_v46 = vmul.f32 0.2, %v2309_v52 }
 0x68e   :  { %v2323_v31 = vsel %vm2315_vm13, %v2309_v52, %v2319_v46  ;;  %v5054_v52 = vld [vmem:[%s7176_s3 + $0xc8] sm:$0xff]  ;;  %v5053_v46 = vld [vmem:[%s7176_s3 + $0xc0] sm:$0xff] }
 0x68f   :  { %2329 = vst.msk [vmem:[#allocation2 + $0x11] sm:$0xff] %vm137_vm1, %v2323_v31  ;;  %v1320_v59 = vpop.f32.mrf.mxu3 }
 0x690   :  { %v1321_v58 = vadd.f32 %v5417_v35, %v1320_v59 }
 0x691   :  { %v2310_v47 = vpop.f32.mrf.mxu2 }
 0x692   :  { %vm1324_vm14 = vcmp.gt.f32.partialorder %v1321_v58, 0.0  ;;  %v1325_v5 = vmul.f32 0.2, %v1321_v58  ;;  %v2311_v54 = vadd.f32 %v5416_v30, %v2310_v47  ;;  %v5057_v30 = vld [vmem:[%s7176_s3 + $0xe0] sm:$0xff] }
 0x693   :  { %2553 = vmatpush.bf16.msrb.mxu0 %v5057_v30  ;;  %v5094_v30 = vld [vmem:[%s7177_s5 + $0x10c] sm:$0xf] }
 0x694   :  { %v1326_v41 = vsel %vm1324_vm14, %v1321_v58, %v1325_v5  ;;  %vm2316_vm15 = vcmp.gt.f32.partialorder %v2311_v54, 0.0  ;;  %v2320_v10 = vmul.f32 0.2, %v2311_v54 }
 0x695   :  { %1327 = vst.msk [vmem:[#allocation3] sm:$0xff] %vm137_vm1, %v1326_v41 }
 0x696   :  { %v2324_v57 = vsel %vm2316_vm15, %v2311_v54, %v2320_v10  ;;  %v2337_v55 = vld [vmem:[#allocation2 + $0x3] ss:$2 sm:$0xff] }
 0x697   :  { %2330 = vst.msk [vmem:[#allocation2 + $0x19] sm:$0xff] %vm137_vm1, %v2324_v57  ;;  %v1322_v61 = vpop.f32.mrf.mxu3  ;;  %2554 = vmatpush.bf16.msrb.mxu0 %v5056_v2  ;;  %v5118_v10 = vld [vmem:[%s7177_s5 + $0x1cc] sm:$0xf] }
 0x698   :  { %v4679_v57 = vld [vmem:[%s7177_s5 + $0x1e8] sm:$0xf0]  ;;  %v4669_v61 = vld [vmem:[%s7177_s5 + $0x1c0] sm:$0xf] }
 0x69b   :  { %2555 = vmatpush.bf16.msrb.mxu0 %v5055_v49 }
 0x69e   :  { %v2338_v24 = vld [vmem:[#allocation2 + $0x13] ss:$2 sm:$0xff]  ;;  %v2336_v50 = vld [vmem:[#allocation2 + $0x12] ss:$2 sm:$0xff] }
 0x69f   :  { %v2334_v40 = vld [vmem:[#allocation2 + $0x11] ss:$2 sm:$0xff]  ;;  %v5406_v14 = vpack.i.bf16 %v2338_v24, %v2337_v55  ;;  %v5401_v11 = vpack.i.bf16 %v2336_v50, %v2335_v6  ;;  %v2332_v13 = vld [vmem:[#allocation2 + $0x10] ss:$2 sm:$0xff]  ;;  %2556 = vmatpush.bf16.msrb.mxu0 %v5054_v52  ;;  %v4682_v55 = vor.u32 %v5118_v10, %v4679_v57  ;;  %v5121_v6 = vld [vmem:[%s7177_s5 + $0x1dc] sm:$0xf0] }
 0x6a0   :  { %v5396_v27 = vpack.i.bf16 %v2334_v40, %v2333_v23  ;;  %2459 = vst.msk [vmem:[#allocation2 + $0x11] sm:$0x1] %vm564_vm2, %v5425_v17  ;;  %v5049_v17 = vld [vmem:[%s7176_s3 + $0xa0] sm:$0xff]  ;;  %v4670_v50 = vor.u32 %v5121_v6, %v4669_v61  ;;  %v5086_v61 = vld [vmem:[%s7177_s5 + $0xcc] sm:$0xf] }
 0x6a1   :  { %5407 = vrot.lane.b32.xlu1 %v5406_v14, %s5426_s28  ;;  %5402 = vrot.lane.b32.xlu0 %v5401_v11, %s5427_s29  ;;  %v5117_v23 = vld [vmem:[%s7177_s5 + $0x1c4] sm:$0xf]  ;;  %v4677_v14 = vld [vmem:[%s7177_s5 + $0x1c8] sm:$0xf] }
 0x6a2   :  { %5397 = vrot.lane.b32.xlu2 %v5396_v27, %s5428_s30  ;;  %2441 = vmatpush.bf16.msrb.mxu3 %v5049_v17  ;;  %v4671_v24 = vld [vmem:[%s7177_s5 + $0x1e0] sm:$0xf0]  ;;  %v5122_v11 = vld [vmem:[%s7177_s5 + $0x1e4] sm:$0xf0]  ;;  %v4637_v27 = vld [vmem:[%s7177_s5 + $0x180] sm:$0xf] }
 0x6a3   :  { %2557 = vmatpush.bf16.msrb.mxu0 %v5053_v46  ;;  %v4674_v40 = vor.u32 %v5117_v23, %v4671_v24  ;;  %3031 = vmatpush.bf16.msra.mxu1 %v4682_v55  ;;  %v4678_v15 = vor.u32 %v5122_v11, %v4677_v14  ;;  %v5109_v17 = vld [vmem:[%s7177_s5 + $0x184] sm:$0xf]  ;;  %v4551_v55 = vld [vmem:[%s7177_s5 + $0xe8] sm:$0xf0]  ;;  %v4509_v6 = vld [vmem:[%s7177_s5 + $0x80] sm:$0xf] }
 0x6a4   :  { %2992 = vmatpush.bf16.msra.mxu2 %v4670_v50  ;;  %v4554_v23 = vor.u32 %v5086_v61, %v4551_v55  ;;  %v5081_v24 = vld [vmem:[%s7177_s5 + $0x9c] sm:$0xf0]  ;;  %v5077_v50 = vld [vmem:[%s7177_s5 + $0x84] sm:$0xf]  ;;  %v5103_v61 = vld [vmem:[%s7177_s5 + $0x154] sm:$0xf] }
 0x6a5   :  { %v4510_v14 = vor.u32 %v5081_v24, %v4509_v6  ;;  %v4623_v6 = vld [vmem:[%s7177_s5 + $0x170] sm:$0xf0]  ;;  %v5108_v24 = vld [vmem:[%s7177_s5 + $0x174] sm:$0xf0] }
 0x6a6   :  { %2442 = vmatpush.bf16.msrb.mxu3 %v5048_v7  ;;  %v4639_v7 = vld [vmem:[%s7177_s5 + $0x1a0] sm:$0xf0] }
 0x6a7   :  { %3018 = vmatpush.bf16.msra.mxu0 %v4678_v15  ;;  %v5082_v15 = vld [vmem:[%s7177_s5 + $0xa4] sm:$0xf0] }
 0x6aa   :  { %2443 = vmatpush.bf16.msrb.mxu3 %v5047_v39  ;;  %v4638_v39 = vor.u32 %v5113_v18, %v4637_v27  ;;  %v4517_v27 = vld [vmem:[%s7177_s5 + $0x88] sm:$0xf]  ;;  %v5078_v18 = vld [vmem:[%s7177_s5 + $0x8c] sm:$0xf] }
 0x6ac   :  { %2993 = vmatpush.bf16.msra.mxu2 %v4638_v39  ;;  %v4477_v39 = vld [vmem:[%s7177_s5 + $0x40] sm:$0xf] }
 0x6ae   :  { %2444 = vmatpush.bf16.msrb.mxu3 %v5046_v28  ;;  %v4642_v28 = vor.u32 %v5109_v17, %v4639_v7  ;;  %v4518_v17 = vor.u32 %v5082_v15, %v4517_v27  ;;  %v4519_v7 = vld [vmem:[%s7177_s5 + $0xa8] sm:$0xf0] }
 0x6b2   :  { %2445 = vmatpush.bf16.msrb.mxu3 %v5045_v9  ;;  %v4645_v9 = vld [vmem:[%s7177_s5 + $0x188] sm:$0xf] }
 0x6b6   :  { %3005 = vmatpush.bf16.msra.mxu3 %v4674_v40  ;;  %v4511_v40 = vld [vmem:[%s7177_s5 + $0xa0] sm:$0xf0] }
 0x6b7   :  { %v4514_v11 = vor.u32 %v5077_v50, %v4511_v40  ;;  %v5104_v50 = vld [vmem:[%s7177_s5 + $0x15c] sm:$0xf] }
 0x6b8   :  { %v4631_v40 = vld [vmem:[%s7177_s5 + $0x178] sm:$0xf0] }
 0x6b9   :  { %v4634_v15 = vor.u32 %v5104_v50, %v4631_v40 }
 0x6ba   :  { %3006 = vmatpush.bf16.msra.mxu3 %v4642_v28  ;;  %v5073_v28 = vld [vmem:[%s7177_s5 + $0x5c] sm:$0xf0] }
 0x6fc   :  { %v5398_v4 = vpop.permute.xlu2 %5397 }
 0x6fd   :  { %v5400_v63 = vunpack.i.h.bf16 %v5398_v4  ;;  %v5399_v0 = vunpack.i.l.bf16 %v5398_v4  ;;  %v5114_v4 = vld [vmem:[%s7177_s5 + $0x1a4] sm:$0xf0] }
 0x6ff   :  { %v2364_v32 = vsel %vm137_vm1, %v2332_v13, %v5400_v63  ;;  %v2363_v21 = vsel %vm137_vm1, %v2331_v53, %v5399_v0  ;;  %v5110_v63 = vld [vmem:[%s7177_s5 + $0x18c] sm:$0xf]  ;;  %v4646_v0 = vor.u32 %v5114_v4, %v4645_v9  ;;  %v5105_v13 = vld [vmem:[%s7177_s5 + $0x15c] sm:$0xf0]  ;;  %v4522_v9 = vor.u32 %v5078_v18, %v4519_v7  ;;  %v5069_v4 = vld [vmem:[%s7177_s5 + $0x44] sm:$0xf] }
 0x700   :  { %v4589_v18 = vld [vmem:[%s7177_s5 + $0x110] sm:$0xf]  ;;  %v5095_v7 = vld [vmem:[%s7177_s5 + $0x114] sm:$0xf] }
 0x701   :  { %3019 = vmatpush.bf16.msra.mxu0 %v4646_v0  ;;  %v4485_v0 = vld [vmem:[%s7177_s5 + $0x48] sm:$0xf] }
 0x713   :  { %v5408_v8 = vpop.permute.xlu1 %5407  ;;  %v5403_v51 = vpop.permute.xlu0 %5402 }
 0x714   :  { %v5410_v56 = vunpack.i.h.bf16 %v5408_v8  ;;  %v5409_v34 = vunpack.i.l.bf16 %v5408_v8  ;;  %v5405_v16 = vunpack.i.h.bf16 %v5403_v51  ;;  %v5404_v20 = vunpack.i.l.bf16 %v5403_v51  ;;  %v4647_v8 = vld [vmem:[%s7177_s5 + $0x1a8] sm:$0xf0]  ;;  %v4605_v51 = vld [vmem:[%s7177_s5 + $0x140] sm:$0xf] }
 0x716   :  { %v2365_v44 = vsel %vm750_vm6, %v2363_v21, %v5404_v20  ;;  %v2366_v62 = vsel %vm750_vm6, %v2364_v32, %v5405_v16  ;;  %v4607_v16 = vld [vmem:[%s7177_s5 + $0x160] sm:$0xf0]  ;;  %v4613_v20 = vld [vmem:[%s7177_s5 + $0x148] sm:$0xf]  ;;  %v5102_v21 = vld [vmem:[%s7177_s5 + $0x14c] sm:$0xf] }
 0x717   :  { %v2367_v60 = vsel %vm759_vm7, %v2365_v44, %v5409_v34  ;;  %v2368_v12 = vsel %vm759_vm7, %v2366_v62, %v5410_v56  ;;  %v4650_v56 = vor.u32 %v5110_v63, %v4647_v8  ;;  %v5101_v34 = vld [vmem:[%s7177_s5 + $0x144] sm:$0xf]  ;;  %v5106_v32 = vld [vmem:[%s7177_s5 + $0x164] sm:$0xf0]  ;;  %v4615_v44 = vld [vmem:[%s7177_s5 + $0x168] sm:$0xf0]  ;;  %v4606_v62 = vor.u32 %v5105_v13, %v4605_v51 }
 0x718   :  { %v2369_v33 = vpack.c.bf16 %v2368_v12, %v2367_v60  ;;  %v4610_v60 = vor.u32 %v5101_v34, %v4607_v16  ;;  %v4573_v12 = vld [vmem:[%s7177_s5 + $0x100] sm:$0xf]  ;;  %v4614_v1 = vor.u32 %v5106_v32, %v4613_v20  ;;  %v4618_v42 = vor.u32 %v5102_v21, %v4615_v44  ;;  %v4479_v63 = vld [vmem:[%s7177_s5 + $0x60] sm:$0xf0]  ;;  %v5074_v51 = vld [vmem:[%s7177_s5 + $0x64] sm:$0xf0] }
 0x719   :  { %3032 = vmatpush.bf16.msra.mxu1 %v4650_v56  ;;  %2994 = vmatpush.bf16.msra.mxu2 %v4606_v62  ;;  %v4478_v8 = vor.u32 %v5073_v28, %v4477_v39  ;;  %v5070_v13 = vld [vmem:[%s7177_s5 + $0x4c] sm:$0xf]  ;;  %v4482_v34 = vor.u32 %v5069_v4, %v4479_v63  ;;  %v4486_v16 = vor.u32 %v5074_v51, %v4485_v0  ;;  %v4445_v20 = vld [vmem:[%s7177_s5] sm:$0xf]  ;;  %v5061_v21 = vld [vmem:[%s7177_s5 + $0x4] sm:$0xf] }
 0x71a   :  { %2446 = vmatmul.bf16.vlgmr.msrb.gmra.mxu3 %v2369_v33  ;;  %v5097_v33 = vld [vmem:[%s7177_s5 + $0x11c] sm:$0xf0]  ;;  %3020 = vmatpush.bf16.msra.mxu0 %v4614_v1  ;;  %v4487_v56 = vld [vmem:[%s7177_s5 + $0x68] sm:$0xf0]  ;;  %v4447_v62 = vld [vmem:[%s7177_s5 + $0x20] sm:$0xf0] }
 0x71b   :  { %3007 = vmatpush.bf16.msra.mxu3 %v4610_v60  ;;  %v5065_v32 = vld [vmem:[%s7177_s5 + $0x1c] sm:$0xf0]  ;;  %v4490_v44 = vor.u32 %v5070_v13, %v4487_v56  ;;  %v4453_v60 = vld [vmem:[%s7177_s5 + $0x8] sm:$0xf]  ;;  %v4455_v1 = vld [vmem:[%s7177_s5 + $0x28] sm:$0xf0] }
 0x71c   :  { %v4591_v28 = vld [vmem:[%s7177_s5 + $0x130] sm:$0xf0]  ;;  %v5100_v4 = vld [vmem:[%s7177_s5 + $0x134] sm:$0xf0]  ;;  %v4599_v51 = vld [vmem:[%s7177_s5 + $0x138] sm:$0xf0] }
 0x71d   :  { %3033 = vmatpush.bf16.msra.mxu1 %v4618_v42  ;;  %v4685_v42 = vld [vmem:[%s7177_s5 + $0x1d0] sm:$0xf]  ;;  %v4594_v63 = vor.u32 %v5095_v7, %v4591_v28  ;;  %v5148_v28 = vld [vmem:[%s7178_s7 + $0xb8] sm:$0xff] }
 0x71e   :  { %v4557_v56 = vld [vmem:[%s7177_s5 + $0xd0] sm:$0xf] }
 0x79d   :  { %v2447_v29 = vpop.f32.mrf.mxu3 }
 0x79e   :  { %v2448_v36 = vadd.f32 %v5418_v3, %v2447_v29  ;;  %v4581_v29 = vld [vmem:[%s7177_s5 + $0x108] sm:$0xf] }
 0x7a0   :  { %vm2452_vm2 = vcmp.gt.f32.partialorder %v2448_v36, 0.0  ;;  %v2454_v38 = vmul.f32 0.2, %v2448_v36 }
 0x7a2   :  { %v2456_v45 = vsel %vm2452_vm2, %v2448_v36, %v2454_v38  ;;  %v5098_v36 = vld [vmem:[%s7177_s5 + $0x124] sm:$0xf0]  ;;  %v4583_v38 = vld [vmem:[%s7177_s5 + $0x128] sm:$0xf0] }
 0x7a3   :  { %2460 = vst.msk [vmem:[#allocation2 + $0x1] sm:$0xff] %vm137_vm1, %v2456_v45  ;;  %v4574_v45 = vor.u32 %v5097_v33, %v4573_v12  ;;  %v5066_v12 = vld [vmem:[%s7177_s5 + $0x24] sm:$0xf0]  ;;  %v5062_v33 = vld [vmem:[%s7177_s5 + $0xc] sm:$0xf] }
 0x7a5   :  { %v2449_v43 = vpop.f32.mrf.mxu3  ;;  %2995 = vmatpush.bf16.msra.mxu2 %v4574_v45  ;;  %v4693_v45 = vld [vmem:[%s7177_s5 + $0x1d8] sm:$0xf] }
 0x7a6   :  { %v2450_v25 = vadd.f32 %v5418_v3, %v2449_v43  ;;  %v5093_v3 = vld [vmem:[%s7177_s5 + $0x104] sm:$0xf]  ;;  %v4582_v43 = vor.u32 %v5098_v36, %v4581_v29  ;;  %v5119_v29 = vld [vmem:[%s7177_s5 + $0x1d4] sm:$0xf] }
 0x7a7   :  { %v4578_v2 = vor.u32 %v5093_v3, %v4575_v19  ;;  %v4446_v3 = vor.u32 %v5065_v32, %v4445_v20  ;;  %v5123_v19 = vld [vmem:[%s7177_s5 + $0x1ec] sm:$0xf0]  ;;  %v4687_v36 = vld [vmem:[%s7177_s5 + $0x1f0] sm:$0xf0] }
 0x7a8   :  { %vm2453_vm3 = vcmp.gt.f32.partialorder %v2450_v25, 0.0  ;;  %v2455_v37 = vmul.f32 0.2, %v2450_v25  ;;  %3021 = vmatpush.bf16.msra.mxu0 %v4582_v43  ;;  %v5120_v43 = vld [vmem:[%s7177_s5 + $0x1dc] sm:$0xf] }
 0x7a9   :  { %3008 = vmatpush.bf16.msra.mxu3 %v4578_v2  ;;  %v5124_v2 = vld [vmem:[%s7177_s5 + $0x1f4] sm:$0xf0]  ;;  %v4559_v32 = vld [vmem:[%s7177_s5 + $0xf0] sm:$0xf0] }
 0x7aa   :  { %v2457_v48 = vsel %vm2453_vm3, %v2450_v25, %v2455_v37  ;;  %v4586_v25 = vor.u32 %v5094_v30, %v4583_v38  ;;  %v5419_v37 = vld [vmem:[%s7175_s4 + $0x3] ss:$0 sm:$0xff]  ;;  %v4450_v30 = vor.u32 %v5061_v21, %v4447_v62  ;;  %v4454_v38 = vor.u32 %v5066_v12, %v4453_v60  ;;  %v4565_v21 = vld [vmem:[%s7177_s5 + $0xd8] sm:$0xf]  ;;  %v5088_v12 = vld [vmem:[%s7177_s5 + $0xdc] sm:$0xf] }
 0x7ab   :  { %2461 = vst.msk [vmem:[#allocation2 + $0x9] sm:$0xff] %vm137_vm1, %v2457_v48 }
 0x7ac   :  { %3034 = vmatpush.bf16.msra.mxu1 %v4586_v25  ;;  %v4458_v25 = vor.u32 %v5062_v33, %v4455_v1  ;;  %v4567_v33 = vld [vmem:[%s7177_s5 + $0xf8] sm:$0xf0]  ;;  %v4525_v1 = vld [vmem:[%s7177_s5 + $0x90] sm:$0xf] }
 0x7b0   :  { %3035 = vmatpush.bf16.msra.mxu1 %v4554_v23  ;;  %v4629_v23 = vld [vmem:[%s7177_s5 + $0x158] sm:$0xf] }
 0x7b1   :  { %v4630_v27 = vor.u32 %v5108_v24, %v4629_v23 }
 0x7b2   :  { %v2465_v22 = vld [vmem:[#allocation2 + $0x3] ss:$2 sm:$0xff]  ;;  %v2464_v26 = vld [vmem:[#allocation2 + $0x2] ss:$2 sm:$0xff] }
 0x7b3   :  { %v2463_v53 = vld [vmem:[#allocation2 + $0x1] ss:$2 sm:$0xff]  ;;  %2475 = vrot.lane.b32.xlu1 %v2465_v22, %s5426_s28  ;;  %2471 = vrot.lane.b32.xlu0 %v2464_v26, %s5427_s29  ;;  %v2462_v31 = vld [vmem:[#allocation2] ss:$2 sm:$0xff] }
 0x7b4   :  { %2467 = vrot.lane.b32.xlu2 %v2463_v53, %s5428_s30  ;;  %3036 = vmatpush.bf16.msra.mxu1 %v4522_v9  ;;  %v4597_v9 = vld [vmem:[%s7177_s5 + $0x118] sm:$0xf] }
 0x7b5   :  { %v4598_v0 = vor.u32 %v5100_v4, %v4597_v9  ;;  %v5156_v9 = vld [vmem:[%s7178_s7 + $0xf8] sm:$0xff] }
 0x7b6   :  { %v5132_v4 = vld [vmem:[%s7178_s7 + $0x38] sm:$0xff] }
 0x7b8   :  { %3037 = vmatpush.bf16.msra.mxu1 %v4490_v44  ;;  %v5092_v44 = vld [vmem:[%s7177_s5 + $0xf4] sm:$0xf0] }
 0x7b9   :  { %v4566_v60 = vor.u32 %v5092_v44, %v4565_v21  ;;  %v5153_v21 = vld [vmem:[%s7178_s7 + $0xe0] sm:$0xff] }
 0x7ba   :  { %v5129_v44 = vld [vmem:[%s7178_s7 + $0x20] sm:$0xff] }
 0x7bc   :  { %3038 = vmatpush.bf16.msra.mxu1 %v4458_v25 }
 0x80e   :  { %v2468_v35 = vpop.permute.xlu2 %2467 }
 0x80f   :  { %v2478_v59 = vsel %vm137_vm1, %v2462_v31, %v2468_v35  ;;  %v4541_v31 = vld [vmem:[%s7177_s5 + $0xc0] sm:$0xf] }
 0x825   :  { %v2476_v58 = vpop.permute.xlu1 %2475  ;;  %v2472_v47 = vpop.permute.xlu0 %2471 }
 0x826   :  { %v2479_v5 = vsel %vm750_vm6, %v2478_v59, %v2472_v47  ;;  %v5089_v59 = vld [vmem:[%s7177_s5 + $0xdc] sm:$0xf0] }
 0x827   :  { %v2480_v54 = vsel %vm759_vm7, %v2479_v5, %v2476_v58  ;;  %v5085_v58 = vld [vmem:[%s7177_s5 + $0xc4] sm:$0xf]  ;;  %v4542_v47 = vor.u32 %v5089_v59, %v4541_v31  ;;  %v4661_v31 = vld [vmem:[%s7177_s5 + $0x198] sm:$0xf] }
 0x828   :  { %v2481_v41 = vpack.c.bf16 %v2480_v54, %v2480_v54  ;;  %v4543_v5 = vld [vmem:[%s7177_s5 + $0xe0] sm:$0xf0]  ;;  %v4549_v54 = vld [vmem:[%s7177_s5 + $0xc8] sm:$0xf]  ;;  %v5116_v59 = vld [vmem:[%s7177_s5 + $0x1b4] sm:$0xf0] }
 0x829   :  { %v4546_v10 = vor.u32 %v5085_v58, %v4543_v5  ;;  %2996 = vmatpush.bf16.msra.mxu2 %v4542_v47  ;;  %v5112_v58 = vld [vmem:[%s7177_s5 + $0x19c] sm:$0xf] }
 0x82a   :  { %2558 = vmatmul.bf16.vlgmr.msrb.gmra.mxu0 %v2481_v41  ;;  %v5090_v41 = vld [vmem:[%s7177_s5 + $0xe4] sm:$0xf0]  ;;  %v4663_v47 = vld [vmem:[%s7177_s5 + $0x1b8] sm:$0xf0] }
 0x82b   :  { %v4550_v57 = vor.u32 %v5090_v41, %v4549_v54  ;;  %3009 = vmatpush.bf16.msra.mxu3 %v4546_v10  ;;  %v4662_v41 = vor.u32 %v5116_v59, %v4661_v31  ;;  %v4621_v10 = vld [vmem:[%s7177_s5 + $0x150] sm:$0xf]  ;;  %v4666_v55 = vor.u32 %v5112_v58, %v4663_v47 }
 0x82c   :  { %v4461_v47 = vld [vmem:[%s7177_s5 + $0x10] sm:$0xf] }
 0x82d   :  { %3022 = vmatpush.bf16.msra.mxu0 %v4550_v57  ;;  %2997 = vmatpush.bf16.msra.mxu2 %v4510_v14  ;;  %v5107_v57 = vld [vmem:[%s7177_s5 + $0x16c] sm:$0xf0] }
 0x82e   :  { %v4622_v14 = vor.u32 %v5107_v57, %v4621_v10  ;;  %v4463_v10 = vld [vmem:[%s7177_s5 + $0x30] sm:$0xf0]  ;;  %v4469_v57 = vld [vmem:[%s7177_s5 + $0x18] sm:$0xf] }
 0x82f   :  { %3010 = vmatpush.bf16.msra.mxu3 %v4514_v11  ;;  %v4626_v11 = vor.u32 %v5103_v61, %v4623_v6  ;;  %v5068_v61 = vld [vmem:[%s7177_s5 + $0x34] sm:$0xf0]  ;;  %v4471_v6 = vld [vmem:[%s7177_s5 + $0x38] sm:$0xf0] }
 0x830   :  { %v4470_v50 = vor.u32 %v5068_v61, %v4469_v57  ;;  %v5161_v57 = vld [vmem:[%s7178_s7 + $0x120] sm:$0xff] }
 0x831   :  { %3023 = vmatpush.bf16.msra.mxu0 %v4518_v17  ;;  %2998 = vmatpush.bf16.msra.mxu2 %v4478_v8  ;;  %v5099_v17 = vld [vmem:[%s7177_s5 + $0x12c] sm:$0xf0]  ;;  %v5096_v8 = vld [vmem:[%s7177_s5 + $0x11c] sm:$0xf]  ;;  %v5169_v61 = vld [vmem:[%s7178_s7 + $0x160] sm:$0xff] }
 0x832   :  { %v4590_v39 = vor.u32 %v5099_v17, %v4589_v18  ;;  %v4602_v13 = vor.u32 %v5096_v8, %v4599_v51  ;;  %v5155_v8 = vld [vmem:[%s7178_s7 + $0xf0] sm:$0xff] }
 0x833   :  { %3011 = vmatpush.bf16.msra.mxu3 %v4482_v34  ;;  %v5091_v34 = vld [vmem:[%s7177_s5 + $0xec] sm:$0xf0] }
 0x834   :  { %v4558_v20 = vor.u32 %v5091_v34, %v4557_v56  ;;  %v5131_v51 = vld [vmem:[%s7178_s7 + $0x30] sm:$0xff]  ;;  %v5146_v56 = vld [vmem:[%s7178_s7 + $0xa8] sm:$0xff] }
 0x835   :  { %3024 = vmatpush.bf16.msra.mxu0 %v4486_v16  ;;  %2999 = vmatpush.bf16.msra.mxu2 %v4446_v3  ;;  %v5087_v16 = vld [vmem:[%s7177_s5 + $0xd4] sm:$0xf]  ;;  %v5083_v3 = vld [vmem:[%s7177_s5 + $0xac] sm:$0xf0]  ;;  %v5154_v34 = vld [vmem:[%s7178_s7 + $0xe8] sm:$0xff] }
 0x836   :  { %v4562_v62 = vor.u32 %v5087_v16, %v4559_v32  ;;  %v5130_v16 = vld [vmem:[%s7178_s7 + $0x28] sm:$0xff]  ;;  %v5145_v32 = vld [vmem:[%s7178_s7 + $0xa0] sm:$0xff] }
 0x837   :  { %3012 = vmatpush.bf16.msra.mxu3 %v4450_v30  ;;  %v5084_v30 = vld [vmem:[%s7177_s5 + $0xb4] sm:$0xf0] }
 0x839   :  { %3025 = vmatpush.bf16.msra.mxu0 %v4454_v38  ;;  %v5080_v38 = vld [vmem:[%s7177_s5 + $0x9c] sm:$0xf] }
 0x8a7   :  { %v2559_v48 = vpop.f32.mrf.mxu0 }
 0x8a8   :  { %v2560_v22 = vadd.f32 %v5419_v37, %v2559_v48  ;;  %v4686_v37 = vor.u32 %v5123_v19, %v4685_v42  ;;  %v4695_v48 = vld [vmem:[%s7177_s5 + $0x1f8] sm:$0xf0]  ;;  %v4570_v42 = vor.u32 %v5088_v12, %v4567_v33  ;;  %v5079_v19 = vld [vmem:[%s7177_s5 + $0x94] sm:$0xf] }
 0x8a9   :  { %v5152_v12 = vld [vmem:[%s7178_s7 + $0xd8] sm:$0xff] }
 0x8aa   :  { %vm2563_vm4 = vcmp.gt.f32.partialorder %v2560_v22, 0.0  ;;  %v2564_v26 = vmul.f32 0.2, %v2560_v22  ;;  %3044 = vmatpush.bf16.msrb.mxu2 %v4686_v37  ;;  %v4493_v37 = vld [vmem:[%s7177_s5 + $0x50] sm:$0xf]  ;;  %v5128_v33 = vld [vmem:[%s7178_s7 + $0x18] sm:$0xff] }
 0x8ac   :  { %v2565_v53 = vsel %vm2563_vm4, %v2560_v22, %v2564_v26  ;;  %v4690_v22 = vor.u32 %v5119_v29, %v4687_v36  ;;  %v4694_v26 = vor.u32 %v5124_v2, %v4693_v45  ;;  %v4527_v29 = vld [vmem:[%s7177_s5 + $0xb0] sm:$0xf0]  ;;  %v4533_v36 = vld [vmem:[%s7177_s5 + $0x98] sm:$0xf]  ;;  %v4526_v45 = vor.u32 %v5083_v3, %v4525_v1  ;;  %v4535_v2 = vld [vmem:[%s7177_s5 + $0xb8] sm:$0xf0] }
 0x8ad   :  { %2566 = vst.msk [vmem:[#allocation3 + $0x8] sm:$0xff] %vm137_vm1, %v2565_v53  ;;  %v4653_v53 = vld [vmem:[%s7177_s5 + $0x190] sm:$0xf]  ;;  %v4534_v25 = vor.u32 %v5084_v30, %v4533_v36  ;;  %v5136_v1 = vld [vmem:[%s7178_s7 + $0x58] sm:$0xff]  ;;  %v5142_v36 = vld [vmem:[%s7178_s7 + $0x88] sm:$0xff] }
 0x8ae   :  { %3057 = vmatpush.bf16.msrb.mxu3 %v4690_v22  ;;  %3070 = vmatpush.bf16.msrb.mxu0 %v4694_v26  ;;  %v5071_v22 = vld [vmem:[%s7177_s5 + $0x54] sm:$0xf]  ;;  %v4538_v26 = vor.u32 %v5080_v38, %v4535_v2  ;;  %v5150_v30 = vld [vmem:[%s7178_s7 + $0xc8] sm:$0xff]  ;;  %v5141_v2 = vld [vmem:[%s7178_s7 + $0x80] sm:$0xff] }
 0x8af   :  { %v2561_v49 = vpop.f32.mrf.mxu0  ;;  %v5151_v3 = vld [vmem:[%s7178_s7 + $0xd0] sm:$0xff]  ;;  %v5126_v38 = vld [vmem:[%s7178_s7 + $0x8] sm:$0xff] }
 0x8b0   :  { %v5115_v49 = vld [vmem:[%s7177_s5 + $0x1ac] sm:$0xf0] }
 0x8b1   :  { %v4654_v5 = vor.u32 %v5115_v49, %v4653_v53  ;;  %v4495_v53 = vld [vmem:[%s7177_s5 + $0x70] sm:$0xf0]  ;;  %v4501_v49 = vld [vmem:[%s7177_s5 + $0x58] sm:$0xf] }
 0x8b2   :  { %3071 = vmatpush.bf16.msrb.mxu0 %v4662_v41  ;;  %v4498_v59 = vor.u32 %v5071_v22, %v4495_v53  ;;  %v5133_v22 = vld [vmem:[%s7178_s7 + $0x40] sm:$0xff]  ;;  %v5172_v53 = vld [vmem:[%s7178_s7 + $0x178] sm:$0xff] }
 0x8b3   :  { %3045 = vmatpush.bf16.msrb.mxu2 %v4654_v5  ;;  %v5067_v5 = vld [vmem:[%s7177_s5 + $0x2c] sm:$0xf0] }
 0x8b4   :  { %v2573_v52 = vld [vmem:[#allocation3 + $0x3] ss:$4 sm:$0xf]  ;;  %v2571_v46 = vld [vmem:[#allocation3 + $0x2] ss:$4 sm:$0xf]  ;;  %v4462_v23 = vor.u32 %v5067_v5, %v4461_v47 }
 0x8b5   :  { %2583 = vrot.lane.b32.xlu1 %v2573_v52, %s5426_s28  ;;  %2579 = vrot.lane.b32.xlu0 %v2571_v46, %s5427_s29  ;;  %v2569_v35 = vld [vmem:[#allocation3 + $0x1] ss:$4 sm:$0xf]  ;;  %v4698_v46 = vor.u32 %v5120_v43, %v4695_v48  ;;  %v4530_v43 = vor.u32 %v5079_v19, %v4527_v29  ;;  %v5185_v47 = vld [vmem:[%s7178_s7 + $0x1e0] sm:$0xff] }
 0x8b6   :  { %2575 = vrot.lane.b32.xlu2 %v2569_v35, %s5428_s30  ;;  %v5111_v52 = vld [vmem:[%s7177_s5 + $0x194] sm:$0xf]  ;;  %3072 = vmatpush.bf16.msrb.mxu0 %v4630_v27  ;;  %v5075_v48 = vld [vmem:[%s7177_s5 + $0x6c] sm:$0xf0]  ;;  %v5162_v5 = vld [vmem:[%s7178_s7 + $0x128] sm:$0xff] }
 0x8b7   :  { %v4655_v35 = vld [vmem:[%s7177_s5 + $0x1b0] sm:$0xf0]  ;;  %3083 = vmatpush.bf16.msrb.mxu1 %v4698_v46  ;;  %3046 = vmatpush.bf16.msrb.mxu2 %v4622_v14  ;;  %v5072_v46 = vld [vmem:[%s7177_s5 + $0x5c] sm:$0xf]  ;;  %v4494_v31 = vor.u32 %v5075_v48, %v4493_v37  ;;  %v5125_v48 = vld [vmem:[%s7178_s7] sm:$0xff] }
 0x8b8   :  { %v4658_v54 = vor.u32 %v5111_v52, %v4655_v35  ;;  %v5076_v52 = vld [vmem:[%s7177_s5 + $0x74] sm:$0xf0]  ;;  %v4503_v35 = vld [vmem:[%s7177_s5 + $0x78] sm:$0xf0]  ;;  %v5127_v19 = vld [vmem:[%s7178_s7 + $0x10] sm:$0xff] }
 0x8b9   :  { %v4502_v58 = vor.u32 %v5076_v52, %v4501_v49  ;;  %v4506_v41 = vor.u32 %v5072_v46, %v4503_v35  ;;  %v5135_v29 = vld [vmem:[%s7178_s7 + $0x50] sm:$0xff]  ;;  %v5188_v37 = vld [vmem:[%s7178_s7 + $0x1f8] sm:$0xff]  ;;  %v5178_v46 = vld [vmem:[%s7178_s7 + $0x1a8] sm:$0xff] }
 0x8ba   :  { %3058 = vmatpush.bf16.msrb.mxu3 %v4658_v54  ;;  %3073 = vmatpush.bf16.msrb.mxu0 %v4598_v0  ;;  %v5063_v54 = vld [vmem:[%s7177_s5 + $0x14] sm:$0xf]  ;;  %v5186_v35 = vld [vmem:[%s7178_s7 + $0x1e8] sm:$0xff] }
 0x8bb   :  { %3084 = vmatpush.bf16.msrb.mxu1 %v4666_v55  ;;  %3047 = vmatpush.bf16.msrb.mxu2 %v4590_v39  ;;  %v5064_v55 = vld [vmem:[%s7177_s5 + $0x1c] sm:$0xf]  ;;  %v4466_v24 = vor.u32 %v5063_v54, %v4463_v10  ;;  %v5147_v0 = vld [vmem:[%s7178_s7 + $0xb0] sm:$0xff]  ;;  %v5170_v54 = vld [vmem:[%s7178_s7 + $0x168] sm:$0xff] }
 0x8bc   :  { %v4474_v40 = vor.u32 %v5064_v55, %v4471_v6  ;;  %v5179_v49 = vld [vmem:[%s7178_s7 + $0x1b0] sm:$0xff]  ;;  %v5184_v10 = vld [vmem:[%s7178_s7 + $0x1d8] sm:$0xff] }
 0x8bd   :  { %v5187_v52 = vld [vmem:[%s7178_s7 + $0x1f0] sm:$0xff] }
 0x8be   :  { %3059 = vmatpush.bf16.msrb.mxu3 %v4626_v11  ;;  %3074 = vmatpush.bf16.msrb.mxu0 %v4566_v60  ;;  %v2567_v11 = vld [vmem:[#allocation3] ss:$4 sm:$0xf]  ;;  %v5144_v60 = vld [vmem:[%s7178_s7 + $0x98] sm:$0xff] }
 0x8bf   :  { %3085 = vmatpush.bf16.msrb.mxu1 %v4634_v15  ;;  %3048 = vmatpush.bf16.msrb.mxu2 %v4558_v20  ;;  %v5138_v20 = vld [vmem:[%s7178_s7 + $0x68] sm:$0xff]  ;;  %v5175_v55 = vld [vmem:[%s7178_s7 + $0x190] sm:$0xff] }
 0x8c0   :  { %v5183_v6 = vld [vmem:[%s7178_s7 + $0x1d0] sm:$0xff] }
 0x8c2   :  { %3060 = vmatpush.bf16.msrb.mxu3 %v4594_v63  ;;  %3075 = vmatpush.bf16.msrb.mxu0 %v4534_v25  ;;  %v5140_v63 = vld [vmem:[%s7178_s7 + $0x78] sm:$0xff] }
 0x8c3   :  { %3086 = vmatpush.bf16.msrb.mxu1 %v4602_v13  ;;  %3049 = vmatpush.bf16.msrb.mxu2 %v4526_v45  ;;  %v5139_v13 = vld [vmem:[%s7178_s7 + $0x70] sm:$0xff]  ;;  %v5134_v45 = vld [vmem:[%s7178_s7 + $0x48] sm:$0xff]  ;;  %v5180_v25 = vld [vmem:[%s7178_s7 + $0x1b8] sm:$0xff] }
 0x8c6   :  { %3061 = vmatpush.bf16.msrb.mxu3 %v4562_v62  ;;  %3076 = vmatpush.bf16.msrb.mxu0 %v4502_v58  ;;  %v5137_v62 = vld [vmem:[%s7178_s7 + $0x60] sm:$0xff] }
 0x8c7   :  { %3087 = vmatpush.bf16.msrb.mxu1 %v4570_v42  ;;  %3050 = vmatpush.bf16.msrb.mxu2 %v4494_v31  ;;  %v5143_v42 = vld [vmem:[%s7178_s7 + $0x90] sm:$0xff]  ;;  %v5177_v58 = vld [vmem:[%s7178_s7 + $0x1a0] sm:$0xff] }
 0x8c8   :  { %v5163_v31 = vld [vmem:[%s7178_s7 + $0x130] sm:$0xff] }
 0x8ca   :  { %3062 = vmatpush.bf16.msrb.mxu3 %v4530_v43  ;;  %3077 = vmatpush.bf16.msrb.mxu0 %v4470_v50  ;;  %v5149_v43 = vld [vmem:[%s7178_s7 + $0xc0] sm:$0xff]  ;;  %v5174_v50 = vld [vmem:[%s7178_s7 + $0x188] sm:$0xff] }
 0x8cb   :  { %3088 = vmatpush.bf16.msrb.mxu1 %v4538_v26  ;;  %3051 = vmatpush.bf16.msrb.mxu2 %v4462_v23  ;;  %v5164_v26 = vld [vmem:[%s7178_s7 + $0x138] sm:$0xff] }
 0x8cc   :  { %v5160_v23 = vld [vmem:[%s7178_s7 + $0x118] sm:$0xff] }
 0x8ce   :  { %3063 = vmatpush.bf16.msrb.mxu3 %v4498_v59  ;;  %v5171_v59 = vld [vmem:[%s7178_s7 + $0x170] sm:$0xff] }
 0x8cf   :  { %3089 = vmatpush.bf16.msrb.mxu1 %v4506_v41  ;;  %v5176_v41 = vld [vmem:[%s7178_s7 + $0x198] sm:$0xff] }
 0x8d2   :  { %3064 = vmatpush.bf16.msrb.mxu3 %v4466_v24  ;;  %v5168_v24 = vld [vmem:[%s7178_s7 + $0x158] sm:$0xff] }
 0x8d3   :  { %3090 = vmatpush.bf16.msrb.mxu1 %v4474_v40  ;;  %v5182_v40 = vld [vmem:[%s7178_s7 + $0x1c8] sm:$0xff] }
 0x910   :  { %v2576_v14 = vpop.permute.xlu2 %2575 }
 0x911   :  { %v2586_v27 = vsel %vm137_vm1, %v2567_v11, %v2576_v14  ;;  %v5159_v14 = vld [vmem:[%s7178_s7 + $0x110] sm:$0xff] }
 0x912   :  { %v5167_v11 = vld [vmem:[%s7178_s7 + $0x150] sm:$0xff] }
 0x927   :  { %v2584_v15 = vpop.permute.xlu1 %2583  ;;  %v2580_v18 = vpop.permute.xlu0 %2579 }
 0x928   :  { %v2587_v17 = vsel %vm750_vm6, %v2586_v27, %v2580_v18  ;;  %v5173_v27 = vld [vmem:[%s7178_s7 + $0x180] sm:$0xff] }
 0x929   :  { %v2588_v7 = vsel %vm759_vm7, %v2587_v17, %v2584_v15  ;;  %v5181_v15 = vld [vmem:[%s7178_s7 + $0x1c0] sm:$0xff]  ;;  %v5158_v17 = vld [vmem:[%s7178_s7 + $0x108] sm:$0xff] }
 0x92a   :  { %v2589_v39 = vpack.c.bf16 %v2588_v7, %v2588_v7  ;;  %v7076_v18 = vld [vmem:[%s7179_s6] sm:$0xff]  ;;  %v5166_v7 = vld [vmem:[%s7178_s7 + $0x148] sm:$0xff] }
 0x92c   :  { %3000 = vmatmul.bf16.vlgmr.msra.gmra.mxu2 %v2589_v39  ;;  %3013 = vmatmul.bf16.vlgmr.msra.gmra.mxu3 %v2589_v39 }
 0x92d   :  { %3026 = vmatmul.bf16.vlgmr.msra.gmra.mxu0 %v2589_v39  ;;  %3039 = vmatmul.bf16.vlgmr.msra.gmra.mxu1 %v2589_v39 }
 0x92e   :  { %3670 = vmatpush.bf16.msra.mxu0 %v5148_v28  ;;  %3683 = vmatpush.bf16.msra.mxu1 %v5156_v9  ;;  %v2659_v28 = vperm.slane %v7076_v18, 3  ;;  %v5157_v9 = vld [vmem:[%s7178_s7 + $0x100] sm:$0xff] }
 0x92f   :  { %3644 = vmatpush.bf16.msra.mxu2 %v5132_v4  ;;  %3657 = vmatpush.bf16.msra.mxu3 %v5140_v63  ;;  %v5165_v4 = vld [vmem:[%s7178_s7 + $0x140] sm:$0xff] }
 0x932   :  { %3671 = vmatpush.bf16.msra.mxu0 %v5147_v0  ;;  %3684 = vmatpush.bf16.msra.mxu1 %v5155_v8 }
 0x933   :  { %3645 = vmatpush.bf16.msra.mxu2 %v5131_v51  ;;  %3658 = vmatpush.bf16.msra.mxu3 %v5139_v13  ;;  %v2656_v13 = vperm.slane %v7076_v18, 0 }
 0x936   :  { %3672 = vmatpush.bf16.msra.mxu0 %v5146_v56  ;;  %3685 = vmatpush.bf16.msra.mxu1 %v5154_v34  ;;  %v2657_v56 = vperm.slane %v7076_v18, 1 }
 0x937   :  { %3646 = vmatpush.bf16.msra.mxu2 %v5130_v16  ;;  %3659 = vmatpush.bf16.msra.mxu3 %v5138_v20 }
 0x93a   :  { %3673 = vmatpush.bf16.msra.mxu0 %v5145_v32  ;;  %3686 = vmatpush.bf16.msra.mxu1 %v5153_v21 }
 0x93b   :  { %3647 = vmatpush.bf16.msra.mxu2 %v5129_v44  ;;  %3660 = vmatpush.bf16.msra.mxu3 %v5137_v62 }
 0x93c   :  { %3052 = vmatmul.bf16.vlgmr.msrb.gmra.mxu2 %v2589_v39  ;;  %3065 = vmatmul.bf16.vlgmr.msrb.gmra.mxu3 %v2589_v39 }
 0x93d   :  { %3078 = vmatmul.bf16.vlgmr.msrb.gmra.mxu0 %v2589_v39  ;;  %3091 = vmatmul.bf16.vlgmr.msrb.gmra.mxu1 %v2589_v39  ;;  %v2658_v39 = vperm.slane %v7076_v18, 2 }
 0x93e   :  { %3674 = vmatpush.bf16.msra.mxu0 %v5144_v60  ;;  %3687 = vmatpush.bf16.msra.mxu1 %v5152_v12 }
 0x93f   :  { %3648 = vmatpush.bf16.msra.mxu2 %v5128_v33  ;;  %3661 = vmatpush.bf16.msra.mxu3 %v5136_v1 }
 0x942   :  { %3675 = vmatpush.bf16.msra.mxu0 %v5143_v42  ;;  %3688 = vmatpush.bf16.msra.mxu1 %v5151_v3 }
 0x943   :  { %3649 = vmatpush.bf16.msra.mxu2 %v5127_v19  ;;  %3662 = vmatpush.bf16.msra.mxu3 %v5135_v29 }
 0x946   :  { %3676 = vmatpush.bf16.msra.mxu0 %v5142_v36  ;;  %3689 = vmatpush.bf16.msra.mxu1 %v5150_v30 }
 0x947   :  { %3650 = vmatpush.bf16.msra.mxu2 %v5126_v38  ;;  %3663 = vmatpush.bf16.msra.mxu3 %v5134_v45 }
 0x94a   :  { %3677 = vmatpush.bf16.msra.mxu0 %v5141_v2  ;;  %3690 = vmatpush.bf16.msra.mxu1 %v5149_v43  ;;  %v2662_v43 = vperm.slane %v7076_v18, 6 }
 0x94b   :  { %3651 = vmatpush.bf16.msra.mxu2 %v5125_v48  ;;  %3664 = vmatpush.bf16.msra.mxu3 %v5133_v22 }
 0x94e   :  { %3722 = vmatpush.bf16.msrb.mxu0 %v5180_v25  ;;  %3735 = vmatpush.bf16.msrb.mxu1 %v5188_v37  ;;  %v2663_v25 = vperm.slane %v7076_v18, 7 }
 0x94f   :  { %3696 = vmatpush.bf16.msrb.mxu2 %v5164_v26  ;;  %3709 = vmatpush.bf16.msrb.mxu3 %v5172_v53  ;;  %v2660_v53 = vperm.slane %v7076_v18, 4 }
 0x952   :  { %3723 = vmatpush.bf16.msrb.mxu0 %v5179_v49  ;;  %3736 = vmatpush.bf16.msrb.mxu1 %v5187_v52  ;;  %v2661_v49 = vperm.slane %v7076_v18, 5 }
 0x953   :  { %3697 = vmatpush.bf16.msrb.mxu2 %v5163_v31  ;;  %3710 = vmatpush.bf16.msrb.mxu3 %v5171_v59 }
 0x956   :  { %3724 = vmatpush.bf16.msrb.mxu0 %v5178_v46  ;;  %3737 = vmatpush.bf16.msrb.mxu1 %v5186_v35 }
 0x957   :  { %3698 = vmatpush.bf16.msrb.mxu2 %v5162_v5  ;;  %3711 = vmatpush.bf16.msrb.mxu3 %v5170_v54 }
 0x95a   :  { %3725 = vmatpush.bf16.msrb.mxu0 %v5177_v58  ;;  %3738 = vmatpush.bf16.msrb.mxu1 %v5185_v47 }
 0x95b   :  { %3699 = vmatpush.bf16.msrb.mxu2 %v5161_v57  ;;  %3712 = vmatpush.bf16.msrb.mxu3 %v5169_v61 }
 0x95e   :  { %3726 = vmatpush.bf16.msrb.mxu0 %v5176_v41  ;;  %3739 = vmatpush.bf16.msrb.mxu1 %v5184_v10 }
 0x95f   :  { %3700 = vmatpush.bf16.msrb.mxu2 %v5160_v23  ;;  %3713 = vmatpush.bf16.msrb.mxu3 %v5168_v24 }
 0x962   :  { %3727 = vmatpush.bf16.msrb.mxu0 %v5175_v55  ;;  %3740 = vmatpush.bf16.msrb.mxu1 %v5183_v6 }
 0x963   :  { %3701 = vmatpush.bf16.msrb.mxu2 %v5159_v14  ;;  %3714 = vmatpush.bf16.msrb.mxu3 %v5167_v11 }
 0x966   :  { %3728 = vmatpush.bf16.msrb.mxu0 %v5174_v50  ;;  %3741 = vmatpush.bf16.msrb.mxu1 %v5182_v40 }
 0x967   :  { %3702 = vmatpush.bf16.msrb.mxu2 %v5158_v17  ;;  %3715 = vmatpush.bf16.msrb.mxu3 %v5166_v7  ;;  %v5420_v17 = vld [vmem:[%s7180_s8] ss:$0 sm:$0xff] }
 0x96a   :  { %3729 = vmatpush.bf16.msrb.mxu0 %v5173_v27  ;;  %3742 = vmatpush.bf16.msrb.mxu1 %v5181_v15 }
 0x96b   :  { %3703 = vmatpush.bf16.msrb.mxu2 %v5157_v9  ;;  %3716 = vmatpush.bf16.msrb.mxu3 %v5165_v4 }
 0x9aa   :  { %v3027_v63 = vpop.f32.mrf.mxu0  ;;  %v3040_v0 = vpop.f32.mrf.mxu1 }
 0x9ab   :  { %v3028_v8 = vadd.f32 %v3027_v63, %v2658_v39  ;;  %v3041_v51 = vadd.f32 %v3040_v0, %v2659_v28 }
 0x9ad   :  { %vm3098_vm1 = vcmp.gt.f32.partialorder %v3028_v8, 0.0  ;;  %v3106_v34 = vmul.f32 0.2, %v3028_v8  ;;  %vm3099_vm7 = vcmp.gt.f32.partialorder %v3041_v51, 0.0  ;;  %v3107_v16 = vmul.f32 0.2, %v3041_v51 }
 0x9af   :  { %v3114_v20 = vsel %vm3098_vm1, %v3028_v8, %v3106_v34  ;;  %v3115_v32 = vsel %vm3099_vm7, %v3041_v51, %v3107_v16  ;;  %v3001_v21 = vpop.f32.mrf.mxu2  ;;  %v3014_v44 = vpop.f32.mrf.mxu3 }
 0x9b0   :  { %v3122_v62 = vpack.c.bf16 %v3114_v20, %v3114_v20  ;;  %v3123_v60 = vpack.c.bf16 %v3115_v32, %v3115_v32  ;;  %v3002_v12 = vadd.f32 %v3001_v21, %v2656_v13  ;;  %v3015_v33 = vadd.f32 %v3014_v44, %v2657_v56 }
 0x9b2   :  { %vm3096_vm5 = vcmp.gt.f32.partialorder %v3002_v12, 0.0  ;;  %v3104_v1 = vmul.f32 0.2, %v3002_v12  ;;  %vm3097_vm8 = vcmp.gt.f32.partialorder %v3015_v33, 0.0  ;;  %v3105_v42 = vmul.f32 0.2, %v3015_v33  ;;  %v3029_v3 = vpop.f32.mrf.mxu0  ;;  %v3042_v19 = vpop.f32.mrf.mxu1  ;;  %3678 = vmatmul.bf16.vlgmr.msra.gmra.mxu0 %v3122_v62  ;;  %3691 = vmatmul.bf16.vlgmr.msra.gmra.mxu1 %v3123_v60 }
 0x9b4   :  { %v3112_v29 = vsel %vm3096_vm5, %v3002_v12, %v3104_v1  ;;  %v3113_v36 = vsel %vm3097_vm8, %v3015_v33, %v3105_v42 }
 0x9b5   :  { %v3120_v30 = vpack.c.bf16 %v3112_v29, %v3112_v29  ;;  %v3121_v38 = vpack.c.bf16 %v3113_v36, %v3113_v36 }
 0x9b7   :  { %v3003_v45 = vpop.f32.mrf.mxu2  ;;  %v3016_v2 = vpop.f32.mrf.mxu3  ;;  %3652 = vmatmul.bf16.vlgmr.msra.gmra.mxu2 %v3120_v30  ;;  %3665 = vmatmul.bf16.vlgmr.msra.gmra.mxu3 %v3121_v38 }
 0x9ba   :  { %v3079_v37 = vpop.f32.mrf.mxu0  ;;  %v3092_v48 = vpop.f32.mrf.mxu1 }
 0x9bb   :  { %v3080_v22 = vadd.f32 %v3079_v37, %v2662_v43  ;;  %v3093_v26 = vadd.f32 %v3092_v48, %v2663_v25 }
 0x9bd   :  { %vm3102_vm9 = vcmp.gt.f32.partialorder %v3080_v22, 0.0  ;;  %v3110_v52 = vmul.f32 0.2, %v3080_v22  ;;  %vm3103_vm10 = vcmp.gt.f32.partialorder %v3093_v26, 0.0  ;;  %v3111_v46 = vmul.f32 0.2, %v3093_v26 }
 0x9bf   :  { %v3118_v35 = vsel %vm3102_vm9, %v3080_v22, %v3110_v52  ;;  %v3119_v31 = vsel %vm3103_vm10, %v3093_v26, %v3111_v46  ;;  %v3053_v59 = vpop.f32.mrf.mxu2  ;;  %v3066_v58 = vpop.f32.mrf.mxu3 }
 0x9c0   :  { %v3126_v47 = vpack.c.bf16 %v3118_v35, %v3118_v35  ;;  %v3127_v5 = vpack.c.bf16 %v3119_v31, %v3119_v31  ;;  %v3054_v54 = vadd.f32 %v3053_v59, %v2660_v53  ;;  %v3067_v41 = vadd.f32 %v3066_v58, %v2661_v49 }
 0x9c2   :  { %vm3100_vm11 = vcmp.gt.f32.partialorder %v3054_v54, 0.0  ;;  %v3108_v10 = vmul.f32 0.2, %v3054_v54  ;;  %vm3101_vm12 = vcmp.gt.f32.partialorder %v3067_v41, 0.0  ;;  %v3109_v57 = vmul.f32 0.2, %v3067_v41  ;;  %v3081_v61 = vpop.f32.mrf.mxu0  ;;  %v3094_v55 = vpop.f32.mrf.mxu1  ;;  %3730 = vmatmul.bf16.vlgmr.msrb.gmra.mxu0 %v3126_v47  ;;  %3743 = vmatmul.bf16.vlgmr.msrb.gmra.mxu1 %v3127_v5 }
 0x9c4   :  { %v3116_v6 = vsel %vm3100_vm11, %v3054_v54, %v3108_v10  ;;  %v3117_v23 = vsel %vm3101_vm12, %v3067_v41, %v3109_v57 }
 0x9c5   :  { %v3124_v24 = vpack.c.bf16 %v3116_v6, %v3116_v6  ;;  %v3125_v50 = vpack.c.bf16 %v3117_v23, %v3117_v23 }
 0x9c7   :  { %v3055_v40 = vpop.f32.mrf.mxu2  ;;  %v3068_v14 = vpop.f32.mrf.mxu3  ;;  %3704 = vmatmul.bf16.vlgmr.msrb.gmra.mxu2 %v3124_v24  ;;  %3717 = vmatmul.bf16.vlgmr.msrb.gmra.mxu3 %v3125_v50 }
 0xa2f   :  { %v3679_v11 = vpop.f32.mrf.mxu0  ;;  %v3692_v27 = vpop.f32.mrf.mxu1 }
 0xa37   :  { %v3681_v15 = vpop.f32.mrf.mxu0  ;;  %v3694_v18 = vpop.f32.mrf.mxu1 }
 0xa3a   :  { %v3653_v7 = vpop.f32.mrf.mxu2  ;;  %v3666_v39 = vpop.f32.mrf.mxu3 }
 0xa3b   :  { %v3654_v28 = vadd.f32 %v5420_v17, %v3653_v7 }
 0xa3d   :  { %v3667_v63 = vadd.f32 %v3666_v39, %v3654_v28 }
 0xa3f   :  { %v3731_v9 = vpop.f32.mrf.mxu0  ;;  %v3744_v4 = vpop.f32.mrf.mxu1  ;;  %v3680_v51 = vadd.f32 %v3679_v11, %v3667_v63 }
 0xa41   :  { %v3693_v34 = vadd.f32 %v3692_v27, %v3680_v51 }
 0xa42   :  { %v3655_v0 = vpop.f32.mrf.mxu2  ;;  %v3668_v8 = vpop.f32.mrf.mxu3 }
 0xa47   :  { %v3733_v13 = vpop.f32.mrf.mxu0  ;;  %v3746_v56 = vpop.f32.mrf.mxu1 }
 0xa4a   :  { %v3705_v16 = vpop.f32.mrf.mxu2  ;;  %v3718_v20 = vpop.f32.mrf.mxu3 }
 0xa4b   :  { %v3706_v32 = vadd.f32 %v3705_v16, %v3693_v34 }
 0xa4d   :  { %v3719_v21 = vadd.f32 %v3718_v20, %v3706_v32 }
 0xa4f   :  { %v3732_v44 = vadd.f32 %v3731_v9, %v3719_v21 }
 0xa51   :  { %v3745_v62 = vadd.f32 %v3744_v4, %v3732_v44 }
 0xa52   :  { %v3707_v60 = vpop.f32.mrf.mxu2  ;;  %v3720_v12 = vpop.f32.mrf.mxu3 }
 0xa53   :  { %v7101_v33 = vmul.f32 0.5, %v3745_v62 }
 0xa55   :  { %v3750_v1 = vsel %vm3749_vm0, %v7101_v33, -inf }
 0xa56   :  { %3751 = vmax.xlane.f32.xlu2 %v3750_v1 }
 0xac9   :  { %v3752_v42 = vpop.xlane.xlu2 %3751 }
 0xaca   :  { %v4955_v3 = vadd.f32 -1.0, %v3752_v42 }
 0xacc   :  { %v3754_v19 = vadd.f32 0.4375, %v4955_v3 }
 0xace   :  { %v3755_v29 = vsub.f32 %v7101_v33, %v3754_v19 }
 0xad0   :  { %v3756_v36 = vmax.f32 %v3755_v29, 0.0 }
 0xad2   :  { %v3757_v30 = vmul.f32 %v3756_v36, %v3756_v36 }
 0xad4   :  { %v3758_v38 = vsel %vm3749_vm0, %v3757_v30, 0.0 }
 0xad5   :  { %3759 = vadd.xlane.f32.xlu0 %v3758_v38 }
 0xb48   :  { %v3760_v45 = vpop.xlane.xlu0 %3759 }
 0xb49   :  { %v4956_v2 = vadd.f32 -1.0, %v3760_v45 }
 0xb4b   :  { %vm3762_vm13 = vcmp.ge.f32.partialorder %v4956_v2, 0.0 }
 0xb4c   :  { %v3763_v43 = vsel %vm3762_vm13, %v3754_v19, %v4955_v3 }
 0xb4d   :  { %v3764_v25 = vadd.f32 0.21875, %v3763_v43 }
 0xb4f   :  { %v3765_v37 = vsub.f32 %v7101_v33, %v3764_v25 }
 0xb51   :  { %v3766_v48 = vmax.f32 %v3765_v37, 0.0 }
 0xb53   :  { %v3767_v22 = vmul.f32 %v3766_v48, %v3766_v48 }
 0xb55   :  { %v3768_v26 = vsel %vm3749_vm0, %v3767_v22, 0.0 }
 0xb56   :  { %3769 = vadd.xlane.f32.xlu1 %v3768_v26 }
 0xbc9   :  { %v3770_v53 = vpop.xlane.xlu1 %3769 }
 0xbca   :  { %v4957_v49 = vadd.f32 -1.0, %v3770_v53 }
 0xbcc   :  { %vm3772_vm14 = vcmp.ge.f32.partialorder %v4957_v49, 0.0 }
 0xbcd   :  { %v3773_v52 = vsel %vm3772_vm14, %v3764_v25, %v3763_v43 }
 0xbce   :  { %v3774_v46 = vadd.f32 0.109375, %v3773_v52 }
 0xbd0   :  { %v3775_v35 = vsub.f32 %v7101_v33, %v3774_v46 }
 0xbd2   :  { %v3776_v31 = vmax.f32 %v3775_v35, 0.0 }
 0xbd4   :  { %v3777_v59 = vmul.f32 %v3776_v31, %v3776_v31 }
 0xbd6   :  { %v3778_v58 = vsel %vm3749_vm0, %v3777_v59, 0.0 }
 0xbd7   :  { %3779 = vadd.xlane.f32.xlu2 %v3778_v58 }
 0xc4a   :  { %v3780_v47 = vpop.xlane.xlu2 %3779 }
 0xc4b   :  { %v4958_v5 = vadd.f32 -1.0, %v3780_v47 }
 0xc4d   :  { %vm3782_vm15 = vcmp.ge.f32.partialorder %v4958_v5, 0.0 }
 0xc4e   :  { %v3783_v54 = vsel %vm3782_vm15, %v3774_v46, %v3773_v52 }
 0xc4f   :  { %v3784_v41 = vadd.f32 0.0546875, %v3783_v54 }
 0xc51   :  { %v3785_v10 = vsub.f32 %v7101_v33, %v3784_v41 }
 0xc53   :  { %v3786_v57 = vmax.f32 %v3785_v10, 0.0 }
 0xc55   :  { %v3787_v61 = vmul.f32 %v3786_v57, %v3786_v57 }
 0xc57   :  { %v3788_v55 = vsel %vm3749_vm0, %v3787_v61, 0.0 }
 0xc58   :  { %3789 = vadd.xlane.f32.xlu2 %v3788_v55 }
 0xccb   :  { %v3790_v6 = vpop.xlane.xlu2 %3789 }
 0xccc   :  { %v4959_v23 = vadd.f32 -1.0, %v3790_v6 }
 0xcce   :  { %vm3792_vm2 = vcmp.ge.f32.partialorder %v4959_v23, 0.0 }
 0xccf   :  { %v3793_v24 = vsel %vm3792_vm2, %v3784_v41, %v3783_v54 }
 0xcd0   :  { %v3794_v50 = vadd.f32 0.02734375, %v3793_v24 }
 0xcd2   :  { %v3795_v40 = vsub.f32 %v7101_v33, %v3794_v50 }
 0xcd4   :  { %v3796_v14 = vmax.f32 %v3795_v40, 0.0 }
 0xcd6   :  { %v3797_v11 = vmul.f32 %v3796_v14, %v3796_v14 }
 0xcd8   :  { %v3798_v27 = vsel %vm3749_vm0, %v3797_v11, 0.0 }
 0xcd9   :  { %3799 = vadd.xlane.f32.xlu0 %v3798_v27 }
 0xd4c   :  { %v3800_v15 = vpop.xlane.xlu0 %3799 }
 0xd4d   :  { %v4960_v18 = vadd.f32 -1.0, %v3800_v15 }
 0xd4f   :  { %vm3802_vm3 = vcmp.ge.f32.partialorder %v4960_v18, 0.0 }
 0xd50   :  { %v3803_v17 = vsel %vm3802_vm3, %v3794_v50, %v3793_v24 }
 0xd51   :  { %v3804_v7 = vadd.f32 0.013671875, %v3803_v17 }
 0xd53   :  { %v3805_v39 = vsub.f32 %v7101_v33, %v3804_v7 }
 0xd55   :  { %v3806_v28 = vmax.f32 %v3805_v39, 0.0 }
 0xd57   :  { %v3807_v9 = vmul.f32 %v3806_v28, %v3806_v28 }
 0xd59   :  { %v3808_v4 = vsel %vm3749_vm0, %v3807_v9, 0.0 }
 0xd5a   :  { %3809 = vadd.xlane.f32.xlu1 %v3808_v4 }
 0xdcd   :  { %v3810_v63 = vpop.xlane.xlu1 %3809 }
 0xdce   :  { %v4961_v0 = vadd.f32 -1.0, %v3810_v63 }
 0xdd0   :  { %vm3812_vm4 = vcmp.ge.f32.partialorder %v4961_v0, 0.0 }
 0xdd1   :  { %v3813_v8 = vsel %vm3812_vm4, %v3804_v7, %v3803_v17 }
 0xdd2   :  { %v3814_v51 = vadd.f32 0.0068359375, %v3813_v8 }
 0xdd4   :  { %v3815_v13 = vsub.f32 %v7101_v33, %v3814_v51 }
 0xdd6   :  { %v3816_v56 = vmax.f32 %v3815_v13, 0.0 }
 0xdd8   :  { %v3817_v34 = vmul.f32 %v3816_v56, %v3816_v56 }
 0xdda   :  { %v3818_v16 = vsel %vm3749_vm0, %v3817_v34, 0.0 }
 0xddb   :  { %3819 = vadd.xlane.f32.xlu2 %v3818_v16 }
 0xe4e   :  { %v3820_v20 = vpop.xlane.xlu2 %3819 }
 0xe4f   :  { %v4962_v32 = vadd.f32 -1.0, %v3820_v20 }
 0xe51   :  { %vm3822_vm1 = vcmp.ge.f32.partialorder %v4962_v32, 0.0 }
 0xe52   :  { %v3823_v21 = vsel %vm3822_vm1, %v3814_v51, %v3813_v8 }
 0xe53   :  { %v3824_v44 = vadd.f32 0.0034179688, %v3823_v21 }
 0xe55   :  { %v3825_v62 = vsub.f32 %v7101_v33, %v3824_v44 }
 0xe57   :  { %v3826_v60 = vmax.f32 %v3825_v62, 0.0 }
 0xe59   :  { %v3827_v12 = vmul.f32 %v3826_v60, %v3826_v60 }
 0xe5b   :  { %v3828_v1 = vsel %vm3749_vm0, %v3827_v12, 0.0 }
 0xe5c   :  { %3829 = vadd.xlane.f32.xlu0 %v3828_v1 }
 0xecf   :  { %v3830_v42 = vpop.xlane.xlu0 %3829 }
 0xed0   :  { %v4963_v3 = vadd.f32 -1.0, %v3830_v42 }
 0xed2   :  { %vm3832_vm7 = vcmp.ge.f32.partialorder %v4963_v3, 0.0 }
 0xed3   :  { %v3833_v19 = vsel %vm3832_vm7, %v3824_v44, %v3823_v21 }
 0xed4   :  { %v3834_v29 = vadd.f32 0.0017089844, %v3833_v19 }
 0xed6   :  { %v3835_v36 = vsub.f32 %v7101_v33, %v3834_v29 }
 0xed8   :  { %v3836_v30 = vmax.f32 %v3835_v36, 0.0 }
 0xeda   :  { %v3837_v38 = vmul.f32 %v3836_v30, %v3836_v30 }
 0xedc   :  { %v3838_v45 = vsel %vm3749_vm0, %v3837_v38, 0.0 }
 0xedd   :  { %3839 = vadd.xlane.f32.xlu1 %v3838_v45 }
 0xf50   :  { %v3840_v2 = vpop.xlane.xlu1 %3839 }
 0xf51   :  { %v4964_v43 = vadd.f32 -1.0, %v3840_v2 }
 0xf53   :  { %vm3842_vm5 = vcmp.ge.f32.partialorder %v4964_v43, 0.0 }
 0xf54   :  { %v3843_v25 = vsel %vm3842_vm5, %v3834_v29, %v3833_v19 }
 0xf55   :  { %v3844_v37 = vadd.f32 0.0008544922, %v3843_v25 }
 0xf57   :  { %v3845_v48 = vsub.f32 %v7101_v33, %v3844_v37 }
 0xf59   :  { %v3846_v22 = vmax.f32 %v3845_v48, 0.0 }
 0xf5b   :  { %v3847_v26 = vmul.f32 %v3846_v22, %v3846_v22 }
 0xf5d   :  { %v3848_v53 = vsel %vm3749_vm0, %v3847_v26, 0.0 }
 0xf5e   :  { %3849 = vadd.xlane.f32.xlu2 %v3848_v53 }
 0xfd1   :  { %v3850_v49 = vpop.xlane.xlu2 %3849 }
 0xfd2   :  { %v4965_v52 = vadd.f32 -1.0, %v3850_v49 }
 0xfd4   :  { %vm3852_vm8 = vcmp.ge.f32.partialorder %v4965_v52, 0.0 }
 0xfd5   :  { %v3853_v46 = vsel %vm3852_vm8, %v3844_v37, %v3843_v25 }
 0xfd6   :  { %v3854_v35 = vadd.f32 0.0004272461, %v3853_v46 }
 0xfd8   :  { %v3855_v31 = vsub.f32 %v7101_v33, %v3854_v35 }
 0xfda   :  { %v3856_v59 = vmax.f32 %v3855_v31, 0.0 }
 0xfdc   :  { %v3857_v58 = vmul.f32 %v3856_v59, %v3856_v59 }
 0xfde   :  { %v3858_v47 = vsel %vm3749_vm0, %v3857_v58, 0.0 }
 0xfdf   :  { %3859 = vadd.xlane.f32.xlu0 %v3858_v47 }
0x1052   :  { %v3860_v5 = vpop.xlane.xlu0 %3859 }
0x1053   :  { %v4966_v54 = vadd.f32 -1.0, %v3860_v5 }
0x1055   :  { %vm3862_vm9 = vcmp.ge.f32.partialorder %v4966_v54, 0.0 }
0x1056   :  { %v3863_v41 = vsel %vm3862_vm9, %v3854_v35, %v3853_v46 }
0x1057   :  { %v3864_v10 = vadd.f32 0.00021362305, %v3863_v41 }
0x1059   :  { %v3865_v57 = vsub.f32 %v7101_v33, %v3864_v10 }
0x105b   :  { %v3866_v61 = vmax.f32 %v3865_v57, 0.0 }
0x105d   :  { %v3867_v55 = vmul.f32 %v3866_v61, %v3866_v61 }
0x105f   :  { %v3868_v6 = vsel %vm3749_vm0, %v3867_v55, 0.0 }
0x1060   :  { %3869 = vadd.xlane.f32.xlu1 %v3868_v6 }
0x10d3   :  { %v3870_v23 = vpop.xlane.xlu1 %3869 }
0x10d4   :  { %v4967_v24 = vadd.f32 -1.0, %v3870_v23 }
0x10d6   :  { %vm3872_vm10 = vcmp.ge.f32.partialorder %v4967_v24, 0.0 }
0x10d7   :  { %v3873_v50 = vsel %vm3872_vm10, %v3864_v10, %v3863_v41 }
0x10d8   :  { %v3874_v40 = vadd.f32 0.00010681152, %v3873_v50 }
0x10da   :  { %v3875_v14 = vsub.f32 %v7101_v33, %v3874_v40 }
0x10dc   :  { %v3876_v11 = vmax.f32 %v3875_v14, 0.0 }
0x10de   :  { %v3877_v27 = vmul.f32 %v3876_v11, %v3876_v11 }
0x10e0   :  { %v3878_v15 = vsel %vm3749_vm0, %v3877_v27, 0.0 }
0x10e1   :  { %3879 = vadd.xlane.f32.xlu2 %v3878_v15 }
0x1154   :  { %v3880_v18 = vpop.xlane.xlu2 %3879 }
0x1155   :  { %v4968_v17 = vadd.f32 -1.0, %v3880_v18 }
0x1157   :  { %vm3882_vm11 = vcmp.ge.f32.partialorder %v4968_v17, 0.0 }
0x1158   :  { %v3883_v7 = vsel %vm3882_vm11, %v3874_v40, %v3873_v50 }
0x1159   :  { %v3884_v39 = vadd.f32 5.340576e-05, %v3883_v7 }
0x115b   :  { %v3885_v28 = vsub.f32 %v7101_v33, %v3884_v39 }
0x115d   :  { %v3886_v9 = vmax.f32 %v3885_v28, 0.0 }
0x115f   :  { %v3887_v4 = vmul.f32 %v3886_v9, %v3886_v9 }
0x1161   :  { %v3888_v63 = vsel %vm3749_vm0, %v3887_v4, 0.0 }
0x1162   :  { %3889 = vadd.xlane.f32.xlu0 %v3888_v63 }
0x11d5   :  { %v3890_v0 = vpop.xlane.xlu0 %3889 }
0x11d6   :  { %v4969_v8 = vadd.f32 -1.0, %v3890_v0 }
0x11d8   :  { %vm3892_vm12 = vcmp.ge.f32.partialorder %v4969_v8, 0.0 }
0x11d9   :  { %v3893_v51 = vsel %vm3892_vm12, %v3884_v39, %v3883_v7 }
0x11da   :  { %v3894_v13 = vadd.f32 2.670288e-05, %v3893_v51 }
0x11dc   :  { %v3895_v56 = vsub.f32 %v7101_v33, %v3894_v13 }
0x11de   :  { %v3896_v34 = vmax.f32 %v3895_v56, 0.0 }
0x11e0   :  { %v3897_v16 = vmul.f32 %v3896_v34, %v3896_v34 }
0x11e2   :  { %v3898_v20 = vsel %vm3749_vm0, %v3897_v16, 0.0 }
0x11e3   :  { %3899 = vadd.xlane.f32.xlu1 %v3898_v20 }
0x1256   :  { %v3900_v32 = vpop.xlane.xlu1 %3899 }
0x1257   :  { %v4970_v21 = vadd.f32 -1.0, %v3900_v32 }
0x1259   :  { %vm3902_vm13 = vcmp.ge.f32.partialorder %v4970_v21, 0.0 }
0x125a   :  { %v3903_v44 = vsel %vm3902_vm13, %v3894_v13, %v3893_v51 }
0x125b   :  { %v3904_v62 = vadd.f32 1.335144e-05, %v3903_v44 }
0x125d   :  { %v3905_v60 = vsub.f32 %v7101_v33, %v3904_v62 }
0x125f   :  { %v3906_v12 = vmax.f32 %v3905_v60, 0.0 }
0x1261   :  { %v3907_v1 = vmul.f32 %v3906_v12, %v3906_v12 }
0x1263   :  { %v3908_v42 = vsel %vm3749_vm0, %v3907_v1, 0.0 }
0x1264   :  { %3909 = vadd.xlane.f32.xlu2 %v3908_v42 }
0x12d7   :  { %v3910_v3 = vpop.xlane.xlu2 %3909 }
0x12d8   :  { %v4971_v19 = vadd.f32 -1.0, %v3910_v3 }
0x12da   :  { %vm3912_vm14 = vcmp.ge.f32.partialorder %v4971_v19, 0.0 }
0x12db   :  { %v3913_v29 = vsel %vm3912_vm14, %v3904_v62, %v3903_v44 }
0x12dc   :  { %v3914_v36 = vadd.f32 6.67572e-06, %v3913_v29 }
0x12de   :  { %v3915_v30 = vsub.f32 %v7101_v33, %v3914_v36 }
0x12e0   :  { %v3916_v38 = vmax.f32 %v3915_v30, 0.0 }
0x12e2   :  { %v3917_v45 = vmul.f32 %v3916_v38, %v3916_v38 }
0x12e4   :  { %v3918_v2 = vsel %vm3749_vm0, %v3917_v45, 0.0 }
0x12e5   :  { %3919 = vadd.xlane.f32.xlu0 %v3918_v2 }
0x1358   :  { %v3920_v43 = vpop.xlane.xlu0 %3919 }
0x1359   :  { %v4972_v25 = vadd.f32 -1.0, %v3920_v43  ;;  %v5192_v43 = vld [vmem:[%s7181_s9 + $0x18] sm:$0xff] }
0x135a   :  { %4055 = vmatpush.bf16.msra.mxu2 %v5192_v43 }
0x135b   :  { %vm3922_vm15 = vcmp.ge.f32.partialorder %v4972_v25, 0.0  ;;  %v5191_v25 = vld [vmem:[%s7181_s9 + $0x10] sm:$0xff] }
0x135c   :  { %v3923_v37 = vsel %vm3922_vm15, %v3914_v36, %v3913_v29 }
0x135d   :  { %v3924_v48 = vadd.f32 3.33786e-06, %v3923_v37 }
0x135e   :  { %4056 = vmatpush.bf16.msra.mxu2 %v5191_v25 }
0x135f   :  { %v3925_v22 = vsub.f32 %v7101_v33, %v3924_v48 }
0x1361   :  { %v3926_v26 = vmax.f32 %v3925_v22, 0.0 }
0x1363   :  { %v3927_v53 = vmul.f32 %v3926_v26, %v3926_v26 }
0x1365   :  { %v3928_v49 = vsel %vm3749_vm0, %v3927_v53, 0.0 }
0x1366   :  { %3929 = vadd.xlane.f32.xlu1 %v3928_v49 }
0x13d9   :  { %v3930_v52 = vpop.xlane.xlu1 %3929 }
0x13da   :  { %v4973_v46 = vadd.f32 -1.0, %v3930_v52 }
0x13dc   :  { %vm3932_vm2 = vcmp.ge.f32.partialorder %v4973_v46, 0.0 }
0x13dd   :  { %v3933_v35 = vsel %vm3932_vm2, %v3924_v48, %v3923_v37  ;;  %v5190_v37 = vld [vmem:[%s7181_s9 + $0x8] sm:$0xff] }
0x13de   :  { %v3934_v31 = vadd.f32 1.66893e-06, %v3933_v35  ;;  %4057 = vmatpush.bf16.msra.mxu2 %v5190_v37 }
0x13e0   :  { %v3935_v59 = vsub.f32 %v7101_v33, %v3934_v31 }
0x13e2   :  { %v3936_v58 = vmax.f32 %v3935_v59, 0.0 }
0x13e4   :  { %v3937_v47 = vmul.f32 %v3936_v58, %v3936_v58 }
0x13e6   :  { %v3938_v5 = vsel %vm3749_vm0, %v3937_v47, 0.0 }
0x13e7   :  { %3939 = vadd.xlane.f32.xlu2 %v3938_v5 }
0x145a   :  { %v3940_v54 = vpop.xlane.xlu2 %3939 }
0x145b   :  { %v4974_v41 = vadd.f32 -1.0, %v3940_v54 }
0x145d   :  { %vm3942_vm3 = vcmp.ge.f32.partialorder %v4974_v41, 0.0 }
0x145e   :  { %v3943_v10 = vsel %vm3942_vm3, %v3934_v31, %v3933_v35 }
0x145f   :  { %v3944_v57 = vadd.f32 8.34465e-07, %v3943_v10 }
0x1461   :  { %v3945_v61 = vsub.f32 %v7101_v33, %v3944_v57 }
0x1463   :  { %v3946_v55 = vmax.f32 %v3945_v61, 0.0 }
0x1465   :  { %v3947_v6 = vmul.f32 %v3946_v55, %v3946_v55 }
0x1467   :  { %v3948_v23 = vsel %vm3749_vm0, %v3947_v6, 0.0 }
0x1468   :  { %3949 = vadd.xlane.f32.xlu0 %v3948_v23 }
0x14db   :  { %v3950_v24 = vpop.xlane.xlu0 %3949 }
0x14dc   :  { %v4975_v50 = vadd.f32 -1.0, %v3950_v24 }
0x14de   :  { %vm3952_vm4 = vcmp.ge.f32.partialorder %v4975_v50, 0.0 }
0x14df   :  { %v3953_v40 = vsel %vm3952_vm4, %v3944_v57, %v3943_v10 }
0x14e0   :  { %v3954_v14 = vadd.f32 4.172325e-07, %v3953_v40 }
0x14e2   :  { %v3955_v11 = vsub.f32 %v7101_v33, %v3954_v14 }
0x14e4   :  { %v3956_v27 = vmax.f32 %v3955_v11, 0.0 }
0x14e6   :  { %v3957_v15 = vmul.f32 %v3956_v27, %v3956_v27 }
0x14e8   :  { %v3958_v18 = vsel %vm3749_vm0, %v3957_v15, 0.0 }
0x14e9   :  { %3959 = vadd.xlane.f32.xlu1 %v3958_v18 }
0x155c   :  { %v3960_v17 = vpop.xlane.xlu1 %3959 }
0x155d   :  { %v4976_v7 = vadd.f32 -1.0, %v3960_v17 }
0x155f   :  { %vm3962_vm1 = vcmp.ge.f32.partialorder %v4976_v7, 0.0 }
0x1560   :  { %v3963_v39 = vsel %vm3962_vm1, %v3954_v14, %v3953_v40 }
0x1561   :  { %v3964_v28 = vadd.f32 2.0861626e-07, %v3963_v39 }
0x1563   :  { %v3965_v9 = vsub.f32 %v7101_v33, %v3964_v28 }
0x1565   :  { %v3966_v4 = vmax.f32 %v3965_v9, 0.0 }
0x1567   :  { %v3967_v63 = vmul.f32 %v3966_v4, %v3966_v4 }
0x1569   :  { %v3968_v0 = vsel %vm3749_vm0, %v3967_v63, 0.0 }
0x156a   :  { %3969 = vadd.xlane.f32.xlu2 %v3968_v0 }
0x15dd   :  { %v3970_v8 = vpop.xlane.xlu2 %3969 }
0x15de   :  { %v4977_v51 = vadd.f32 -1.0, %v3970_v8 }
0x15e0   :  { %vm3972_vm7 = vcmp.ge.f32.partialorder %v4977_v51, 0.0 }
0x15e1   :  { %v3973_v13 = vsel %vm3972_vm7, %v3964_v28, %v3963_v39 }
0x15e2   :  { %v3974_v56 = vadd.f32 1.0430813e-07, %v3973_v13 }
0x15e4   :  { %v3975_v34 = vsub.f32 %v7101_v33, %v3974_v56 }
0x15e6   :  { %v3976_v16 = vmax.f32 %v3975_v34, 0.0 }
0x15e8   :  { %v3977_v20 = vmul.f32 %v3976_v16, %v3976_v16 }
0x15ea   :  { %v3978_v32 = vsel %vm3749_vm0, %v3977_v20, 0.0 }
0x15eb   :  { %3979 = vadd.xlane.f32.xlu0 %v3978_v32 }
0x165e   :  { %v3980_v21 = vpop.xlane.xlu0 %3979 }
0x165f   :  { %v4978_v44 = vadd.f32 -1.0, %v3980_v21 }
0x1661   :  { %vm3982_vm5 = vcmp.ge.f32.partialorder %v4978_v44, 0.0 }
0x1662   :  { %v3983_v62 = vsel %vm3982_vm5, %v3974_v56, %v3973_v13 }
0x1663   :  { %v3984_v60 = vadd.f32 5.2154064e-08, %v3983_v62 }
0x1665   :  { %v3985_v12 = vsub.f32 %v7101_v33, %v3984_v60 }
0x1667   :  { %v3986_v1 = vmax.f32 %v3985_v12, 0.0 }
0x1669   :  { %v3987_v42 = vmul.f32 %v3986_v1, %v3986_v1 }
0x166b   :  { %v3988_v3 = vsel %vm3749_vm0, %v3987_v42, 0.0 }
0x166c   :  { %3989 = vadd.xlane.f32.xlu1 %v3988_v3 }
0x16df   :  { %v3990_v19 = vpop.xlane.xlu1 %3989 }
0x16e0   :  { %v4979_v29 = vadd.f32 -1.0, %v3990_v19 }
0x16e2   :  { %vm3992_vm8 = vcmp.ge.f32.partialorder %v4979_v29, 0.0 }
0x16e3   :  { %v3993_v36 = vsel %vm3992_vm8, %v3984_v60, %v3983_v62 }
0x16e4   :  { %v3994_v30 = vsub.f32 %v7101_v33, %v3993_v36  ;;  %v5189_v33 = vld [vmem:[%s7181_s9] sm:$0xff] }
0x16e5   :  { %4058 = vmatpush.bf16.msra.mxu2 %v5189_v33 }
0x16e6   :  { %v3995_v38 = vmax.f32 %v3994_v30, 0.0 }
0x16e8   :  { %v3996_v45 = vmul.f32 %v3995_v38, %v3995_v38 }
0x16ea   :  { %v3997_v2 = vsel %vm3749_vm0, %v3996_v45, 0.0 }
0x16eb   :  { %3998 = vadd.xlane.f32.xlu2 %v3997_v2 }
0x175e   :  { %v3999_v48 = vpop.xlane.xlu2 %3998 }
0x175f   :  { %5421 = vrcp.f32 %v3999_v48  ;;  %v4011_v49 = vand.u32 2147483648, %v3999_v48  ;;  %v4009_v46 = vand.u32 2147483647, %v3999_v48  ;;  %vm4005_vm10 = vweird.f32 %v3999_v48 }
0x1761   :  { %v4012_v31 = vor.u32 1.1754944e-38, %v4011_v49  ;;  %vm4010_vm12 = vcmp.eq.f32.partialorder %v4009_v46, 8.507059e+37 }
0x1765   :  { %v5422_v22 = vpop.eup %5421 }
0x1766   :  { %v4001_v26 = vmul.f32 %v5422_v22, %v3999_v48  ;;  %vm4006_vm9 = vweird.f32 %v5422_v22 }
0x1767   :  { %vm4007_vm11 = vmor %vm4005_vm10, %vm4006_vm9 }
0x1768   :  { %v4002_v53 = vsub.f32 1.0, %v4001_v26 }
0x176a   :  { %v4003_v52 = vmul.f32 %v5422_v22, %v4002_v53 }
0x176c   :  { %v4004_v35 = vadd.f32 %v5422_v22, %v4003_v52 }
0x176e   :  { %v4008_v59 = vsel %vm4007_vm11, %v5422_v22, %v4004_v35 }
0x176f   :  { %v4013_v58 = vsel %vm4010_vm12, %v4012_v31, %v4008_v59 }
0x1770   :  { %v4014_v47 = vmul.f32 %v4013_v58, %v3996_v45 }
0x1772   :  { %v4015_v5 = vpack.c.bf16 %v4014_v47, %v4014_v47 }
0x1774   :  { %4996 = vmatmul.msk.bf16.vlgmr.msra.gmra.mxu2 %vm750_vm6, %v4015_v5 }
0x17f7   :  { %v4060_v54 = vpop.f32.mrf.mxu2 }
0x17f8   :  { %4064 = vst.msk [vmem:[%s7182_s10] sm:$0xf] %vm3749_vm0, %v4060_v54 }
0x17ff   :  { %v4062_v41 = vpop.f32.mrf.mxu2 }

</bundles_post_ra>
